<compile_context>
chip_gen: v7x
topology: tpu7x:2x2x1
jax: 0.10.0
libtpu: 0.0.40
codegen_flags: <defaults>
</compile_context>

<pallas_src>
import functools
import math

import jax
import jax.numpy as jnp
import numpy as np
from jax.experimental import pallas as pl
from jax.experimental.pallas import tpu as pltpu


# (dh, dw) tap-pair enumeration shared by kernel, weight table and mask table.
_PAIRS = tuple((dh, dw) for dh in (-1, 0, 1) for dw in (-1, 0, 1))


# ----------------------------------------------------------------------------
# Pallas kernel: one (batch, D-tile) step.
#   - two grouped 3x3x3 convs (C -> 1) -> sigmoid spatial gates (9 MXU matmuls +
#     8 small XLU rolls + precomputed boundary masks)
#   - high/low recombination with the (hoisted) channel-attention gate
# ----------------------------------------------------------------------------
def _fs3d_kernel(x_ref, low_ref, hlo_ref, hhi_ref, att_ref, b_ref, w_ref, mask_ref,
                 out_ref, xext_ref, *, W):
    """Block shapes (HW = lane-padded H*W, TD = D-tile, flat lane axis = TD*HW):
      x_ref, low_ref, out_ref : (1, C, TD*HW)     VMEM
      hlo_ref, hhi_ref        : (1, C, HW)        VMEM   clamped D-halo planes
      att_ref                 : (B, C)            SMEM   channel-attention gate
      b_ref                   : (2,)              SMEM   gate-conv biases (hi, lo)
      w_ref                   : (9, 6, C)         VMEM   per-(dh,dw) weights, rows=(kd, gate)
      mask_ref                : (9, TD*HW)        VMEM   output-validity masks per (dh,dw)
      xext_ref                : (C, (TD+2)*HW)    VMEM scratch (f32), D-extended tile
    """
    b = pl.program_id(0)
    t = pl.program_id(1)
    nt = pl.num_programs(1)

    _, C, TDHW = x_ref.shape
    HW = hlo_ref.shape[2]

    # ---- assemble the D-extended tile: [halo(d-1) | TD planes | halo(d+TD)] ----------
    lo_scale = jnp.where(t > 0, 1.0, 0.0).astype(jnp.float32)        # zero-pad at d = -1
    hi_scale = jnp.where(t < nt - 1, 1.0, 0.0).astype(jnp.float32)   # zero-pad at d = D
    xext_ref[:, 0:HW] = hlo_ref[0].astype(jnp.float32) * lo_scale
    xext_ref[:, HW:HW + TDHW] = x_ref[0].astype(jnp.float32)
    xext_ref[:, HW + TDHW:HW + TDHW + HW] = hhi_ref[0].astype(jnp.float32) * hi_scale
    xe = xext_ref[...]                                               # (C, (TD+2)*HW)

    # ---- grouped 3x3x3 convs for both gates --------------------------------------------
    acc = jnp.zeros((2, TDHW), jnp.float32)
    for pidx, (dh, dw) in enumerate(_PAIRS):
        s = dh * W + dw                       # flat lane shift of this (dh, dw) tap pair
        # MXU: (6, C) x (C, (TD+2)*HW); rows are (kd=0..2) x (gate hi/lo), contracted over C.
        res = jnp.dot(w_ref[pidx], xe, preferred_element_type=jnp.float32)
        bracket = (res[0:2, 0:TDHW]                        # kd=0  (input plane d-1)
                   + res[2:4, HW:HW + TDHW]                # kd=1  (input plane d)
                   + res[4:6, 2 * HW:2 * HW + TDHW])       # kd=2  (input plane d+1)
        if s != 0:
            # bracket[:, q] must become bracket[:, q + s]; every wrap artifact lands on a
            # position that the (dh, dw) validity mask zeroes out.
            bracket = pltpu.roll(bracket, (-s) % TDHW, axis=1)
            bracket = bracket * mask_ref[pidx:pidx + 1, :]
        acc = acc + bracket

    fw_hi = jax.nn.sigmoid(acc[0:1, :] + b_ref[0])         # (1, TD*HW) high-freq gate
    fw_lo = jax.nn.sigmoid(acc[1:2, :] + b_ref[1])         # (1, TD*HW) low-freq gate

    # ---- recombination: out = (x - low) * fw_hi * att[b, c] + low * fw_lo -------------
    for c in range(C):
        xc = x_ref[0, c:c + 1, :].astype(jnp.float32)
        lc = low_ref[0, c:c + 1, :].astype(jnp.float32)
        g_hi = fw_hi * att_ref[b, c]                        # SMEM scalar gate
        out_ref[0, c:c + 1, :] = ((xc - lc) * g_hi + lc * fw_lo).astype(out_ref.dtype)


# ----------------------------------------------------------------------------
# Plain-JAX glue: FFT ideal low-pass.  The two full-tensor fftshift/ifftshift passes
# of the torch code are folded into the static mask (they are exact inverses).
# ----------------------------------------------------------------------------
def _freq_lowpass(x, k):
    _, _, d, h, w = x.shape
    d0, d1 = round(d / 2 - d / (2 * k)), round(d / 2 + d / (2 * k))
    h0, h1 = round(h / 2 - h / (2 * k)), round(h / 2 + h / (2 * k))
    w0, w1 = round(w / 2 - w / (2 * k)), round(w / 2 + w / (2 * k))
    mask = np.zeros((1, 1, d, h, w), np.float32)
    mask[:, :, d0:d1, h0:h1, w0:w1] = 1.0
    mask = np.fft.ifftshift(mask, axes=(2, 3, 4))   # ifftshift(fftshift(F)*M) == F*ifftshift(M)
    x_fft = jnp.fft.fftn(x, axes=(2, 3, 4), norm='ortho')
    low = jnp.fft.ifftn(x_fft * jnp.asarray(mask), axes=(2, 3, 4), norm='ortho').real
    return low.astype(x.dtype)


# ----------------------------------------------------------------------------
# Generation-aware VMEM budget and D-tile choice.
# ----------------------------------------------------------------------------
def _vmem_limit_bytes():
    cap = 128 * 2 ** 20
    try:
        cap = int(pltpu.get_tpu_info().vmem_capacity_bytes)
    except Exception:
        pass
    # ~48 MiB on v7x (64 MiB VMEM / TC), ~96 MiB on v5e / v6e (128 MiB physical).
    return int(min(cap * 3 // 4, 112 * 2 ** 20))


def _working_set_bytes(C, td, HW, itemsize):
    tile = C * td * HW * itemsize
    nflat = (td + 2) * HW
    streams = 3 * 2 * tile                       # x, low, out (double-buffered)
    halos = 2 * 2 * C * HW * itemsize
    xext = 4 * C * nflat                         # f32 scratch
    masks = 2 * 9 * td * HW * 4                  # (9, TD*HW) mask table
    temps = 4 * (6 * nflat + 12 * td * HW)       # matmul result, brackets, acc, gates
    return streams + halos + xext + masks + temps


def _choose_d_tile(B, C, D, HW, itemsize, budget_bytes):
    cands = sorted({td for td in range(8, D + 1, 8) if D % td == 0} | {D})
    fitting = [td for td in cands if _working_set_bytes(C, td, HW, itemsize) <= budget_bytes]
    pool = fitting if fitting else [cands[0]]
    # Prefer an even total grid (v7x: two TensorCores share the parallel axes), then the
    # largest tile (amortizes the ~0.35 us per-step overhead, approaches HBM roofline).
    return max(pool, key=lambda td: ((B * (D // td)) % 2 == 0, td))


# ----------------------------------------------------------------------------
# Wrapper
# ----------------------------------------------------------------------------
def frequency_selection_3d(x, params, k_list=(2,), d_tile=None):
    assert len(k_list) == 1      # module default config (k_list=[2]): one low-pass stage
    B, C, D, H, W = x.shape
    HW = H * W
    HW_pad = -(-HW // 128) * 128                 # lane-dense plane stride
    C4 = max(C // 4, 1)
    itemsize = jnp.dtype(x.dtype).itemsize

    # ---- FFT ideal low-pass (plain JAX; no Pallas FFT primitive) -----------------------
    low = _freq_lowpass(x, k_list[0])

    # ---- channel attention hoisted out of the kernel (one batched matmul over B) -------
    wa1 = params['w_a1'].reshape(C4, C)
    wa2 = params['w_a2'].reshape(C, C4)
    gap = jnp.mean(x.astype(jnp.float32), axis=(2, 3, 4))                          # (B, C)
    h1 = jax.nn.relu(gap @ wa1.T + params['b_a1'].reshape(C4))                     # (B, C4)
    att = jax.nn.sigmoid(h1 @ wa2.T + params['b_a2'].reshape(C)).astype(jnp.float32)

    # ---- gate-conv weights regrouped for the per-(dh,dw) MXU matmul ---------------------
    # w_tab[(dh+1)*3+(dw+1), (dd+1)*2+gate, c] = weight_gate[0, c, dd+1, dh+1, dw+1]
    wg = jnp.stack([params['w_fw0'][0], params['w_fw1'][0]], axis=0)      # (2, C, 3, 3, 3)
    w_tab = jnp.transpose(wg, (3, 4, 2, 0, 1)).reshape(9, 6, C).astype(jnp.float32)
    b_tab = jnp.stack([params['b_fw0'].reshape(()),
                       params['b_fw1'].reshape(())]).astype(jnp.float32)           # (2,)

    # ---- tile selection (generation-aware VMEM budget) ----------------------------------
    vmem_limit = _vmem_limit_bytes()
    if d_tile is None:
        TD = _choose_d_tile(B, C, D, HW_pad, itemsize, budget_bytes=(vmem_limit * 7) // 10)
    else:
        TD = int(d_tile)
    if D % TD != 0 or not (TD % 8 == 0 or TD == D):
        raise ValueError(f"invalid d_tile={TD} for D={D}")
    NDT = D // TD
    TDHW = TD * HW_pad

    # ---- flat, lane-dense layout: (B, C, D*HW) (free reshape when HW % 128 == 0) --------
    x_r = x.reshape(B, C, D, HW)
    low_r = low.reshape(B, C, D, HW)
    if HW_pad != HW:
        pad = ((0, 0), (0, 0), (0, 0), (0, HW_pad - HW))
        x_r = jnp.pad(x_r, pad)
        low_r = jnp.pad(low_r, pad)
    x_flat = x_r.reshape(B, C, D * HW_pad)
    low_flat = low_r.reshape(B, C, D * HW_pad)

    # ---- precomputed (dh, dw) output-validity masks, tiled over the TD planes -----------
    mask_np = np.zeros((9, HW_pad), np.float32)
    hh = np.arange(H)[:, None]
    ww = np.arange(W)[None, :]
    for pidx, (dh, dw) in enumerate(_PAIRS):
        valid = ((hh + dh >= 0) & (hh + dh < H) & (ww + dw >= 0) & (ww + dw < W))
        mask_np[pidx, :HW] = valid.reshape(-1).astype(np.float32)
    mask_tab = jnp.asarray(np.tile(mask_np, (1, TD)))                         # (9, TD*HW)

    flat_spec = pl.BlockSpec((1, C, TDHW), lambda b, t: (b, 0, t))
    halo_lo_spec = pl.BlockSpec((1, C, HW_pad),
                                lambda b, t: (b, 0, jnp.maximum(t * TD - 1, 0)))
    halo_hi_spec = pl.BlockSpec((1, C, HW_pad),
                                lambda b, t: (b, 0, jnp.minimum((t + 1) * TD, D - 1)))
    smem_spec = pl.BlockSpec(memory_space=pltpu.MemorySpace.SMEM)
    w_spec = pl.BlockSpec((9, 6, C), lambda b, t: (0, 0, 0))
    mask_spec = pl.BlockSpec((9, TDHW), lambda b, t: (0, 0))

    out_flat = pl.pallas_call(
        functools.partial(_fs3d_kernel, W=W),
        out_shape=jax.ShapeDtypeStruct((B, C, D * HW_pad), x.dtype),
        grid=(B, NDT),
        in_specs=[flat_spec,        # x
                  flat_spec,        # low
                  halo_lo_spec,     # x plane at t*TD - 1 (clamped; zeroed in-kernel at t=0)
                  halo_hi_spec,     # x plane at t*TD + TD (clamped; zeroed at last tile)
                  smem_spec,        # attention gate (B, C)
                  smem_spec,        # gate-conv biases (2,)
                  w_spec,           # gate-conv weights (9, 6, C)
                  mask_spec],       # boundary masks (9, TD*HW)
        out_specs=flat_spec,
        scratch_shapes=[pltpu.VMEM((C, (TD + 2) * HW_pad), jnp.float32)],
        compiler_params=pltpu.CompilerParams(
            dimension_semantics=("parallel", "parallel"),
            vmem_limit_bytes=vmem_limit),
    )(x_flat, low_flat, x_flat, x_flat, att, b_tab, w_tab, mask_tab)

    out = out_flat.reshape(B, C, D, HW_pad)
    if HW_pad != HW:
        out = out[..., :HW]
    # TODO(synk): the torch module also appends freq_weight.mean() to 'freq_test11.txt'
    # (a file side effect) and computes an unused freq_weight_loss; both omitted.
    return out.reshape(B, C, D, H, W)


# ----------------------------------------------------------------------------
# Deterministic parameter initialization (mirrors the module's __init__ shapes)
# ----------------------------------------------------------------------------
def init_params(key, C):
    C4 = max(C // 4, 1)
    ks = jax.random.split(key, 8)
    fan_in = C * 27
    bound = math.sqrt(6.0 / fan_in)                  # kaiming_uniform, fan_in, relu
    ba = 1.0 / math.sqrt(C)
    bb = 1.0 / math.sqrt(C4)
    return {
        'w_fw0': jax.random.uniform(ks[0], (1, C, 3, 3, 3), jnp.float32, -bound, bound),
        'b_fw0': jax.random.uniform(ks[1], (1,), jnp.float32, 0.1, 0.2),
        'w_fw1': jax.random.uniform(ks[2], (1, C, 3, 3, 3), jnp.float32, -bound, bound),
        'b_fw1': jax.random.uniform(ks[3], (1,), jnp.float32, 0.1, 0.2),
        'w_a1': jax.random.uniform(ks[4], (C4, C, 1, 1, 1), jnp.float32, -ba, ba),
        'b_a1': jax.random.uniform(ks[5], (C4,), jnp.float32, -ba, ba),
        'w_a2': jax.random.uniform(ks[6], (C, C4, 1, 1, 1), jnp.float32, -bb, bb),
        'b_a2': jax.random.uniform(ks[7], (C,), jnp.float32, -bb, bb),
    }


# ----------------------------------------------------------------------------
# Pure-JAX reference (correctness check of the Pallas kernel)
# ----------------------------------------------------------------------------
def _reference(x, params, k_list=(2,)):
    B, C, D, H, W = x.shape
    C4 = max(C // 4, 1)
    low = _freq_lowpass(x, k_list[0])
    high = x - low

    def conv3(xa, wgt, bia):
        y = jax.lax.conv_general_dilated(
            xa, wgt, (1, 1, 1), 'SAME',
            dimension_numbers=('NCDHW', 'OIDHW', 'NCDHW'),
            precision=jax.lax.Precision.HIGHEST)
        return y + bia.reshape(1, -1, 1, 1, 1)

    fw_hi = jax.nn.sigmoid(conv3(x, params['w_fw0'], params['b_fw0']))   # (B,1,D,H,W)
    fw_lo = jax.nn.sigmoid(conv3(x, params['w_fw1'], params['b_fw1']))   # (B,1,D,H,W)

    gap = jnp.mean(x.astype(jnp.float32), axis=(2, 3, 4))                # (B, C)
    h1 = jax.nn.relu(gap @ params['w_a1'].reshape(C4, C).T + params['b_a1'].reshape(C4))
    att = jax.nn.sigmoid(h1 @ params['w_a2'].reshape(C, C4).T + params['b_a2'].reshape(C))
    att = att.reshape(B, C, 1, 1, 1)

    return high * (fw_hi * att) + low * fw_lo


if __name__ == "__main__":
    B, C, D, H, W = 2, 8, 16, 16, 16
    key = jax.random.PRNGKey(0)
    kx, kp = jax.random.split(key)
    x = jax.random.normal(kx, (B, C, D, H, W), jnp.float32)
    params = init_params(kp, C)

    ref = _reference(x, params)

    # d_tile=8 -> two D-tiles per batch element, exercising the halo handoff path.
    out = jax.block_until_ready(frequency_selection_3d(x, params, d_tile=8))
    np.testing.assert_allclose(np.asarray(out), np.asarray(ref), rtol=2e-3, atol=5e-3)

    # Auto tile selection (generation-aware VMEM budget).
    out_auto = jax.block_until_ready(frequency_selection_3d(x, params))
    np.testing.assert_allclose(np.asarray(out_auto), np.asarray(ref), rtol=2e-3, atol=5e-3)

    print("KERNEL_OK")
</pallas_src>

<mosaic_0001>
module attributes {stable_mosaic.version = 11 : i64} {
  func.func @_fs3d_kernel(%arg0: i32, %arg1: i32, %arg2: memref<1x8x2048xf32, #tpu.memory_space<vmem>>, %arg3: memref<1x8x2048xf32, #tpu.memory_space<vmem>>, %arg4: memref<1x8x256xf32, #tpu.memory_space<vmem>>, %arg5: memref<1x8x256xf32, #tpu.memory_space<vmem>>, %arg6: memref<2x8xf32, #tpu.memory_space<smem>>, %arg7: memref<2xf32, #tpu.memory_space<smem>>, %arg8: memref<9x6x8xf32, #tpu.memory_space<vmem>>, %arg9: memref<9x2048xf32, #tpu.memory_space<vmem>>, %arg10: memref<1x8x2048xf32, #tpu.memory_space<vmem>>, %arg11: memref<8x2560xf32, #tpu.memory_space<vmem>>) attributes {dimension_semantics = [#tpu.dimension_semantics<parallel>, #tpu.dimension_semantics<parallel>], iteration_bounds = array<i64: 2, 2>, scalar_prefetch = 0 : i64, scratch_operands = 1 : i64, tpu.core_type = #tpu.core_type<tc>, window_params = [{transform_indices = @transform_0, window_bounds = array<i64: 1, 8, 2048>}, {transform_indices = @transform_1, window_bounds = array<i64: 1, 8, 2048>}, {transform_indices = @transform_2, window_bounds = array<i64: 1, 8, 256>}, {transform_indices = @transform_3, window_bounds = array<i64: 1, 8, 256>}, {transform_indices = @transform_4, window_bounds = array<i64: 2, 8>}, {transform_indices = @transform_5, window_bounds = array<i64: 2>}, {pipeline_mode = #tpu.pipeline_mode<synchronous>, transform_indices = @transform_6, window_bounds = array<i64: 9, 6, 8>}, {pipeline_mode = #tpu.pipeline_mode<synchronous>, transform_indices = @transform_7, window_bounds = array<i64: 9, 2048>}, {transform_indices = @transform_8, window_bounds = array<i64: 1, 8, 2048>}]} {
    %c0_i32 = arith.constant 0 : i32
    %0 = arith.cmpi sgt, %arg1, %c0_i32 : i32
    %cst = arith.constant 1.000000e+00 : f32
    %cst_0 = arith.constant 0.000000e+00 : f32
    %1 = arith.select %0, %cst, %cst_0 : f32
    %c1_i32 = arith.constant 1 : i32
    %2 = arith.cmpi slt, %arg1, %c1_i32 : i32
    %cst_1 = arith.constant 1.000000e+00 : f32
    %cst_2 = arith.constant 0.000000e+00 : f32
    %3 = arith.select %2, %cst_1, %cst_2 : f32
    %c0 = arith.constant 0 : index
    %c0_3 = arith.constant 0 : index
    %c0_4 = arith.constant 0 : index
    %4 = vector.load %arg4[%c0, %c0_3, %c0_4] : memref<1x8x256xf32, #tpu.memory_space<vmem>>, vector<1x8x256xf32>
    %5 = vector.shape_cast %4 : vector<1x8x256xf32> to vector<8x256xf32>
    %6 = vector.broadcast %1 : f32 to vector<8x256xf32>
    %7 = arith.mulf %5, %6 : vector<8x256xf32>
    %c0_5 = arith.constant 0 : index
    %c0_6 = arith.constant 0 : index
    %8 = vector.load %arg11[%c0_5, %c0_6] : memref<8x2560xf32, #tpu.memory_space<vmem>>, vector<8x256xf32>
    tpu.vector_store %arg11[%c0_5, %c0_6], %7 {strides = array<i32>} : memref<8x2560xf32, #tpu.memory_space<vmem>>, vector<8x256xf32>,
    %c0_7 = arith.constant 0 : index
    %c0_8 = arith.constant 0 : index
    %c0_9 = arith.constant 0 : index
    %9 = vector.load %arg2[%c0_7, %c0_8, %c0_9] : memref<1x8x2048xf32, #tpu.memory_space<vmem>>, vector<1x8x2048xf32>
    %10 = vector.shape_cast %9 : vector<1x8x2048xf32> to vector<8x2048xf32>
    %c0_10 = arith.constant 0 : index
    %c256 = arith.constant 256 : index
    %11 = vector.load %arg11[%c0_10, %c256] : memref<8x2560xf32, #tpu.memory_space<vmem>>, vector<8x2048xf32>
    tpu.vector_store %arg11[%c0_10, %c256], %10 {strides = array<i32>} : memref<8x2560xf32, #tpu.memory_space<vmem>>, vector<8x2048xf32>,
    %c0_11 = arith.constant 0 : index
    %c0_12 = arith.constant 0 : index
    %c0_13 = arith.constant 0 : index
    %12 = vector.load %arg5[%c0_11, %c0_12, %c0_13] : memref<1x8x256xf32, #tpu.memory_space<vmem>>, vector<1x8x256xf32>
    %13 = vector.shape_cast %12 : vector<1x8x256xf32> to vector<8x256xf32>
    %14 = vector.broadcast %3 : f32 to vector<8x256xf32>
    %15 = arith.mulf %13, %14 : vector<8x256xf32>
    %c0_14 = arith.constant 0 : index
    %c2304 = arith.constant 2304 : index
    %16 = vector.load %arg11[%c0_14, %c2304] : memref<8x2560xf32, #tpu.memory_space<vmem>>, vector<8x256xf32>
    tpu.vector_store %arg11[%c0_14, %c2304], %15 {strides = array<i32>} : memref<8x2560xf32, #tpu.memory_space<vmem>>, vector<8x256xf32>,
    %c0_15 = arith.constant 0 : index
    %c0_16 = arith.constant 0 : index
    %17 = vector.load %arg11[%c0_15, %c0_16] : memref<8x2560xf32, #tpu.memory_space<vmem>>, vector<8x2560xf32>
    %cst_17 = arith.constant 0.000000e+00 : f32
    %18 = vector.broadcast %cst_17 : f32 to vector<2x2048xf32>
    %c0_18 = arith.constant 0 : index
    %c0_19 = arith.constant 0 : index
    %c0_20 = arith.constant 0 : index
    %19 = vector.load %arg8[%c0_18, %c0_19, %c0_20] : memref<9x6x8xf32, #tpu.memory_space<vmem>>, vector<1x6x8xf32>
    %20 = vector.shape_cast %19 : vector<1x6x8xf32> to vector<6x8xf32>
    %cst_21 = arith.constant dense<0.000000e+00> : vector<6x2560xf32>
    %21 = tpu.matmul %20, %17, %cst_21 {dimension_numbers = #tpu.dot_dimension_numbers<[1], [0], [0], [1], [0, 0, 1, 1], [], []>} : vector<6x8xf32>, vector<8x2560xf32>, vector<6x2560xf32> -> vector<6x2560xf32>
    %22 = vector.extract_strided_slice %21 {offsets = [0, 0], sizes = [2, 2048], strides = [1, 1]} : vector<6x2560xf32> to vector<2x2048xf32>
    %23 = vector.extract_strided_slice %21 {offsets = [2, 256], sizes = [2, 2048], strides = [1, 1]} : vector<6x2560xf32> to vector<2x2048xf32>
    %24 = arith.addf %22, %23 : vector<2x2048xf32>
    %25 = vector.extract_strided_slice %21 {offsets = [4, 512], sizes = [2, 2048], strides = [1, 1]} : vector<6x2560xf32> to vector<2x2048xf32>
    %26 = arith.addf %24, %25 : vector<2x2048xf32>
    %c17_i32 = arith.constant 17 : i32
    %27 = tpu.dynamic_rotate %26 by %c17_i32 dim 1 : vector<2x2048xf32>, i32 -> vector<2x2048xf32>
    %c0_22 = arith.constant 0 : index
    %c0_23 = arith.constant 0 : index
    %28 = vector.load %arg9[%c0_22, %c0_23] : memref<9x2048xf32, #tpu.memory_space<vmem>>, vector<1x2048xf32>
    %29 = vector.broadcast %28 : vector<1x2048xf32> to vector<2x2048xf32>
    %30 = arith.mulf %27, %29 : vector<2x2048xf32>
    %31 = arith.addf %18, %30 : vector<2x2048xf32>
    %c1 = arith.constant 1 : index
    %c0_24 = arith.constant 0 : index
    %c0_25 = arith.constant 0 : index
    %32 = vector.load %arg8[%c1, %c0_24, %c0_25] : memref<9x6x8xf32, #tpu.memory_space<vmem>>, vector<1x6x8xf32>
    %33 = vector.shape_cast %32 : vector<1x6x8xf32> to vector<6x8xf32>
    %cst_26 = arith.constant dense<0.000000e+00> : vector<6x2560xf32>
    %34 = tpu.matmul %33, %17, %cst_26 {dimension_numbers = #tpu.dot_dimension_numbers<[1], [0], [0], [1], [0, 0, 1, 1], [], []>} : vector<6x8xf32>, vector<8x2560xf32>, vector<6x2560xf32> -> vector<6x2560xf32>
    %35 = vector.extract_strided_slice %34 {offsets = [0, 0], sizes = [2, 2048], strides = [1, 1]} : vector<6x2560xf32> to vector<2x2048xf32>
    %36 = vector.extract_strided_slice %34 {offsets = [2, 256], sizes = [2, 2048], strides = [1, 1]} : vector<6x2560xf32> to vector<2x2048xf32>
    %37 = arith.addf %35, %36 : vector<2x2048xf32>
    %38 = vector.extract_strided_slice %34 {offsets = [4, 512], sizes = [2, 2048], strides = [1, 1]} : vector<6x2560xf32> to vector<2x2048xf32>
    %39 = arith.addf %37, %38 : vector<2x2048xf32>
    %c16_i32 = arith.constant 16 : i32
    %40 = tpu.dynamic_rotate %39 by %c16_i32 dim 1 : vector<2x2048xf32>, i32 -> vector<2x2048xf32>
    %c1_27 = arith.constant 1 : index
    %c0_28 = arith.constant 0 : index
    %41 = vector.load %arg9[%c1_27, %c0_28] : memref<9x2048xf32, #tpu.memory_space<vmem>>, vector<1x2048xf32>
    %42 = vector.broadcast %41 : vector<1x2048xf32> to vector<2x2048xf32>
    %43 = arith.mulf %40, %42 : vector<2x2048xf32>
    %44 = arith.addf %31, %43 : vector<2x2048xf32>
    %c2 = arith.constant 2 : index
    %c0_29 = arith.constant 0 : index
    %c0_30 = arith.constant 0 : index
    %45 = vector.load %arg8[%c2, %c0_29, %c0_30] : memref<9x6x8xf32, #tpu.memory_space<vmem>>, vector<1x6x8xf32>
    %46 = vector.shape_cast %45 : vector<1x6x8xf32> to vector<6x8xf32>
    %cst_31 = arith.constant dense<0.000000e+00> : vector<6x2560xf32>
    %47 = tpu.matmul %46, %17, %cst_31 {dimension_numbers = #tpu.dot_dimension_numbers<[1], [0], [0], [1], [0, 0, 1, 1], [], []>} : vector<6x8xf32>, vector<8x2560xf32>, vector<6x2560xf32> -> vector<6x2560xf32>
    %48 = vector.extract_strided_slice %47 {offsets = [0, 0], sizes = [2, 2048], strides = [1, 1]} : vector<6x2560xf32> to vector<2x2048xf32>
    %49 = vector.extract_strided_slice %47 {offsets = [2, 256], sizes = [2, 2048], strides = [1, 1]} : vector<6x2560xf32> to vector<2x2048xf32>
    %50 = arith.addf %48, %49 : vector<2x2048xf32>
    %51 = vector.extract_strided_slice %47 {offsets = [4, 512], sizes = [2, 2048], strides = [1, 1]} : vector<6x2560xf32> to vector<2x2048xf32>
    %52 = arith.addf %50, %51 : vector<2x2048xf32>
    %c15_i32 = arith.constant 15 : i32
    %53 = tpu.dynamic_rotate %52 by %c15_i32 dim 1 : vector<2x2048xf32>, i32 -> vector<2x2048xf32>
    %c2_32 = arith.constant 2 : index
    %c0_33 = arith.constant 0 : index
    %54 = vector.load %arg9[%c2_32, %c0_33] : memref<9x2048xf32, #tpu.memory_space<vmem>>, vector<1x2048xf32>
    %55 = vector.broadcast %54 : vector<1x2048xf32> to vector<2x2048xf32>
    %56 = arith.mulf %53, %55 : vector<2x2048xf32>
    %57 = arith.addf %44, %56 : vector<2x2048xf32>
    %c3 = arith.constant 3 : index
    %c0_34 = arith.constant 0 : index
    %c0_35 = arith.constant 0 : index
    %58 = vector.load %arg8[%c3, %c0_34, %c0_35] : memref<9x6x8xf32, #tpu.memory_space<vmem>>, vector<1x6x8xf32>
    %59 = vector.shape_cast %58 : vector<1x6x8xf32> to vector<6x8xf32>
    %cst_36 = arith.constant dense<0.000000e+00> : vector<6x2560xf32>
    %60 = tpu.matmul %59, %17, %cst_36 {dimension_numbers = #tpu.dot_dimension_numbers<[1], [0], [0], [1], [0, 0, 1, 1], [], []>} : vector<6x8xf32>, vector<8x2560xf32>, vector<6x2560xf32> -> vector<6x2560xf32>
    %61 = vector.extract_strided_slice %60 {offsets = [0, 0], sizes = [2, 2048], strides = [1, 1]} : vector<6x2560xf32> to vector<2x2048xf32>
    %62 = vector.extract_strided_slice %60 {offsets = [2, 256], sizes = [2, 2048], strides = [1, 1]} : vector<6x2560xf32> to vector<2x2048xf32>
    %63 = arith.addf %61, %62 : vector<2x2048xf32>
    %64 = vector.extract_strided_slice %60 {offsets = [4, 512], sizes = [2, 2048], strides = [1, 1]} : vector<6x2560xf32> to vector<2x2048xf32>
    %65 = arith.addf %63, %64 : vector<2x2048xf32>
    %c1_i32_37 = arith.constant 1 : i32
    %66 = tpu.dynamic_rotate %65 by %c1_i32_37 dim 1 : vector<2x2048xf32>, i32 -> vector<2x2048xf32>
    %c3_38 = arith.constant 3 : index
    %c0_39 = arith.constant 0 : index
    %67 = vector.load %arg9[%c3_38, %c0_39] : memref<9x2048xf32, #tpu.memory_space<vmem>>, vector<1x2048xf32>
    %68 = vector.broadcast %67 : vector<1x2048xf32> to vector<2x2048xf32>
    %69 = arith.mulf %66, %68 : vector<2x2048xf32>
    %70 = arith.addf %57, %69 : vector<2x2048xf32>
    %c4 = arith.constant 4 : index
    %c0_40 = arith.constant 0 : index
    %c0_41 = arith.constant 0 : index
    %71 = vector.load %arg8[%c4, %c0_40, %c0_41] : memref<9x6x8xf32, #tpu.memory_space<vmem>>, vector<1x6x8xf32>
    %72 = vector.shape_cast %71 : vector<1x6x8xf32> to vector<6x8xf32>
    %cst_42 = arith.constant dense<0.000000e+00> : vector<6x2560xf32>
    %73 = tpu.matmul %72, %17, %cst_42 {dimension_numbers = #tpu.dot_dimension_numbers<[1], [0], [0], [1], [0, 0, 1, 1], [], []>} : vector<6x8xf32>, vector<8x2560xf32>, vector<6x2560xf32> -> vector<6x2560xf32>
    %74 = vector.extract_strided_slice %73 {offsets = [0, 0], sizes = [2, 2048], strides = [1, 1]} : vector<6x2560xf32> to vector<2x2048xf32>
    %75 = vector.extract_strided_slice %73 {offsets = [2, 256], sizes = [2, 2048], strides = [1, 1]} : vector<6x2560xf32> to vector<2x2048xf32>
    %76 = arith.addf %74, %75 : vector<2x2048xf32>
    %77 = vector.extract_strided_slice %73 {offsets = [4, 512], sizes = [2, 2048], strides = [1, 1]} : vector<6x2560xf32> to vector<2x2048xf32>
    %78 = arith.addf %76, %77 : vector<2x2048xf32>
    %79 = arith.addf %70, %78 : vector<2x2048xf32>
    %c5 = arith.constant 5 : index
    %c0_43 = arith.constant 0 : index
    %c0_44 = arith.constant 0 : index
    %80 = vector.load %arg8[%c5, %c0_43, %c0_44] : memref<9x6x8xf32, #tpu.memory_space<vmem>>, vector<1x6x8xf32>
    %81 = vector.shape_cast %80 : vector<1x6x8xf32> to vector<6x8xf32>
    %cst_45 = arith.constant dense<0.000000e+00> : vector<6x2560xf32>
    %82 = tpu.matmul %81, %17, %cst_45 {dimension_numbers = #tpu.dot_dimension_numbers<[1], [0], [0], [1], [0, 0, 1, 1], [], []>} : vector<6x8xf32>, vector<8x2560xf32>, vector<6x2560xf32> -> vector<6x2560xf32>
    %83 = vector.extract_strided_slice %82 {offsets = [0, 0], sizes = [2, 2048], strides = [1, 1]} : vector<6x2560xf32> to vector<2x2048xf32>
    %84 = vector.extract_strided_slice %82 {offsets = [2, 256], sizes = [2, 2048], strides = [1, 1]} : vector<6x2560xf32> to vector<2x2048xf32>
    %85 = arith.addf %83, %84 : vector<2x2048xf32>
    %86 = vector.extract_strided_slice %82 {offsets = [4, 512], sizes = [2, 2048], strides = [1, 1]} : vector<6x2560xf32> to vector<2x2048xf32>
    %87 = arith.addf %85, %86 : vector<2x2048xf32>
    %c2047_i32 = arith.constant 2047 : i32
    %88 = tpu.dynamic_rotate %87 by %c2047_i32 dim 1 : vector<2x2048xf32>, i32 -> vector<2x2048xf32>
    %c5_46 = arith.constant 5 : index
    %c0_47 = arith.constant 0 : index
    %89 = vector.load %arg9[%c5_46, %c0_47] : memref<9x2048xf32, #tpu.memory_space<vmem>>, vector<1x2048xf32>
    %90 = vector.broadcast %89 : vector<1x2048xf32> to vector<2x2048xf32>
    %91 = arith.mulf %88, %90 : vector<2x2048xf32>
    %92 = arith.addf %79, %91 : vector<2x2048xf32>
    %c6 = arith.constant 6 : index
    %c0_48 = arith.constant 0 : index
    %c0_49 = arith.constant 0 : index
    %93 = vector.load %arg8[%c6, %c0_48, %c0_49] : memref<9x6x8xf32, #tpu.memory_space<vmem>>, vector<1x6x8xf32>
    %94 = vector.shape_cast %93 : vector<1x6x8xf32> to vector<6x8xf32>
    %cst_50 = arith.constant dense<0.000000e+00> : vector<6x2560xf32>
    %95 = tpu.matmul %94, %17, %cst_50 {dimension_numbers = #tpu.dot_dimension_numbers<[1], [0], [0], [1], [0, 0, 1, 1], [], []>} : vector<6x8xf32>, vector<8x2560xf32>, vector<6x2560xf32> -> vector<6x2560xf32>
    %96 = vector.extract_strided_slice %95 {offsets = [0, 0], sizes = [2, 2048], strides = [1, 1]} : vector<6x2560xf32> to vector<2x2048xf32>
    %97 = vector.extract_strided_slice %95 {offsets = [2, 256], sizes = [2, 2048], strides = [1, 1]} : vector<6x2560xf32> to vector<2x2048xf32>
    %98 = arith.addf %96, %97 : vector<2x2048xf32>
    %99 = vector.extract_strided_slice %95 {offsets = [4, 512], sizes = [2, 2048], strides = [1, 1]} : vector<6x2560xf32> to vector<2x2048xf32>
    %100 = arith.addf %98, %99 : vector<2x2048xf32>
    %c2033_i32 = arith.constant 2033 : i32
    %101 = tpu.dynamic_rotate %100 by %c2033_i32 dim 1 : vector<2x2048xf32>, i32 -> vector<2x2048xf32>
    %c6_51 = arith.constant 6 : index
    %c0_52 = arith.constant 0 : index
    %102 = vector.load %arg9[%c6_51, %c0_52] : memref<9x2048xf32, #tpu.memory_space<vmem>>, vector<1x2048xf32>
    %103 = vector.broadcast %102 : vector<1x2048xf32> to vector<2x2048xf32>
    %104 = arith.mulf %101, %103 : vector<2x2048xf32>
    %105 = arith.addf %92, %104 : vector<2x2048xf32>
    %c7 = arith.constant 7 : index
    %c0_53 = arith.constant 0 : index
    %c0_54 = arith.constant 0 : index
    %106 = vector.load %arg8[%c7, %c0_53, %c0_54] : memref<9x6x8xf32, #tpu.memory_space<vmem>>, vector<1x6x8xf32>
    %107 = vector.shape_cast %106 : vector<1x6x8xf32> to vector<6x8xf32>
    %cst_55 = arith.constant dense<0.000000e+00> : vector<6x2560xf32>
    %108 = tpu.matmul %107, %17, %cst_55 {dimension_numbers = #tpu.dot_dimension_numbers<[1], [0], [0], [1], [0, 0, 1, 1], [], []>} : vector<6x8xf32>, vector<8x2560xf32>, vector<6x2560xf32> -> vector<6x2560xf32>
    %109 = vector.extract_strided_slice %108 {offsets = [0, 0], sizes = [2, 2048], strides = [1, 1]} : vector<6x2560xf32> to vector<2x2048xf32>
    %110 = vector.extract_strided_slice %108 {offsets = [2, 256], sizes = [2, 2048], strides = [1, 1]} : vector<6x2560xf32> to vector<2x2048xf32>
    %111 = arith.addf %109, %110 : vector<2x2048xf32>
    %112 = vector.extract_strided_slice %108 {offsets = [4, 512], sizes = [2, 2048], strides = [1, 1]} : vector<6x2560xf32> to vector<2x2048xf32>
    %113 = arith.addf %111, %112 : vector<2x2048xf32>
    %c2032_i32 = arith.constant 2032 : i32
    %114 = tpu.dynamic_rotate %113 by %c2032_i32 dim 1 : vector<2x2048xf32>, i32 -> vector<2x2048xf32>
    %c7_56 = arith.constant 7 : index
    %c0_57 = arith.constant 0 : index
    %115 = vector.load %arg9[%c7_56, %c0_57] : memref<9x2048xf32, #tpu.memory_space<vmem>>, vector<1x2048xf32>
    %116 = vector.broadcast %115 : vector<1x2048xf32> to vector<2x2048xf32>
    %117 = arith.mulf %114, %116 : vector<2x2048xf32>
    %118 = arith.addf %105, %117 : vector<2x2048xf32>
    %c8 = arith.constant 8 : index
    %c0_58 = arith.constant 0 : index
    %c0_59 = arith.constant 0 : index
    %119 = vector.load %arg8[%c8, %c0_58, %c0_59] : memref<9x6x8xf32, #tpu.memory_space<vmem>>, vector<1x6x8xf32>
    %120 = vector.shape_cast %119 : vector<1x6x8xf32> to vector<6x8xf32>
    %cst_60 = arith.constant dense<0.000000e+00> : vector<6x2560xf32>
    %121 = tpu.matmul %120, %17, %cst_60 {dimension_numbers = #tpu.dot_dimension_numbers<[1], [0], [0], [1], [0, 0, 1, 1], [], []>} : vector<6x8xf32>, vector<8x2560xf32>, vector<6x2560xf32> -> vector<6x2560xf32>
    %122 = vector.extract_strided_slice %121 {offsets = [0, 0], sizes = [2, 2048], strides = [1, 1]} : vector<6x2560xf32> to vector<2x2048xf32>
    %123 = vector.extract_strided_slice %121 {offsets = [2, 256], sizes = [2, 2048], strides = [1, 1]} : vector<6x2560xf32> to vector<2x2048xf32>
    %124 = arith.addf %122, %123 : vector<2x2048xf32>
    %125 = vector.extract_strided_slice %121 {offsets = [4, 512], sizes = [2, 2048], strides = [1, 1]} : vector<6x2560xf32> to vector<2x2048xf32>
    %126 = arith.addf %124, %125 : vector<2x2048xf32>
    %c2031_i32 = arith.constant 2031 : i32
    %127 = tpu.dynamic_rotate %126 by %c2031_i32 dim 1 : vector<2x2048xf32>, i32 -> vector<2x2048xf32>
    %c8_61 = arith.constant 8 : index
    %c0_62 = arith.constant 0 : index
    %128 = vector.load %arg9[%c8_61, %c0_62] : memref<9x2048xf32, #tpu.memory_space<vmem>>, vector<1x2048xf32>
    %129 = vector.broadcast %128 : vector<1x2048xf32> to vector<2x2048xf32>
    %130 = arith.mulf %127, %129 : vector<2x2048xf32>
    %131 = arith.addf %118, %130 : vector<2x2048xf32>
    %132 = vector.extract_strided_slice %131 {offsets = [0, 0], sizes = [1, 2048], strides = [1, 1]} : vector<2x2048xf32> to vector<1x2048xf32>
    %c0_63 = arith.constant 0 : index
    %133 = memref.load %arg7[%c0_63] : memref<2xf32, #tpu.memory_space<smem>>
    %134 = vector.broadcast %133 : f32 to vector<1x2048xf32>
    %135 = arith.addf %132, %134 : vector<1x2048xf32>
    %136 = arith.negf %135 : vector<1x2048xf32>
    %137 = math.exp %136 : vector<1x2048xf32>
    %cst_64 = arith.constant 1.000000e+00 : f32
    %138 = vector.broadcast %cst_64 : f32 to vector<1x2048xf32>
    %139 = arith.addf %138, %137 : vector<1x2048xf32>
    %140 = arith.divf %138, %139 : vector<1x2048xf32>
    %141 = vector.extract_strided_slice %131 {offsets = [1, 0], sizes = [1, 2048], strides = [1, 1]} : vector<2x2048xf32> to vector<1x2048xf32>
    %c1_65 = arith.constant 1 : index
    %142 = memref.load %arg7[%c1_65] : memref<2xf32, #tpu.memory_space<smem>>
    %143 = vector.broadcast %142 : f32 to vector<1x2048xf32>
    %144 = arith.addf %141, %143 : vector<1x2048xf32>
    %145 = arith.negf %144 : vector<1x2048xf32>
    %146 = math.exp %145 : vector<1x2048xf32>
    %cst_66 = arith.constant 1.000000e+00 : f32
    %147 = vector.broadcast %cst_66 : f32 to vector<1x2048xf32>
    %148 = arith.addf %147, %146 : vector<1x2048xf32>
    %149 = arith.divf %147, %148 : vector<1x2048xf32>
    %c0_67 = arith.constant 0 : index
    %c0_68 = arith.constant 0 : index
    %c0_69 = arith.constant 0 : index
    %150 = vector.load %arg2[%c0_67, %c0_68, %c0_69] : memref<1x8x2048xf32, #tpu.memory_space<vmem>>, vector<1x1x2048xf32>
    %151 = vector.shape_cast %150 : vector<1x1x2048xf32> to vector<1x2048xf32>
    %c0_70 = arith.constant 0 : index
    %c0_71 = arith.constant 0 : index
    %c0_72 = arith.constant 0 : index
    %152 = vector.load %arg3[%c0_70, %c0_71, %c0_72] : memref<1x8x2048xf32, #tpu.memory_space<vmem>>, vector<1x1x2048xf32>
    %153 = vector.shape_cast %152 : vector<1x1x2048xf32> to vector<1x2048xf32>
    %154 = arith.index_cast %arg0 : i32 to index
    %c0_73 = arith.constant 0 : index
    %155 = memref.load %arg6[%154, %c0_73] : memref<2x8xf32, #tpu.memory_space<smem>>
    %156 = vector.broadcast %155 : f32 to vector<1x2048xf32>
    %157 = arith.mulf %140, %156 : vector<1x2048xf32>
    %158 = arith.subf %151, %153 : vector<1x2048xf32>
    %159 = arith.mulf %158, %157 : vector<1x2048xf32>
    %160 = arith.mulf %153, %149 : vector<1x2048xf32>
    %161 = arith.addf %159, %160 : vector<1x2048xf32>
    %c0_74 = arith.constant 0 : index
    %c0_75 = arith.constant 0 : index
    %c0_76 = arith.constant 0 : index
    %162 = vector.load %arg10[%c0_74, %c0_75, %c0_76] : memref<1x8x2048xf32, #tpu.memory_space<vmem>>, vector<1x1x2048xf32>
    %163 = vector.shape_cast %162 : vector<1x1x2048xf32> to vector<1x2048xf32>
    %164 = vector.shape_cast %161 : vector<1x2048xf32> to vector<1x1x2048xf32>
    tpu.vector_store %arg10[%c0_74, %c0_75, %c0_76], %164 {strides = array<i32>} : memref<1x8x2048xf32, #tpu.memory_space<vmem>>, vector<1x1x2048xf32>,
    %c0_77 = arith.constant 0 : index
    %c1_78 = arith.constant 1 : index
    %c0_79 = arith.constant 0 : index
    %165 = vector.load %arg2[%c0_77, %c1_78, %c0_79] : memref<1x8x2048xf32, #tpu.memory_space<vmem>>, vector<1x1x2048xf32>
    %166 = vector.shape_cast %165 : vector<1x1x2048xf32> to vector<1x2048xf32>
    %c0_80 = arith.constant 0 : index
    %c1_81 = arith.constant 1 : index
    %c0_82 = arith.constant 0 : index
    %167 = vector.load %arg3[%c0_80, %c1_81, %c0_82] : memref<1x8x2048xf32, #tpu.memory_space<vmem>>, vector<1x1x2048xf32>
    %168 = vector.shape_cast %167 : vector<1x1x2048xf32> to vector<1x2048xf32>
    %169 = arith.index_cast %arg0 : i32 to index
    %c1_83 = arith.constant 1 : index
    %170 = memref.load %arg6[%169, %c1_83] : memref<2x8xf32, #tpu.memory_space<smem>>
    %171 = vector.broadcast %170 : f32 to vector<1x2048xf32>
    %172 = arith.mulf %140, %171 : vector<1x2048xf32>
    %173 = arith.subf %166, %168 : vector<1x2048xf32>
    %174 = arith.mulf %173, %172 : vector<1x2048xf32>
    %175 = arith.mulf %168, %149 : vector<1x2048xf32>
    %176 = arith.addf %174, %175 : vector<1x2048xf32>
    %c0_84 = arith.constant 0 : index
    %c1_85 = arith.constant 1 : index
    %c0_86 = arith.constant 0 : index
    %177 = vector.load %arg10[%c0_84, %c1_85, %c0_86] : memref<1x8x2048xf32, #tpu.memory_space<vmem>>, vector<1x1x2048xf32>
    %178 = vector.shape_cast %177 : vector<1x1x2048xf32> to vector<1x2048xf32>
    %179 = vector.shape_cast %176 : vector<1x2048xf32> to vector<1x1x2048xf32>
    tpu.vector_store %arg10[%c0_84, %c1_85, %c0_86], %179 {strides = array<i32>} : memref<1x8x2048xf32, #tpu.memory_space<vmem>>, vector<1x1x2048xf32>,
    %c0_87 = arith.constant 0 : index
    %c2_88 = arith.constant 2 : index
    %c0_89 = arith.constant 0 : index
    %180 = vector.load %arg2[%c0_87, %c2_88, %c0_89] : memref<1x8x2048xf32, #tpu.memory_space<vmem>>, vector<1x1x2048xf32>
    %181 = vector.shape_cast %180 : vector<1x1x2048xf32> to vector<1x2048xf32>
    %c0_90 = arith.constant 0 : index
    %c2_91 = arith.constant 2 : index
    %c0_92 = arith.constant 0 : index
    %182 = vector.load %arg3[%c0_90, %c2_91, %c0_92] : memref<1x8x2048xf32, #tpu.memory_space<vmem>>, vector<1x1x2048xf32>
    %183 = vector.shape_cast %182 : vector<1x1x2048xf32> to vector<1x2048xf32>
    %184 = arith.index_cast %arg0 : i32 to index
    %c2_93 = arith.constant 2 : index
    %185 = memref.load %arg6[%184, %c2_93] : memref<2x8xf32, #tpu.memory_space<smem>>
    %186 = vector.broadcast %185 : f32 to vector<1x2048xf32>
    %187 = arith.mulf %140, %186 : vector<1x2048xf32>
    %188 = arith.subf %181, %183 : vector<1x2048xf32>
    %189 = arith.mulf %188, %187 : vector<1x2048xf32>
    %190 = arith.mulf %183, %149 : vector<1x2048xf32>
    %191 = arith.addf %189, %190 : vector<1x2048xf32>
    %c0_94 = arith.constant 0 : index
    %c2_95 = arith.constant 2 : index
    %c0_96 = arith.constant 0 : index
    %192 = vector.load %arg10[%c0_94, %c2_95, %c0_96] : memref<1x8x2048xf32, #tpu.memory_space<vmem>>, vector<1x1x2048xf32>
    %193 = vector.shape_cast %192 : vector<1x1x2048xf32> to vector<1x2048xf32>
    %194 = vector.shape_cast %191 : vector<1x2048xf32> to vector<1x1x2048xf32>
    tpu.vector_store %arg10[%c0_94, %c2_95, %c0_96], %194 {strides = array<i32>} : memref<1x8x2048xf32, #tpu.memory_space<vmem>>, vector<1x1x2048xf32>,
    %c0_97 = arith.constant 0 : index
    %c3_98 = arith.constant 3 : index
    %c0_99 = arith.constant 0 : index
    %195 = vector.load %arg2[%c0_97, %c3_98, %c0_99] : memref<1x8x2048xf32, #tpu.memory_space<vmem>>, vector<1x1x2048xf32>
    %196 = vector.shape_cast %195 : vector<1x1x2048xf32> to vector<1x2048xf32>
    %c0_100 = arith.constant 0 : index
    %c3_101 = arith.constant 3 : index
    %c0_102 = arith.constant 0 : index
    %197 = vector.load %arg3[%c0_100, %c3_101, %c0_102] : memref<1x8x2048xf32, #tpu.memory_space<vmem>>, vector<1x1x2048xf32>
    %198 = vector.shape_cast %197 : vector<1x1x2048xf32> to vector<1x2048xf32>
    %199 = arith.index_cast %arg0 : i32 to index
    %c3_103 = arith.constant 3 : index
    %200 = memref.load %arg6[%199, %c3_103] : memref<2x8xf32, #tpu.memory_space<smem>>
    %201 = vector.broadcast %200 : f32 to vector<1x2048xf32>
    %202 = arith.mulf %140, %201 : vector<1x2048xf32>
    %203 = arith.subf %196, %198 : vector<1x2048xf32>
    %204 = arith.mulf %203, %202 : vector<1x2048xf32>
    %205 = arith.mulf %198, %149 : vector<1x2048xf32>
    %206 = arith.addf %204, %205 : vector<1x2048xf32>
    %c0_104 = arith.constant 0 : index
    %c3_105 = arith.constant 3 : index
    %c0_106 = arith.constant 0 : index
    %207 = vector.load %arg10[%c0_104, %c3_105, %c0_106] : memref<1x8x2048xf32, #tpu.memory_space<vmem>>, vector<1x1x2048xf32>
    %208 = vector.shape_cast %207 : vector<1x1x2048xf32> to vector<1x2048xf32>
    %209 = vector.shape_cast %206 : vector<1x2048xf32> to vector<1x1x2048xf32>
    tpu.vector_store %arg10[%c0_104, %c3_105, %c0_106], %209 {strides = array<i32>} : memref<1x8x2048xf32, #tpu.memory_space<vmem>>, vector<1x1x2048xf32>,
    %c0_107 = arith.constant 0 : index
    %c4_108 = arith.constant 4 : index
    %c0_109 = arith.constant 0 : index
    %210 = vector.load %arg2[%c0_107, %c4_108, %c0_109] : memref<1x8x2048xf32, #tpu.memory_space<vmem>>, vector<1x1x2048xf32>
    %211 = vector.shape_cast %210 : vector<1x1x2048xf32> to vector<1x2048xf32>
    %c0_110 = arith.constant 0 : index
    %c4_111 = arith.constant 4 : index
    %c0_112 = arith.constant 0 : index
    %212 = vector.load %arg3[%c0_110, %c4_111, %c0_112] : memref<1x8x2048xf32, #tpu.memory_space<vmem>>, vector<1x1x2048xf32>
    %213 = vector.shape_cast %212 : vector<1x1x2048xf32> to vector<1x2048xf32>
    %214 = arith.index_cast %arg0 : i32 to index
    %c4_113 = arith.constant 4 : index
    %215 = memref.load %arg6[%214, %c4_113] : memref<2x8xf32, #tpu.memory_space<smem>>
    %216 = vector.broadcast %215 : f32 to vector<1x2048xf32>
    %217 = arith.mulf %140, %216 : vector<1x2048xf32>
    %218 = arith.subf %211, %213 : vector<1x2048xf32>
    %219 = arith.mulf %218, %217 : vector<1x2048xf32>
    %220 = arith.mulf %213, %149 : vector<1x2048xf32>
    %221 = arith.addf %219, %220 : vector<1x2048xf32>
    %c0_114 = arith.constant 0 : index
    %c4_115 = arith.constant 4 : index
    %c0_116 = arith.constant 0 : index
    %222 = vector.load %arg10[%c0_114, %c4_115, %c0_116] : memref<1x8x2048xf32, #tpu.memory_space<vmem>>, vector<1x1x2048xf32>
    %223 = vector.shape_cast %222 : vector<1x1x2048xf32> to vector<1x2048xf32>
    %224 = vector.shape_cast %221 : vector<1x2048xf32> to vector<1x1x2048xf32>
    tpu.vector_store %arg10[%c0_114, %c4_115, %c0_116], %224 {strides = array<i32>} : memref<1x8x2048xf32, #tpu.memory_space<vmem>>, vector<1x1x2048xf32>,
    %c0_117 = arith.constant 0 : index
    %c5_118 = arith.constant 5 : index
    %c0_119 = arith.constant 0 : index
    %225 = vector.load %arg2[%c0_117, %c5_118, %c0_119] : memref<1x8x2048xf32, #tpu.memory_space<vmem>>, vector<1x1x2048xf32>
    %226 = vector.shape_cast %225 : vector<1x1x2048xf32> to vector<1x2048xf32>
    %c0_120 = arith.constant 0 : index
    %c5_121 = arith.constant 5 : index
    %c0_122 = arith.constant 0 : index
    %227 = vector.load %arg3[%c0_120, %c5_121, %c0_122] : memref<1x8x2048xf32, #tpu.memory_space<vmem>>, vector<1x1x2048xf32>
    %228 = vector.shape_cast %227 : vector<1x1x2048xf32> to vector<1x2048xf32>
    %229 = arith.index_cast %arg0 : i32 to index
    %c5_123 = arith.constant 5 : index
    %230 = memref.load %arg6[%229, %c5_123] : memref<2x8xf32, #tpu.memory_space<smem>>
    %231 = vector.broadcast %230 : f32 to vector<1x2048xf32>
    %232 = arith.mulf %140, %231 : vector<1x2048xf32>
    %233 = arith.subf %226, %228 : vector<1x2048xf32>
    %234 = arith.mulf %233, %232 : vector<1x2048xf32>
    %235 = arith.mulf %228, %149 : vector<1x2048xf32>
    %236 = arith.addf %234, %235 : vector<1x2048xf32>
    %c0_124 = arith.constant 0 : index
    %c5_125 = arith.constant 5 : index
    %c0_126 = arith.constant 0 : index
    %237 = vector.load %arg10[%c0_124, %c5_125, %c0_126] : memref<1x8x2048xf32, #tpu.memory_space<vmem>>, vector<1x1x2048xf32>
    %238 = vector.shape_cast %237 : vector<1x1x2048xf32> to vector<1x2048xf32>
    %239 = vector.shape_cast %236 : vector<1x2048xf32> to vector<1x1x2048xf32>
    tpu.vector_store %arg10[%c0_124, %c5_125, %c0_126], %239 {strides = array<i32>} : memref<1x8x2048xf32, #tpu.memory_space<vmem>>, vector<1x1x2048xf32>,
    %c0_127 = arith.constant 0 : index
    %c6_128 = arith.constant 6 : index
    %c0_129 = arith.constant 0 : index
    %240 = vector.load %arg2[%c0_127, %c6_128, %c0_129] : memref<1x8x2048xf32, #tpu.memory_space<vmem>>, vector<1x1x2048xf32>
    %241 = vector.shape_cast %240 : vector<1x1x2048xf32> to vector<1x2048xf32>
    %c0_130 = arith.constant 0 : index
    %c6_131 = arith.constant 6 : index
    %c0_132 = arith.constant 0 : index
    %242 = vector.load %arg3[%c0_130, %c6_131, %c0_132] : memref<1x8x2048xf32, #tpu.memory_space<vmem>>, vector<1x1x2048xf32>
    %243 = vector.shape_cast %242 : vector<1x1x2048xf32> to vector<1x2048xf32>
    %244 = arith.index_cast %arg0 : i32 to index
    %c6_133 = arith.constant 6 : index
    %245 = memref.load %arg6[%244, %c6_133] : memref<2x8xf32, #tpu.memory_space<smem>>
    %246 = vector.broadcast %245 : f32 to vector<1x2048xf32>
    %247 = arith.mulf %140, %246 : vector<1x2048xf32>
    %248 = arith.subf %241, %243 : vector<1x2048xf32>
    %249 = arith.mulf %248, %247 : vector<1x2048xf32>
    %250 = arith.mulf %243, %149 : vector<1x2048xf32>
    %251 = arith.addf %249, %250 : vector<1x2048xf32>
    %c0_134 = arith.constant 0 : index
    %c6_135 = arith.constant 6 : index
    %c0_136 = arith.constant 0 : index
    %252 = vector.load %arg10[%c0_134, %c6_135, %c0_136] : memref<1x8x2048xf32, #tpu.memory_space<vmem>>, vector<1x1x2048xf32>
    %253 = vector.shape_cast %252 : vector<1x1x2048xf32> to vector<1x2048xf32>
    %254 = vector.shape_cast %251 : vector<1x2048xf32> to vector<1x1x2048xf32>
    tpu.vector_store %arg10[%c0_134, %c6_135, %c0_136], %254 {strides = array<i32>} : memref<1x8x2048xf32, #tpu.memory_space<vmem>>, vector<1x1x2048xf32>,
    %c0_137 = arith.constant 0 : index
    %c7_138 = arith.constant 7 : index
    %c0_139 = arith.constant 0 : index
    %255 = vector.load %arg2[%c0_137, %c7_138, %c0_139] : memref<1x8x2048xf32, #tpu.memory_space<vmem>>, vector<1x1x2048xf32>
    %256 = vector.shape_cast %255 : vector<1x1x2048xf32> to vector<1x2048xf32>
    %c0_140 = arith.constant 0 : index
    %c7_141 = arith.constant 7 : index
    %c0_142 = arith.constant 0 : index
    %257 = vector.load %arg3[%c0_140, %c7_141, %c0_142] : memref<1x8x2048xf32, #tpu.memory_space<vmem>>, vector<1x1x2048xf32>
    %258 = vector.shape_cast %257 : vector<1x1x2048xf32> to vector<1x2048xf32>
    %259 = arith.index_cast %arg0 : i32 to index
    %c7_143 = arith.constant 7 : index
    %260 = memref.load %arg6[%259, %c7_143] : memref<2x8xf32, #tpu.memory_space<smem>>
    %261 = vector.broadcast %260 : f32 to vector<1x2048xf32>
    %262 = arith.mulf %140, %261 : vector<1x2048xf32>
    %263 = arith.subf %256, %258 : vector<1x2048xf32>
    %264 = arith.mulf %263, %262 : vector<1x2048xf32>
    %265 = arith.mulf %258, %149 : vector<1x2048xf32>
    %266 = arith.addf %264, %265 : vector<1x2048xf32>
    %c0_144 = arith.constant 0 : index
    %c7_145 = arith.constant 7 : index
    %c0_146 = arith.constant 0 : index
    %267 = vector.load %arg10[%c0_144, %c7_145, %c0_146] : memref<1x8x2048xf32, #tpu.memory_space<vmem>>, vector<1x1x2048xf32>
    %268 = vector.shape_cast %267 : vector<1x1x2048xf32> to vector<1x2048xf32>
    %269 = vector.shape_cast %266 : vector<1x2048xf32> to vector<1x1x2048xf32>
    tpu.vector_store %arg10[%c0_144, %c7_145, %c0_146], %269 {strides = array<i32>} : memref<1x8x2048xf32, #tpu.memory_space<vmem>>, vector<1x1x2048xf32>,
    return
  }
  func.func @transform_0(%arg0: i32, %arg1: i32) -> (i32, i32, i32) {
    %c0_i32 = arith.constant 0 : i32
    %c0_i32_0 = arith.constant 0 : i32
    return %arg0, %c0_i32, %arg1 : i32, i32, i32
  }
  func.func @transform_1(%arg0: i32, %arg1: i32) -> (i32, i32, i32) {
    %c0_i32 = arith.constant 0 : i32
    %c0_i32_0 = arith.constant 0 : i32
    return %arg0, %c0_i32, %arg1 : i32, i32, i32
  }
  func.func @transform_2(%arg0: i32, %arg1: i32) -> (i32, i32, i32) {
    %c8_i32 = arith.constant 8 : i32
    %0 = arith.muli %arg1, %c8_i32 : i32
    %c1_i32 = arith.constant 1 : i32
    %1 = arith.subi %0, %c1_i32 : i32
    %c0_i32 = arith.constant 0 : i32
    %2 = arith.maxsi %1, %c0_i32 : i32
    %c0_i32_0 = arith.constant 0 : i32
    %c0_i32_1 = arith.constant 0 : i32
    return %arg0, %c0_i32_0, %2 : i32, i32, i32
  }
  func.func @transform_3(%arg0: i32, %arg1: i32) -> (i32, i32, i32) {
    %c1_i32 = arith.constant 1 : i32
    %0 = arith.addi %arg1, %c1_i32 : i32
    %c8_i32 = arith.constant 8 : i32
    %1 = arith.muli %0, %c8_i32 : i32
    %c15_i32 = arith.constant 15 : i32
    %2 = arith.minsi %1, %c15_i32 : i32
    %c0_i32 = arith.constant 0 : i32
    %c0_i32_0 = arith.constant 0 : i32
    return %arg0, %c0_i32, %2 : i32, i32, i32
  }
  func.func @transform_4(%arg0: i32, %arg1: i32) -> (i32, i32) {
    %c0_i32 = arith.constant 0 : i32
    %c0_i32_0 = arith.constant 0 : i32
    %c0_i32_1 = arith.constant 0 : i32
    return %c0_i32, %c0_i32_0 : i32, i32
  }
  func.func @transform_5(%arg0: i32, %arg1: i32) -> i32 {
    %c0_i32 = arith.constant 0 : i32
    %c0_i32_0 = arith.constant 0 : i32
    return %c0_i32 : i32
  }
  func.func @transform_6(%arg0: i32, %arg1: i32) -> (i32, i32, i32) {
    %c0_i32 = arith.constant 0 : i32
    %c0_i32_0 = arith.constant 0 : i32
    %c0_i32_1 = arith.constant 0 : i32
    %c0_i32_2 = arith.constant 0 : i32
    return %c0_i32, %c0_i32_0, %c0_i32_1 : i32, i32, i32
  }
  func.func @transform_7(%arg0: i32, %arg1: i32) -> (i32, i32) {
    %c0_i32 = arith.constant 0 : i32
    %c0_i32_0 = arith.constant 0 : i32
    %c0_i32_1 = arith.constant 0 : i32
    return %c0_i32, %c0_i32_0 : i32, i32
  }
  func.func @transform_8(%arg0: i32, %arg1: i32) -> (i32, i32, i32) {
    %c0_i32 = arith.constant 0 : i32
    %c0_i32_0 = arith.constant 0 : i32
    return %arg0, %c0_i32, %arg1 : i32, i32, i32
  }
}

</mosaic_0001>

<bundles_post_ra>
// kernel: tpu_custom_call.1
= control target key start
LH: loop header
LB: loop body
LE: loop exit
PB: predicated region body
PF: predicated region fallthrough
CT: control target
= control target key end

     0   :  { %s16254_s0 = inlined_call_operand.hbm [shape: f32[2,8,4096], index: 0, kind: input, shape index: {}]   ;;  %s16255_s1 = inlined_call_operand.hbm [shape: f32[2,8,4096], index: 1, kind: input, shape index: {}]   ;;  %s16256_s2 = inlined_call_operand.hbm [shape: f32[2,8,4096], index: 2, kind: input, shape index: {}]   ;;  %s16257_s3 = inlined_call_operand.hbm [shape: f32[2,8,4096], index: 3, kind: input, shape index: {}]   ;;  %s16258_s4 = inlined_call_operand.hbm [shape: f32[2,8], index: 4, kind: input, shape index: {}]   ;;  %s16259_s5 = inlined_call_operand.hbm [shape: f32[2], index: 5, kind: input, shape index: {}]   ;;  %s16260_s6 = inlined_call_operand.hbm [shape: f32[9,6,8], index: 6, kind: input, shape index: {}]   ;;  %s16261_s7 = inlined_call_operand.hbm [shape: f32[9,2048], index: 7, kind: input, shape index: {}]   ;;  %s16262_s8 = inlined_call_operand.hbm [shape: f32[2,8,4096], index: 8, kind: output, shape index: {}]  }
   0x1   :  { %16372 = sst [smem:[#allocation105_spill]] %s16254_s0 }
   0x2   :  { %16373 = sst [smem:[#allocation106_spill]] %s16255_s1 }
   0x3   :  { %16374 = sst [smem:[#allocation107_spill]] %s16256_s2 }
   0x4   :  { %16375 = sst [smem:[#allocation108_spill]] %s16257_s3 }
   0x5   :  { %16376 = sst [smem:[#allocation109_spill]] %s16258_s4 }
   0x6   :  { %16377 = sst [smem:[#allocation110_spill]] %s16260_s6 }
   0x7   :  { %16378 = sst [smem:[#allocation111_spill]] %s16262_s8 }
   0x8   :  { %13 = vsyncpa [#allocation4], 0 }
   0x9   :  { %15 = vsyncpa [#allocation4 + $0x1], 0 }
   0xa   :  { %16 = vsyncpa [#allocation8], 0 }
   0xb   :  { %18 = vsyncpa [#allocation8 + $0x1], 0 }
   0xc   :  { %19 = vsyncpa [#allocation11], 0 }
   0xd   :  { %21 = vsyncpa [#allocation11 + $0x1], 0 }
   0xe   :  { %22 = vsyncpa [#allocation6], 0 }
   0xf   :  { %23 = vsyncpa [#allocation14], 0 }
  0x10   :  { %24 = vsyncpa [#allocation17], 0 }
  0x11   :  { %25 = vsyncpa [#allocation5], 0 }
  0x12   :  { %27 = vsyncpa [#allocation5 + $0x1], 0  ;;  %s12386_s27 = smov 0   ;;  %s12388_s28 = smov 0  }
  0x13   :  { %s12390_s29 = smov 0   ;;  %s12392_s30 = smov 0  }
  0x14   :  { %s12394_s9 = smov 0   ;;  %s12396_s10 = smov 0  }
  0x15   :  { %s12398_s11 = smov 0   ;;  %s12400_s12 = smov 0  }
  0x16   :  { %s12402_s13 = smov 0   ;;  %s12404_s14 = smov 0  }
  0x17   :  { %s12406_s15 = smov 0   ;;  %s12408_s16 = smov 0  }
  0x18   :  { %s12410_s17 = smov 0   ;;  %s12412_s18 = smov 0  }
  0x19 LB: > { %16379 = sst [smem:[#allocation28_spill]] %s12265_s27  ;;  %s12319_s19 = smov [#allocation15]   ;;  %s12317_s18 = sphi %s12412_s18, %s33_s18   ;;  %s12313_s17 = sphi %s12410_s17, %s16824_s17   ;;  %s12309_s16 = sphi %s12408_s16, %s16833_s16   ;;  %s12305_s15 = sphi %s12406_s15, %s16823_s15   ;;  %s12301_s14 = sphi %s12404_s14, %s16832_s14   ;;  %s12297_s13 = sphi %s12402_s13, %s16831_s13   ;;  %s12293_s12 = sphi %s12400_s12, %s16830_s12   ;;  %s12289_s11 = sphi %s12398_s11, %s16821_s11   ;;  %s12285_s10 = sphi %s12396_s10, %s16829_s10   ;;  %s12281_s9 = sphi %s12394_s9, %s16828_s9   ;;  %s12277_s30 = sphi %s12392_s30, %s16827_s30   ;;  %s12273_s29 = sphi %s12390_s29, %s16826_s29   ;;  %s12269_s28 = sphi %s12388_s28, %s16820_s28   ;;  %s12265_s27 = sphi %s12386_s27, %s16819_s27  }
  0x1a   : > { %16380 = sst [smem:[#allocation29_spill]] %s12269_s28  ;;  %s320_s20 = sshll.u32 %s12319_s19, 4  ;;  %s321_s20 = int_to_ptr.vmem [resolvable:$true] %s320_s20 }
  0x1b   : > { %16381 = sst [smem:[#allocation30_spill]] %s12273_s29  ;;  %s12457_s21 = sadd.s32 4294967295, %s12317_s18  }
  0x1c   : > { %16382 = sst [smem:[#allocation31_spill]] %s12289_s11  ;;  %p11357_p0 = scmp.ge.s32.totalorder %s12317_s18, 1 }
  0x1d   : > { %16383 = sst [smem:[#allocation32_spill]] %s12293_s12  ;;  %p16267_p1 = scmp.eq.s32.totalorder %s12457_s21, 0 }
  0x1e   : > { %16384 = sst [smem:[#allocation33_spill]] %s12301_s14  ;;  %p290_p2 = scmp.lt.s32.totalorder %s12317_s18, 5 }
  0x1f   : > { %16385 = sst [smem:[#allocation34_spill]] %s12305_s15  ;;  %s16390_s6 = sld [smem:[#allocation110_spill]] }
  0x20   : > { %16386 = sst [smem:[#allocation35_spill]] %s12313_s17  ;;  %p12462_p3 = pnand %p11357_p0, %p290_p2 }
  0x22   : > { %s16387_s22 = scalar_select %p12462_p3, 1, 0 }
  0x23   : > { %p11644_p4 = pneg %p12462_p3 }
  0x24   : > { %16388 = sst [smem:[#allocation36_spill]] %s16387_s22 }
  0x25   : > { %p12470_p5 = pnand %p11644_p4, %p16267_p1  ;;  %s11941_s26 = scalar_lea.hbm %s16390_s6, 1152 }
  0x26   : > { %p11942_p6 = scmp.ne.s32.totalorder %s16390_s6, %s11941_s26  ;;  %p11948_p10 = scmp.lt.u32.totalorder %s11941_s26, %s16390_s6 }
  0x27   : > { %s16389_s23 = scalar_select %p12470_p5, 1, 0 }
  0x28   : > { %p12482_p7 = pneg %p12470_p5 }
  0x2a   : > { %p11944_p8 = pnand %p12482_p7, %p11942_p6 }
  0x2c   : > { %p11945_p9 = pneg %p11944_p8 }
  0x2e   : > { %p11950_p11 = pnand %p11948_p10, %p11945_p9 }
  0x30   : > { %11953 = shalt.err (!%p11950_p11)
}
  0x31   : > { %s11954_s24 = scalar_lea.vmem %s321_s20, 1152  ;;  %p11962_p2 = scmp.lt.s32.totalorder %s321_s20, %s321_s20 }
  0x32   : > { %p11955_p12 = scmp.ne.s32.totalorder %s321_s20, %s11954_s24  ;;  %p11963_p4 = scmp.lt.s32.totalorder %s11954_s24, %s11954_s24 }
  0x34   : > { %p11957_p13 = pnand %p11955_p12, %p12482_p7  ;;  %p11964_p1 = por %p11963_p4, %p11962_p2 }
  0x36   : > { %p11958_p0 = pneg %p11957_p13 }
  0x38   : > { %p11965_p3 = pnand %p11964_p1, %p11958_p0 }
  0x3a   : > { %11968 = shalt.err (!%p11965_p3)
}
  0x3b   : > { %s16270_s8 = smov 128   ;;  %s12321_s14 = smov 8  }
  0x3c   : > { %11653 = dma.hbm_to_vmem [thread:$0]  (!%p12470_p5), %s16390_s6, 1152, %s321_s20, [#allocation11], %s16270_s8, %s16270_s8, %s12321_s14  }
  0x3d   : > { %s11350_s26 = sadd.s32 4294967294, %s12317_s18   ;;  %s42_s19 = sadd.s32 1, %s12309_s16 }
  0x3e   : > { %s45_s24 = sadd.s32 1, %s12313_s17  ;;  %p43_p1 = scmp.ge.s32.totalorder %s42_s19, 2 }
  0x3f   : > { %s54_s3 = sadd.s32 1, %s12297_s13  ;;  %p61_p3 = scmp.ne.s32.totalorder %s12297_s13, %s12293_s12 }
  0x40   : > { %p16286_p6 = scmp.eq.s32.totalorder %s12317_s18, 0  ;;  %s16835_s19 = smov (%p43_p1, %s42_s19), 0 }
  0x41   : > { %s16837_s24 = smov (!%p43_p1, %s45_s24), %s12313_s17  ;;  %s50_s27 = ssub.s32 %s12309_s16, %s16835_s19 }
  0x42   : > { %p12514_p8 = por %p16286_p6, %p61_p3  ;;  %p47_p9 = scmp.ge.s32.totalorder %s16837_s24, 2 }
  0x43   : > { %p67_p10 = scmp.ne.s32.totalorder %s12293_s12, %s12289_s11  ;;  %p277_p11 = scmp.eq.s32.totalorder %s12457_s21, 3 }
  0x44   : > { %p283_p12 = scmp.eq.s32.totalorder %s11350_s26, 3  ;;  %s16839_s24 = smov (%p47_p9, %s16837_s24), 0 }
  0x45   : > { %16393 = sst [smem:[#allocation37_spill]] %s16839_s24  ;;  %p16394_p13 = scmp.eq.s32.totalorder %s12457_s21, 0 }
  0x46   : > { %p12529_p2 = por %p277_p11, %p61_p3  ;;  %s12535_s25 = ssub.s32 %s12313_s17, %s16839_s24 }
  0x47   : > { %p12525_p0 = por %p16394_p13, %p67_p10  ;;  %p12537_p4 = por %p283_p12, %p67_p10 }
  0x48   : > { %s16397_s22 = scalar_select %p12529_p2, 1, 0 }
  0x49   : > { %s16395_s14 = scalar_select %p12525_p0, 1, 0 }
  0x4a   : > { %16398 = sst [smem:[#allocation39_spill]] %s16397_s22  ;;  %s51_s26 = sor.u32 %s50_s27, %s12535_s25 }
  0x4b   : > { %16396 = sst [smem:[#allocation38_spill]] %s16395_s14  ;;  %p16285_p1 = scmp.lt.s32.totalorder %s12317_s18, 4 }
  0x4c   : > { %s16399_s8 = scalar_select %p12537_p4, 1, 0 }
  0x4d   : > { %p52_p9 = scmp.eq.s32.totalorder %s51_s26, 0  ;;  %s16278_s6 = sand.u32 1, %s12297_s13  }
  0x4e   : > { %16400 = sst [smem:[#allocation40_spill]] %s16399_s8  ;;  %s12546_s11 = sshll.u32 %s16278_s6, 7 }
  0x4f   : > { %s11364_s14 = sshll.u32 %s12309_s16, 4  ;;  %s12553_s22 = sshll.u32 %s12313_s17, 5 }
  0x50   : > { %s12550_s12 = scalar_select %p52_p9, %s12297_s13, %s54_s3  }
  0x51   : > { %p12559_p3 = pnand %p16285_p1, %p12514_p8  ;;  %s12564_s27 = sadd.s32 %s12553_s22, %s11364_s14 }
  0x52   : > { %16401 = sst [smem:[#allocation41_spill]] %s12550_s12  ;;  %s16291_s26 = sand.u32 1, %s12317_s18  }
  0x53   : > { %s16402_s24 = scalar_select %p12559_p3, 1, 0 }
  0x54   : > { %s16282_s6 = sshll.u32 %s12564_s27, 7  ;;  %s16403_s1 = sld [smem:[#allocation106_spill]] }
  0x55   : > { %s372_s20 = scalar_lea.vmem [#allocation7], %s12546_s11  ;;  %s12580_s14 = scalar_lea.sflag [#allocation8], %s16291_s26 }
  0x56   : > { %s382_s8 = sshll.u32 %s372_s20, 4  ;;  %p16292_p10 = pneg %p12559_p3  ;;  %s12576_s8 = int_to_ptr.vmem [resolvable:$true] %s382_s8 }
  0x5a   : > { %s12573_s17 = scalar_lea.hbm %s16403_s1, %s16282_s6  ;;  %s11974_s6 = scalar_lea.hbm %s16403_s1, 8192 }
  0x5b   : > { %s11969_s28 = scalar_lea.hbm %s12573_s17, 2048  ;;  %p11975_p13 = scmp.lt.u32.totalorder %s12573_s17, %s16403_s1 }
  0x5c   : > { %p11970_p8 = scmp.ne.s32.totalorder %s12573_s17, %s11969_s28  ;;  %p11976_p9 = scmp.lt.u32.totalorder %s11974_s6, %s11969_s28 }
  0x5d   : > { %p11978_p6 = scmp.lt.u32.totalorder %s11969_s28, %s12573_s17 }
  0x5e   : > { %p11972_p11 = pnand %p16292_p10, %p11970_p8  ;;  %p11977_p1 = por %p11976_p9, %p11975_p13 }
  0x60   : > { %p11973_p12 = pneg %p11972_p11  ;;  %p11979_p4 = por %p11978_p6, %p11977_p1 }
  0x62   : > { %p11980_p2 = pnand %p11979_p4, %p11973_p12 }
  0x64   : > { %11983 = shalt.err (!%p11980_p2)
}
  0x65   : > { %s11984_s20 = scalar_lea.vmem %s12576_s8, 2048  ;;  %s12322_s12 = smov [#allocation7]  }
  0x66   : > { %p11985_p8 = scmp.ne.s32.totalorder %s12576_s8, %s11984_s20  ;;  %s11989_s3 = sshll.u32 %s12322_s12, 4  ;;  %s11990_s3 = int_to_ptr.vmem [resolvable:$false] %s11989_s3 }
  0x67   : > { %s11991_s2 = scalar_lea.vmem %s11990_s3, 4096  ;;  %p11992_p5 = scmp.lt.s32.totalorder %s12576_s8, %s11990_s3 }
  0x68   : > { %p11987_p11 = pnand %p11985_p8, %p16292_p10  ;;  %p11993_p13 = scmp.lt.s32.totalorder %s11991_s2, %s11984_s20 }
  0x6a   : > { %p11988_p0 = pneg %p11987_p11  ;;  %p11994_p9 = por %p11993_p13, %p11992_p5 }
  0x6c   : > { %p11995_p6 = pnand %p11994_p9, %p11988_p0 }
  0x6e   : > { %11998 = shalt.err (!%p11995_p6)
}
  0x6f   : > { %11663 = dma.hbm_to_vmem [thread:$0]  (!%p12559_p3), %s12573_s17, 2048, %s12576_s8, %s12580_s14  }
  0x70   : > { %s16404_s4 = sld [smem:[#allocation109_spill]] }
  0x76   : > { %s11999_s29 = scalar_lea.hbm %s16404_s4, 32 }
  0x77   : > { %p12000_p2 = scmp.ne.s32.totalorder %s16404_s4, %s11999_s29  ;;  %p12006_p0 = scmp.lt.u32.totalorder %s11999_s29, %s16404_s4 }
  0x79   : > { %p12002_p4 = pnand %p12000_p2, %p12482_p7 }
  0x7b   : > { %p12003_p5 = pneg %p12002_p4 }
  0x7d   : > { %p12008_p1 = pnand %p12006_p0, %p12003_p5 }
  0x7f   : > { %12011 = shalt.err (!%p12008_p1)
}
  0x80   : > { %s12323_s2 = smov [#allocation12]   ;;  %p16405_p12 = scmp.ne.s32.totalorder %s16389_s23, 0 }
  0x81   : > { %s12012_s28 = scalar_lea.hbm %s16259_s5, 16 }
  0x82   : > { %11647 = dma.hbm_to_smem (!%p16405_p12), %s16404_s4, 32, %s12323_s2, [#allocation6]  }
  0x83   : > { %p12013_p8 = scmp.ne.s32.totalorder %s16259_s5, %s12012_s28  ;;  %p12019_p9 = scmp.lt.u32.totalorder %s12012_s28, %s16259_s5 }
  0x85   : > { %p12015_p11 = pnand %p12013_p8, %p12482_p7 }
  0x87   : > { %p12016_p13 = pneg %p12015_p11 }
  0x89   : > { %p12021_p6 = pnand %p12019_p9, %p12016_p13 }
  0x8b   : > { %12024 = shalt.err (!%p12021_p6)
}
  0x8c   : > { %s12324_s3 = smov [#allocation13]   ;;  %s12325_s8 = smov [#allocation16]  }
  0x8d   : > { %11650 = dma.hbm_to_smem (!%p16405_p12), %s16259_s5, 16, %s12324_s3, [#allocation14]  }
  0x8e   : > { %s333_s1 = sshll.u32 %s12325_s8, 4  ;;  %s12025_s12 = scalar_lea.hbm %s16261_s7, 4096  ;;  %s334_s1 = int_to_ptr.vmem [resolvable:$true] %s333_s1 }
  0x8f   : > { %p12026_p2 = scmp.ne.s32.totalorder %s16261_s7, %s12025_s12  ;;  %p12032_p0 = scmp.lt.u32.totalorder %s12025_s12, %s16261_s7 }
  0x91   : > { %p12028_p4 = pnand %p12026_p2, %p12482_p7 }
  0x93   : > { %p12029_p5 = pneg %p12028_p4 }
  0x95   : > { %p12034_p1 = pnand %p12032_p0, %p12029_p5 }
  0x97   : > { %12037 = shalt.err (!%p12034_p1)
}
  0x98   : > { %s12038_s3 = scalar_lea.vmem %s334_s1, 4096  ;;  %p12046_p9 = scmp.lt.s32.totalorder %s334_s1, %s334_s1 }
  0x99   : > { %p12039_p8 = scmp.ne.s32.totalorder %s334_s1, %s12038_s3  ;;  %p12047_p6 = scmp.lt.s32.totalorder %s12038_s3, %s12038_s3 }
  0x9b   : > { %p12041_p11 = pnand %p12039_p8, %p12482_p7  ;;  %p12048_p10 = por %p12047_p6, %p12046_p9 }
  0x9d   : > { %p12042_p13 = pneg %p12041_p11 }
  0x9f   : > { %p12049_p3 = pnand %p12048_p10, %p12042_p13 }
  0xa1   : > { %12052 = shalt.err (!%p12049_p3)
}
  0xa2   : > { %s12326_s4 = smov 2048   ;;  %s16406_s2 = smov 128  }
  0xa3   : > { %11656 = dma.hbm_to_vmem [thread:$0]  (!%p16405_p12), %s16261_s7, 4096, %s334_s1, [#allocation17], %s12326_s4, %s12326_s4, %s16406_s2  }
  0xa4   : > { %s16407_s15 = sshll.u32 %s12564_s27, 7  ;;  %s16408_s0 = sld [smem:[#allocation105_spill]] }
  0xa5   : > { %s351_s23 = scalar_lea.vmem [#allocation3], %s12546_s11  ;;  %s16409_s28 = sand.u32 1, %s12297_s13  }
  0xa6   : > { %s361_s29 = sshll.u32 %s351_s23, 4  ;;  %s348_s20 = scalar_lea.sflag [#allocation4], %s16409_s28  ;;  %s362_s29 = int_to_ptr.vmem [resolvable:$true] %s361_s29 }
  0xa7   : > { %p16410_p3 = scmp.ne.s32.totalorder %s16402_s24, 0 }
  0xa9   : > { %p16411_p10 = pneg %p16410_p3 }
  0xaa   : > { %s12664_s12 = scalar_lea.hbm %s16408_s0, %s16407_s15  ;;  %s12058_s4 = scalar_lea.hbm %s16408_s0, 8192 }
  0xab   : > { %s12053_s3 = scalar_lea.hbm %s12664_s12, 2048  ;;  %p12059_p4 = scmp.lt.u32.totalorder %s12664_s12, %s16408_s0 }
  0xac   : > { %p12054_p7 = scmp.ne.s32.totalorder %s12664_s12, %s12053_s3  ;;  %p12060_p5 = scmp.lt.u32.totalorder %s12058_s4, %s12053_s3 }
  0xad   : > { %p12062_p1 = scmp.lt.u32.totalorder %s12053_s3, %s12664_s12 }
  0xae   : > { %p12056_p12 = pnand %p12054_p7, %p16411_p10  ;;  %p12061_p0 = por %p12060_p5, %p12059_p4 }
  0xb0   : > { %p12057_p2 = pneg %p12056_p12  ;;  %p12063_p8 = por %p12062_p1, %p12061_p0 }
  0xb2   : > { %p12064_p11 = pnand %p12063_p8, %p12057_p2 }
  0xb4   : > { %12067 = shalt.err (!%p12064_p11)
}
  0xb5   : > { %s12068_s11 = scalar_lea.vmem %s362_s29, 2048  ;;  %p16412_p9 = pmov %p16411_p10 }
  0xb6   : > { %p12069_p13 = scmp.ne.s32.totalorder %s362_s29, %s12068_s11  ;;  %s12327_s8 = smov [#allocation3]  }
  0xb7   : > { %s12073_s15 = sshll.u32 %s12327_s8, 4  ;;  %s12074_s15 = int_to_ptr.vmem [resolvable:$false] %s12073_s15 }
  0xb8   : > { %p12071_p6 = pnand %p12069_p13, %p16412_p9  ;;  %s12075_s6 = scalar_lea.vmem %s12074_s15, 4096 }
  0xb9   : > { %p12076_p10 = scmp.lt.s32.totalorder %s362_s29, %s12074_s15  ;;  %p12077_p12 = scmp.lt.s32.totalorder %s12075_s6, %s12068_s11 }
  0xba   : > { %p12072_p7 = pneg %p12071_p6 }
  0xbb   : > { %p12078_p4 = por %p12077_p12, %p12076_p10 }
  0xbd   : > { %p12079_p5 = pnand %p12078_p4, %p12072_p7 }
  0xbf   : > { %12082 = shalt.err (!%p12079_p5)
}
  0xc0   : > { %11660 = dma.hbm_to_vmem [thread:$0]  (!%p16410_p3), %s12664_s12, 2048, %s362_s29, %s348_s20  }
  0xc1   : > { %s11351_s26 = sshll.u32 %s12309_s16, 3  ;;  %s11353_s28 = sshll.u32 %s16835_s19, 3 }
  0xc2   : > { %s11352_s23 = sadd.s32 4294967295, %s11351_s26  ;;  %s11354_s24 = sadd.s32 4294967295, %s11353_s28 }
  0xc3   : > { %p107_p2 = scmp.gt.s32.totalorder %s11352_s23, 0  ;;  %p111_p0 = scmp.gt.s32.totalorder %s11354_s24, 0 }
  0xc4   : > { %s118_s3 = sadd.s32 1, %s12285_s10  ;;  %p125_p1 = scmp.ne.s32.totalorder %s12285_s10, %s12281_s9 }
  0xc5   : > { %s16841_s23 = smov (!%p107_p2, %s11352_s23), 0  ;;  %s16843_s24 = smov (!%p111_p0, %s11354_s24), 0 }
  0xc6   : > { %p131_p8 = scmp.ne.s32.totalorder %s12281_s9, %s12277_s30  ;;  %s114_s27 = ssub.s32 %s16841_s23, %s16843_s24 }
  0xc7   : > { %s391_s1 = sand.u32 1, %s12285_s10   ;;  %s115_s12 = sor.u32 %s114_s27, %s12535_s25 }
  0xc8   : > { %p16413_p3 = scmp.eq.s32.totalorder %s12317_s18, 0  ;;  %p116_p13 = scmp.eq.s32.totalorder %s115_s12, 0 }
  0xc9   : > { %p16414_p9 = scmp.eq.s32.totalorder %s12457_s21, 0  ;;  %s11371_s20 = sshll.u32 %s391_s1, 4 }
  0xca   : > { %p127_p11 = por %p125_p1, %p16413_p3  ;;  %s11374_s4 = sshll.u32 %s16841_s23, 1 }
  0xcb   : > { %p12705_p6 = por %p131_p8, %p16414_p9  ;;  %s403_s17 = sadd.s32 %s11374_s4, %s12553_s22 }
  0xcc   : > { %s12710_s2 = scalar_select %p116_p13, %s12285_s10, %s118_s3  }
  0xcd   : > { %s11376_s11 = sshll.u32 %s403_s17, 7  ;;  %s393_s8 = scalar_lea.vmem [#allocation9], %s11371_s20 }
  0xce   : > { %s407_s30 = sshll.u32 %s393_s8, 4  ;;  %s16416_s24 = sld [smem:[#allocation107_spill]]  ;;  %s12718_s30 = int_to_ptr.vmem [resolvable:$true] %s407_s30 }
  0xcf   : > { %p16417_p7 = scmp.lt.s32.totalorder %s12317_s18, 4 }
  0xd1   : > { %p12722_p10 = pnand %p16417_p7, %p127_p11 }
  0xd3   : > { %p12085_p4 = pneg %p12722_p10 }
  0xd4   : > { %s12716_s27 = scalar_lea.hbm %s16416_s24, %s11376_s11  ;;  %s12088_s20 = scalar_lea.hbm %s16416_s24, 8192 }
  0xd5   : > { %s12083_s3 = scalar_lea.hbm %s12716_s27, 256  ;;  %p12089_p0 = scmp.lt.u32.totalorder %s12716_s27, %s16416_s24 }
  0xd6   : > { %p12084_p12 = scmp.ne.s32.totalorder %s12716_s27, %s12083_s3  ;;  %p12090_p1 = scmp.lt.u32.totalorder %s12088_s20, %s12083_s3 }
  0xd7   : > { %p12092_p3 = scmp.lt.u32.totalorder %s12083_s3, %s12716_s27 }
  0xd8   : > { %p12086_p5 = pnand %p12085_p4, %p12084_p12  ;;  %p12091_p8 = por %p12090_p1, %p12089_p0 }
  0xda   : > { %p12087_p2 = pneg %p12086_p5  ;;  %p12093_p11 = por %p12092_p3, %p12091_p8 }
  0xdc   : > { %p12094_p13 = pnand %p12093_p11, %p12087_p2 }
  0xde   : > { %12097 = shalt.err (!%p12094_p13)
}
  0xdf   : > { %s12098_s11 = scalar_lea.vmem %s12718_s30, 256  ;;  %s12328_s8 = smov [#allocation9]  }
  0xe0   : > { %p12099_p9 = scmp.ne.s32.totalorder %s12718_s30, %s12098_s11  ;;  %s12103_s15 = sshll.u32 %s12328_s8, 4  ;;  %s12104_s15 = int_to_ptr.vmem [resolvable:$false] %s12103_s15 }
  0xe1   : > { %s12105_s6 = scalar_lea.vmem %s12104_s15, 512  ;;  %p12106_p5 = scmp.lt.s32.totalorder %s12718_s30, %s12104_s15 }
  0xe2   : > { %p12101_p7 = pnand %p12099_p9, %p12085_p4  ;;  %p12107_p0 = scmp.lt.s32.totalorder %s12105_s6, %s12098_s11 }
  0xe4   : > { %p12102_p12 = pneg %p12101_p7  ;;  %p12108_p1 = por %p12107_p0, %p12106_p5 }
  0xe6   : > { %p12109_p8 = pnand %p12108_p1, %p12102_p12 }
  0xe8   : > { %12112 = shalt.err (!%p12109_p8)
}
  0xe9   : > { %s16419_s3 = sld [smem:[#allocation30_spill]]  ;;  %s16420_s1 = sld [smem:[#allocation29_spill]] }
  0xea   : > { %s16421_s12 = sld [smem:[#allocation28_spill]]  ;;  %s11613_s20 = sadd.s32 8, %s11351_s26 }
  0xeb   : > { %11666 = dma.hbm_to_vmem [thread:$0]  (!%p12722_p10), %s12716_s27, 256, %s12718_s30, %s12580_s14  }
  0xec   : > { %s11615_s4 = sadd.s32 8, %s11353_s28  ;;  %p143_p4 = scmp.lt.s32.totalorder %s11613_s20, 15 }
  0xed   : > { %p147_p2 = scmp.lt.s32.totalorder %s11615_s4, 15  ;;  %p16422_p11 = scmp.eq.s32.totalorder %s12317_s18, 0 }
  0xee   : > { %s16845_s20 = smov (!%p143_p4, %s11613_s20), 15  ;;  %p16424_p9 = scmp.eq.s32.totalorder %s12457_s21, 0 }
  0xef   : > { %s154_s23 = sadd.s32 1, %s16419_s3  ;;  %p161_p3 = scmp.ne.s32.totalorder %s16419_s3, %s16420_s1 }
  0xf0   : > { %s16847_s4 = smov (!%p147_p2, %s11615_s4), 15  ;;  %p167_p10 = scmp.ne.s32.totalorder %s16420_s1, %s16421_s12 }
  0xf1   : > { %p12761_p13 = por %p161_p3, %p16422_p11  ;;  %s150_s14 = ssub.s32 %s16845_s20, %s16847_s4 }
  0xf2   : > { %s416_s26 = sand.u32 1, %s16419_s3   ;;  %s151_s28 = sor.u32 %s150_s14, %s12535_s25 }
  0xf3   : > { %p12771_p7 = por %p167_p10, %p16424_p9  ;;  %p152_p12 = scmp.eq.s32.totalorder %s151_s28, 0 }
  0xf4   : > { %s11377_s27 = sshll.u32 %s416_s26, 4  ;;  %s11379_s11 = sshll.u32 %s16845_s20, 1 }
  0xf5   : > { %s16425_s30 = scalar_select %p12771_p7, 1, 0 }
  0xf6   : > { %s16849_s3 = smov (!%p152_p12, %s16419_s3), %s154_s23  ;;  %s428_s8 = sadd.s32 %s11379_s11, %s12553_s22 }
  0xf7   : > { %s418_s15 = scalar_lea.vmem [#allocation10], %s11377_s27  ;;  %s11381_s0 = sshll.u32 %s428_s8, 7 }
  0xf8   : > { %s432_s6 = sshll.u32 %s418_s15, 4  ;;  %s16426_s4 = sld [smem:[#allocation108_spill]]  ;;  %s12779_s6 = int_to_ptr.vmem [resolvable:$true] %s432_s6 }
  0xf9   : > { %p16427_p5 = scmp.lt.s32.totalorder %s12317_s18, 4  ;;  %s16429_s22 = sand.u32 1, %s12317_s18  }
  0xfa   : > { %s415_s23 = scalar_lea.sflag [#allocation11], %s16429_s22 }
  0xfb   : > { %p12790_p0 = pnand %p16427_p5, %p12761_p13 }
  0xfd   : > { %p12115_p8 = pneg %p12790_p0 }
  0xfe   : > { %s12784_s25 = scalar_lea.hbm %s16426_s4, %s11381_s0  ;;  %s12118_s26 = scalar_lea.hbm %s16426_s4, 8192 }
  0xff   : > { %s12113_s14 = scalar_lea.hbm %s12784_s25, 256  ;;  %p12119_p3 = scmp.lt.u32.totalorder %s12784_s25, %s16426_s4 }
 0x100   : > { %p12114_p1 = scmp.ne.s32.totalorder %s12784_s25, %s12113_s14  ;;  %p12120_p11 = scmp.lt.u32.totalorder %s12118_s26, %s12113_s14 }
 0x101   : > { %p12122_p10 = scmp.lt.u32.totalorder %s12113_s14, %s12784_s25 }
 0x102   : > { %p12116_p4 = pnand %p12115_p8, %p12114_p1  ;;  %p12121_p13 = por %p12120_p11, %p12119_p3 }
 0x104   : > { %p12117_p2 = pneg %p12116_p4  ;;  %p12123_p9 = por %p12122_p10, %p12121_p13 }
 0x106   : > { %p12124_p12 = pnand %p12123_p9, %p12117_p2 }
 0x108   : > { %12127 = shalt.err (!%p12124_p12)
}
 0x109   : > { %s12128_s11 = scalar_lea.vmem %s12779_s6, 256  ;;  %s12329_s8 = smov [#allocation10]  }
 0x10a   : > { %p12129_p5 = scmp.ne.s32.totalorder %s12779_s6, %s12128_s11  ;;  %s12133_s15 = sshll.u32 %s12329_s8, 4  ;;  %s12134_s15 = int_to_ptr.vmem [resolvable:$false] %s12133_s15 }
 0x10b   : > { %s12135_s1 = scalar_lea.vmem %s12134_s15, 512  ;;  %p12136_p7 = scmp.lt.s32.totalorder %s12779_s6, %s12134_s15 }
 0x10c   : > { %p12131_p1 = pnand %p12129_p5, %p12115_p8  ;;  %p12137_p3 = scmp.lt.s32.totalorder %s12135_s1, %s12128_s11 }
 0x10e   : > { %p12132_p4 = pneg %p12131_p1  ;;  %p12138_p11 = por %p12137_p3, %p12136_p7 }
 0x110   : > { %p12139_p13 = pnand %p12138_p11, %p12132_p4 }
 0x112   : > { %12142 = shalt.err (!%p12139_p13)
}
 0x113   : > { %11669 = dma.hbm_to_vmem [thread:$0]  (!%p12790_p0), %s12784_s25, 256, %s12779_s6, %s415_s23  }
 0x114   : > { %s16430_s12 = sld [smem:[#allocation36_spill]] }
 0x11a   : > { %p16431_p2 = scmp.ne.s32.totalorder %s16430_s12, 0 }
 0x11c   : > { %441 = sbr.rel (%p16431_p2) target bundleno = 1126 (0x466), region = 52 }
 0x123   : > { %s16432_s22 = sld [smem:[#allocation32_spill]]  ;;  %s16433_s14 = sld [smem:[#allocation38_spill]] }
 0x129   : > { %s12824_s0 = sand.u32 1, %s16432_s22   ;;  %p16434_p7 = scmp.ne.s32.totalorder %s16433_s14, 0 }
 0x12a   : > { %s12827_s17 = sshll.u32 %s12824_s0, 7  ;;  %s444_s26 = scalar_lea.sflag [#allocation4], %s12824_s0 }
 0x12b   : > { %s12831_s28 = scalar_lea.vmem [#allocation3], %s12827_s17 }
 0x12c   : > { %12228 = dma.done.wait (%p16434_p7), %s444_s26, 2048  }
 0x12d   : > { %12230 = vsyncadd (%p16434_p7), %s444_s26, 4294965248  ;;  %s452_s6 = sand.u32 1, %s12457_s21   ;;  %s12839_s20 = scalar_lea.vmem [#allocation7], %s12827_s17 }
 0x12e   : > { %s453_s25 = scalar_lea.sflag [#allocation8], %s452_s6 }
 0x12f   : > { %12232 = dma.done.wait (%p16434_p7), %s453_s25, 2048  }
 0x130   : > { %12234 = vsyncadd (%p16434_p7), %s453_s25, 4294965248  ;;  %s463_s23 = sand.u32 1, %s12281_s9  }
 0x131   : > { %s12846_s27 = sshll.u32 %s463_s23, 4 }
 0x132   : > { %s465_s11 = scalar_lea.vmem [#allocation9], %s12846_s27 }
 0x133   : > { %12236 = dma.done.wait (%p12705_p6), %s453_s25, 256  }
 0x134   : > { %12238 = vsyncadd (%p12705_p6), %s453_s25, 4294967040  ;;  %s16435_s8 = sld [smem:[#allocation29_spill]]  ;;  %s471_s12 = scalar_lea.sflag [#allocation11], %s452_s6 }
 0x135   : > { %p16436_p0 = scmp.ne.s32.totalorder %s16425_s30, 0 }
 0x13a   : > { %s472_s15 = sand.u32 1, %s16435_s8  }
 0x13b   : > { %s12854_s1 = sshll.u32 %s472_s15, 4 }
 0x13c   : > { %s474_s22 = scalar_lea.vmem [#allocation10], %s12854_s1 }
 0x13d   : > { %12240 = dma.done.wait (%p16436_p0), %s471_s12, 256  }
 0x13e   : > { %12242 = vsyncadd (%p16436_p0), %s471_s12, 4294967040  ;;  %p16437_p8 = scmp.eq.s32.totalorder %s12457_s21, 0 }
 0x140   : > { %12244 = dma.done.wait (%p16437_p8), [#allocation6], 32   ;;  %p16438_p10 = pmov %p16437_p8 }
 0x141   : > { %p16439_p6 = pmov %p16437_p8 }
 0x142   : > { %12246 = vsyncadd (%p16438_p10), [#allocation6], 4294967264 }
 0x143   : > { %12248 = dma.done.wait (%p16439_p6), [#allocation14], 16   ;;  %p16440_p9 = pmov %p16439_p6 }
 0x144   : > { %p16441_p12 = pmov %p16439_p6 }
 0x145   : > { %12250 = vsyncadd (%p16440_p9), [#allocation14], 4294967280 }
 0x146   : > { %12252 = dma.done.wait (%p16441_p12), [#allocation11], 1152   ;;  %p16442_p5 = pmov %p16439_p6 }
 0x148   : > { %12254 = vsyncadd (%p16442_p5), [#allocation11], 4294966144  ;;  %p16443_p1 = pmov %p16442_p5 }
 0x14a   : > { %12256 = dma.done.wait (%p16443_p1), [#allocation17], 4096   ;;  %p16444_p4 = pmov %p16443_p1 }
 0x14c   : > { %12258 = vsyncadd (%p16444_p4), [#allocation17], 4294963200 }
 0x14d   : > { %495 = sfence }
 0x14e   : > { %s16445_s29 = sld [smem:[#allocation33_spill]]  ;;  %v12878_v0 = vld [vmem:[%s12831_s28 + $0x8] sm:$0xff]  ;;  %v12881_v1 = vld [vmem:[%s12831_s28] sm:$0xff]  ;;  %vm623_vm0 = vcmask 64512   ;;  %v12330_v2 = vmov 0.0   ;;  %v12916_v13 = vld [vmem:[%s12831_s28 + $0x18] sm:$0xff] }
 0x14f   : > { %698 = vmatprep.subr.mxu1 %v12878_v0  ;;  %762 = vmatprep.mubr.f32.mxu1 %v12330_v2  ;;  %v557_v3 = vld [vmem:[%s465_s11 + $0x8] sm:$0xff]  ;;  %v12886_v4 = vld [vmem:[#allocation15] sm:$0x3f]  ;;  %v12920_v14 = vld [vmem:[%s12831_s28 + $0x10] sm:$0xff]  ;;  %s12331_s14 = smov 17   ;;  %s12332_s26 = smov 16  }
 0x150   : > { %699 = vmatpush1.msra.mxu1 %v12881_v1  ;;  %v556_v5 = vld [vmem:[%s465_s11] sm:$0xff]  ;;  %691 = vmatprep.mubr.f32.mxu0 %v12330_v2  ;;  %v12892_v6 = vld [vmem:[%s12831_s28 + $0x28] sm:$0xff]  ;;  %v12926_v15 = vld [vmem:[%s12831_s28 + $0x38] sm:$0xff]  ;;  %s12333_s6 = smov 15   ;;  %s12334_s25 = smov 1  }
 0x151   : > { %v12895_v7 = vld [vmem:[%s12831_s28 + $0x20] sm:$0xff]  ;;  %11393 = vmatmul.mubr.msk.f32.vlgmr.msra.gmra.mrb[0].mxu1 %vm623_vm0, %v12886_v4  ;;  %840 = vmatprep.subr.mxu1 %v12892_v6  ;;  %v12901_v8 = vld [vmem:[%s12831_s28 + $0x48] sm:$0xff]  ;;  %v12946_v21 = vld [vmem:[%s12831_s28 + $0x30] sm:$0xff]  ;;  %s12335_s23 = smov 127   ;;  %s12336_s27 = smov 113  }
 0x152   : > { %841 = vmatpush1.msra.mxu1 %v12895_v7  ;;  %904 = vmatprep.mubr.f32.mxu1 %v12330_v2  ;;  %v12911_v12 = vld [vmem:[%s12831_s28 + $0x40] sm:$0xff]  ;;  %v12933_v16 = vld [vmem:[%s12831_s28 + $0x68] sm:$0xff]  ;;  %v12952_v22 = vld [vmem:[%s12831_s28 + $0x58] sm:$0xff]  ;;  %s12337_s11 = smov 112   ;;  %s12338_s8 = smov 111  }
 0x153   : > { %982 = vmatprep.subr.mxu1 %v12901_v8  ;;  %v596_v17 = vld [vmem:[%s474_s22 + $0x8] sm:$0xff]  ;;  %v12940_v19 = vld [vmem:[%s12831_s28 + $0x60] sm:$0xff]  ;;  %v12966_v25 = vld [vmem:[%s12831_s28 + $0x50] sm:$0xff]  ;;  %s16633_s15 = sld [smem:[#allocation34_spill]]  ;;  %s14868_s12 = sld [smem:[#allocation13]] }
 0x154   : > { %p552_p3 = scmp.gt.s32.totalorder %s16445_s29, 0  ;;  %p554_p11 = scmp.lt.s32.totalorder %s16445_s29, 1  ;;  %v595_v20 = vld [vmem:[%s474_s22] sm:$0xff]  ;;  %v12972_v26 = vld [vmem:[%s12831_s28 + $0x78] sm:$0xff]  ;;  %v1624_v28 = vld [vmem:[#allocation15 + $0x8] sm:$0x3f] }
 0x155   : > { %11395 = vmatmul.mubr.msk.f32.vlgmr.msra.gmra.mrb[2].mxu1 %vm623_vm0, %v12886_v4  ;;  %v12982_v27 = vld [vmem:[%s12831_s28 + $0x70] sm:$0xff]  ;;  %v3624_v30 = vld [vmem:[#allocation15 + $0x18] sm:$0x3f]  ;;  %v4624_v31 = vld [vmem:[#allocation15 + $0x20] sm:$0x3f]  ;;  %s14870_s22 = sld [smem:[#allocation13 + $0x1]] }
 0x156   : > { %s553_s21 = scalar_select %p552_p3, 1.0, 0.0  ;;  %983 = vmatpush1.msra.mxu1 %v12911_v12  ;;  %1046 = vmatprep.mubr.f32.mxu1 %v12330_v2  ;;  %v2624_v29 = vld [vmem:[#allocation15 + $0x10] sm:$0x3f]  ;;  %v5469_v32 = vld [vmem:[#allocation15 + $0x28] sm:$0x3f] }
 0x157   : > { %s555_s30 = scalar_select %p554_p11, 1.0, 0.0  ;;  %1124 = vmatprep.subr.mxu1 %v12933_v16  ;;  %v6469_v33 = vld [vmem:[#allocation15 + $0x30] sm:$0x3f]  ;;  %v7469_v34 = vld [vmem:[#allocation15 + $0x38] sm:$0x3f] }
 0x158   : > { %v558_v9 = vstv %s553_s21  ;;  %v8469_v35 = vld [vmem:[#allocation15 + $0x40] sm:$0x3f] }
 0x159   : > { %v12905_v10 = vmul.f32 %v558_v9, %v557_v3  ;;  %v12907_v11 = vmul.f32 %v558_v9, %v556_v5  ;;  %v597_v18 = vstv %s555_s30  ;;  %11397 = vmatmul.mubr.msk.f32.vlgmr.msra.gmra.mrb[4].mxu1 %vm623_vm0, %v12886_v4  ;;  %s14864_s1 = sshll.u32 %s16633_s15, 7 }
 0x15a   : > { %v12955_v23 = vmul.f32 %v597_v18, %v596_v17  ;;  %1125 = vmatpush1.msra.mxu1 %v12940_v19  ;;  %v12960_v24 = vmul.f32 %v597_v18, %v595_v20  ;;  %1188 = vmatprep.mubr.f32.mxu1 %v12330_v2  ;;  %s9990_s21 = sadd.s32 1, %s14864_s1  ;;  %s10155_s30 = sadd.s32 2, %s14864_s1 }
 0x15b   : > { %627 = vmatprep.subr.mxu0 %v12905_v10 }
 0x15c   : > { %628 = vmatpush1.msra.mxu0 %v12907_v11  ;;  %1266 = vmatprep.subr.mxu1 %v12955_v23 }
 0x15d   : > { %11392 = vmatmul.mubr.msk.f32.vlgmr.msra.gmra.mrb[0].mxu0 %vm623_vm0, %v12886_v4  ;;  %769 = vmatprep.subr.mxu0 %v12916_v13 }
 0x15e   : > { %770 = vmatpush1.msra.mxu0 %v12920_v14  ;;  %833 = vmatprep.mubr.f32.mxu0 %v12330_v2 }
 0x15f   : > { %911 = vmatprep.subr.mxu0 %v12926_v15  ;;  %11399 = vmatmul.mubr.msk.f32.vlgmr.msra.gmra.mrb[6].mxu1 %vm623_vm0, %v12886_v4 }
 0x160   : > { %1267 = vmatpush1.msra.mxu1 %v12960_v24  ;;  %1330 = vmatprep.mubr.f32.mxu1 %v12330_v2 }
 0x161   : > { %11394 = vmatmul.mubr.msk.f32.vlgmr.msra.gmra.mrb[2].mxu0 %vm623_vm0, %v12886_v4  ;;  %1699 = vmatprep.subr.mxu1 %v12878_v0 }
 0x162   : > { %912 = vmatpush1.msra.mxu0 %v12946_v21  ;;  %975 = vmatprep.mubr.f32.mxu0 %v12330_v2 }
 0x163   : > { %1053 = vmatprep.subr.mxu0 %v12952_v22  ;;  %11401 = vmatmul.mubr.msk.f32.vlgmr.msra.gmra.mrb[8].mxu1 %vm623_vm0, %v12886_v4 }
 0x164   : > { %1700 = vmatpush1.msra.mxu1 %v12881_v1  ;;  %1763 = vmatprep.mubr.f32.mxu1 %v12330_v2 }
 0x165   : > { %11396 = vmatmul.mubr.msk.f32.vlgmr.msra.gmra.mrb[4].mxu0 %vm623_vm0, %v12886_v4  ;;  %1841 = vmatprep.subr.mxu1 %v12892_v6 }
 0x166   : > { %1054 = vmatpush1.msra.mxu0 %v12966_v25  ;;  %1117 = vmatprep.mubr.f32.mxu0 %v12330_v2 }
 0x167   : > { %1195 = vmatprep.subr.mxu0 %v12972_v26  ;;  %11403 = vmatmul.mubr.msk.f32.vlgmr.msra.gmra.mrb[10].mxu1 %vm623_vm0, %v1624_v28 }
 0x168   : > { %1842 = vmatpush1.msra.mxu1 %v12895_v7  ;;  %1905 = vmatprep.mubr.f32.mxu1 %v12330_v2 }
 0x169   : > { %11398 = vmatmul.mubr.msk.f32.vlgmr.msra.gmra.mrb[6].mxu0 %vm623_vm0, %v12886_v4  ;;  %1983 = vmatprep.subr.mxu1 %v12901_v8 }
 0x16a   : > { %1196 = vmatpush1.msra.mxu0 %v12982_v27  ;;  %1259 = vmatprep.mubr.f32.mxu0 %v12330_v2 }
 0x16b   : > { %1628 = vmatprep.subr.mxu0 %v12905_v10  ;;  %11405 = vmatmul.mubr.msk.f32.vlgmr.msra.gmra.mrb[12].mxu1 %vm623_vm0, %v1624_v28 }
 0x16c   : > { %1984 = vmatpush1.msra.mxu1 %v12911_v12  ;;  %2047 = vmatprep.mubr.f32.mxu1 %v12330_v2 }
 0x16d   : > { %11400 = vmatmul.mubr.msk.f32.vlgmr.msra.gmra.mrb[8].mxu0 %vm623_vm0, %v12886_v4  ;;  %2125 = vmatprep.subr.mxu1 %v12933_v16 }
 0x16e   : > { %1629 = vmatpush1.msra.mxu0 %v12907_v11  ;;  %1692 = vmatprep.mubr.f32.mxu0 %v12330_v2 }
 0x16f   : > { %1770 = vmatprep.subr.mxu0 %v12916_v13  ;;  %11407 = vmatmul.mubr.msk.f32.vlgmr.msra.gmra.mrb[14].mxu1 %vm623_vm0, %v1624_v28 }
 0x170   : > { %2126 = vmatpush1.msra.mxu1 %v12940_v19  ;;  %2189 = vmatprep.mubr.f32.mxu1 %v12330_v2 }
 0x171   : > { %11402 = vmatmul.mubr.msk.f32.vlgmr.msra.gmra.mrb[10].mxu0 %vm623_vm0, %v1624_v28  ;;  %2267 = vmatprep.subr.mxu1 %v12955_v23 }
 0x172   : > { %1771 = vmatpush1.msra.mxu0 %v12920_v14  ;;  %1834 = vmatprep.mubr.f32.mxu0 %v12330_v2 }
 0x173   : > { %1912 = vmatprep.subr.mxu0 %v12926_v15  ;;  %11409 = vmatmul.mubr.msk.f32.vlgmr.msra.gmra.mrb[16].mxu1 %vm623_vm0, %v1624_v28 }
 0x174   : > { %2268 = vmatpush1.msra.mxu1 %v12960_v24  ;;  %2331 = vmatprep.mubr.f32.mxu1 %v12330_v2 }
 0x175   : > { %11404 = vmatmul.mubr.msk.f32.vlgmr.msra.gmra.mrb[12].mxu0 %vm623_vm0, %v1624_v28  ;;  %2699 = vmatprep.subr.mxu1 %v12878_v0 }
 0x176   : > { %1913 = vmatpush1.msra.mxu0 %v12946_v21  ;;  %1976 = vmatprep.mubr.f32.mxu0 %v12330_v2 }
 0x177   : > { %2054 = vmatprep.subr.mxu0 %v12952_v22  ;;  %11411 = vmatmul.mubr.msk.f32.vlgmr.msra.gmra.mrb[18].mxu1 %vm623_vm0, %v1624_v28 }
 0x178   : > { %2700 = vmatpush1.msra.mxu1 %v12881_v1  ;;  %2763 = vmatprep.mubr.f32.mxu1 %v12330_v2 }
 0x179   : > { %11406 = vmatmul.mubr.msk.f32.vlgmr.msra.gmra.mrb[14].mxu0 %vm623_vm0, %v1624_v28  ;;  %2841 = vmatprep.subr.mxu1 %v12892_v6 }
 0x17a   : > { %2055 = vmatpush1.msra.mxu0 %v12966_v25  ;;  %2118 = vmatprep.mubr.f32.mxu0 %v12330_v2 }
 0x17b   : > { %2196 = vmatprep.subr.mxu0 %v12972_v26  ;;  %11413 = vmatmul.mubr.msk.f32.vlgmr.msra.gmra.mrb[20].mxu1 %vm623_vm0, %v2624_v29 }
 0x17c   : > { %2842 = vmatpush1.msra.mxu1 %v12895_v7  ;;  %2905 = vmatprep.mubr.f32.mxu1 %v12330_v2 }
 0x17d   : > { %11408 = vmatmul.mubr.msk.f32.vlgmr.msra.gmra.mrb[16].mxu0 %vm623_vm0, %v1624_v28  ;;  %2983 = vmatprep.subr.mxu1 %v12901_v8 }
 0x17e   : > { %2197 = vmatpush1.msra.mxu0 %v12982_v27  ;;  %2260 = vmatprep.mubr.f32.mxu0 %v12330_v2 }
 0x17f   : > { %2628 = vmatprep.subr.mxu0 %v12905_v10  ;;  %11415 = vmatmul.mubr.msk.f32.vlgmr.msra.gmra.mrb[22].mxu1 %vm623_vm0, %v2624_v29 }
 0x180   : > { %2984 = vmatpush1.msra.mxu1 %v12911_v12  ;;  %3047 = vmatprep.mubr.f32.mxu1 %v12330_v2 }
 0x181   : > { %11410 = vmatmul.mubr.msk.f32.vlgmr.msra.gmra.mrb[18].mxu0 %vm623_vm0, %v1624_v28  ;;  %3125 = vmatprep.subr.mxu1 %v12933_v16 }
 0x182   : > { %2629 = vmatpush1.msra.mxu0 %v12907_v11  ;;  %2692 = vmatprep.mubr.f32.mxu0 %v12330_v2 }
 0x183   : > { %2770 = vmatprep.subr.mxu0 %v12916_v13  ;;  %11417 = vmatmul.mubr.msk.f32.vlgmr.msra.gmra.mrb[24].mxu1 %vm623_vm0, %v2624_v29 }
 0x184   : > { %3126 = vmatpush1.msra.mxu1 %v12940_v19  ;;  %3189 = vmatprep.mubr.f32.mxu1 %v12330_v2 }
 0x185   : > { %11412 = vmatmul.mubr.msk.f32.vlgmr.msra.gmra.mrb[20].mxu0 %vm623_vm0, %v2624_v29  ;;  %3267 = vmatprep.subr.mxu1 %v12955_v23 }
 0x186   : > { %2771 = vmatpush1.msra.mxu0 %v12920_v14  ;;  %2834 = vmatprep.mubr.f32.mxu0 %v12330_v2 }
 0x187   : > { %2912 = vmatprep.subr.mxu0 %v12926_v15  ;;  %11419 = vmatmul.mubr.msk.f32.vlgmr.msra.gmra.mrb[26].mxu1 %vm623_vm0, %v2624_v29 }
 0x188   : > { %3268 = vmatpush1.msra.mxu1 %v12960_v24  ;;  %3331 = vmatprep.mubr.f32.mxu1 %v12330_v2 }
 0x189   : > { %11414 = vmatmul.mubr.msk.f32.vlgmr.msra.gmra.mrb[22].mxu0 %vm623_vm0, %v2624_v29  ;;  %3699 = vmatprep.subr.mxu1 %v12878_v0 }
 0x18a   : > { %2913 = vmatpush1.msra.mxu0 %v12946_v21  ;;  %2976 = vmatprep.mubr.f32.mxu0 %v12330_v2 }
 0x18b   : > { %3054 = vmatprep.subr.mxu0 %v12952_v22  ;;  %11421 = vmatmul.mubr.msk.f32.vlgmr.msra.gmra.mrb[28].mxu1 %vm623_vm0, %v2624_v29 }
 0x18c   : > { %3700 = vmatpush1.msra.mxu1 %v12881_v1  ;;  %3763 = vmatprep.mubr.f32.mxu1 %v12330_v2 }
 0x18d   : > { %11416 = vmatmul.mubr.msk.f32.vlgmr.msra.gmra.mrb[24].mxu0 %vm623_vm0, %v2624_v29  ;;  %3841 = vmatprep.subr.mxu1 %v12892_v6 }
 0x18e   : > { %3055 = vmatpush1.msra.mxu0 %v12966_v25  ;;  %3118 = vmatprep.mubr.f32.mxu0 %v12330_v2 }
 0x18f   : > { %3196 = vmatprep.subr.mxu0 %v12972_v26  ;;  %11423 = vmatmul.mubr.msk.f32.vlgmr.msra.gmra.mrb[30].mxu1 %vm623_vm0, %v3624_v30 }
 0x190   : > { %3842 = vmatpush1.msra.mxu1 %v12895_v7  ;;  %3905 = vmatprep.mubr.f32.mxu1 %v12330_v2 }
 0x191   : > { %11418 = vmatmul.mubr.msk.f32.vlgmr.msra.gmra.mrb[26].mxu0 %vm623_vm0, %v2624_v29  ;;  %3983 = vmatprep.subr.mxu1 %v12901_v8 }
 0x192   : > { %3197 = vmatpush1.msra.mxu0 %v12982_v27  ;;  %3260 = vmatprep.mubr.f32.mxu0 %v12330_v2 }
 0x193   : > { %3628 = vmatprep.subr.mxu0 %v12905_v10  ;;  %11425 = vmatmul.mubr.msk.f32.vlgmr.msra.gmra.mrb[32].mxu1 %vm623_vm0, %v3624_v30 }
 0x194   : > { %3984 = vmatpush1.msra.mxu1 %v12911_v12  ;;  %4047 = vmatprep.mubr.f32.mxu1 %v12330_v2 }
 0x195   : > { %11420 = vmatmul.mubr.msk.f32.vlgmr.msra.gmra.mrb[28].mxu0 %vm623_vm0, %v2624_v29  ;;  %4125 = vmatprep.subr.mxu1 %v12933_v16 }
 0x196   : > { %3629 = vmatpush1.msra.mxu0 %v12907_v11  ;;  %3692 = vmatprep.mubr.f32.mxu0 %v12330_v2 }
 0x197   : > { %3770 = vmatprep.subr.mxu0 %v12916_v13  ;;  %11427 = vmatmul.mubr.msk.f32.vlgmr.msra.gmra.mrb[34].mxu1 %vm623_vm0, %v3624_v30 }
 0x198   : > { %4126 = vmatpush1.msra.mxu1 %v12940_v19  ;;  %4189 = vmatprep.mubr.f32.mxu1 %v12330_v2 }
 0x199   : > { %11422 = vmatmul.mubr.msk.f32.vlgmr.msra.gmra.mrb[30].mxu0 %vm623_vm0, %v3624_v30  ;;  %4267 = vmatprep.subr.mxu1 %v12955_v23 }
 0x19a   : > { %3771 = vmatpush1.msra.mxu0 %v12920_v14  ;;  %3834 = vmatprep.mubr.f32.mxu0 %v12330_v2 }
 0x19b   : > { %3912 = vmatprep.subr.mxu0 %v12926_v15  ;;  %11429 = vmatmul.mubr.msk.f32.vlgmr.msra.gmra.mrb[36].mxu1 %vm623_vm0, %v3624_v30 }
 0x19c   : > { %4268 = vmatpush1.msra.mxu1 %v12960_v24  ;;  %4331 = vmatprep.mubr.f32.mxu1 %v12330_v2 }
 0x19d   : > { %11424 = vmatmul.mubr.msk.f32.vlgmr.msra.gmra.mrb[32].mxu0 %vm623_vm0, %v3624_v30  ;;  %4699 = vmatprep.subr.mxu1 %v12878_v0 }
 0x19e   : > { %3913 = vmatpush1.msra.mxu0 %v12946_v21  ;;  %3976 = vmatprep.mubr.f32.mxu0 %v12330_v2 }
 0x19f   : > { %4054 = vmatprep.subr.mxu0 %v12952_v22  ;;  %11431 = vmatmul.mubr.msk.f32.vlgmr.msra.gmra.mrb[38].mxu1 %vm623_vm0, %v3624_v30 }
 0x1a0   : > { %4700 = vmatpush1.msra.mxu1 %v12881_v1  ;;  %4763 = vmatprep.mubr.f32.mxu1 %v12330_v2 }
 0x1a1   : > { %11426 = vmatmul.mubr.msk.f32.vlgmr.msra.gmra.mrb[34].mxu0 %vm623_vm0, %v3624_v30  ;;  %4841 = vmatprep.subr.mxu1 %v12892_v6 }
 0x1a2   : > { %4055 = vmatpush1.msra.mxu0 %v12966_v25  ;;  %4118 = vmatprep.mubr.f32.mxu0 %v12330_v2 }
 0x1a3   : > { %4196 = vmatprep.subr.mxu0 %v12972_v26  ;;  %11433 = vmatmul.mubr.msk.f32.vlgmr.msra.gmra.mrb[40].mxu1 %vm623_vm0, %v4624_v31 }
 0x1a4   : > { %4842 = vmatpush1.msra.mxu1 %v12895_v7  ;;  %4905 = vmatprep.mubr.f32.mxu1 %v12330_v2 }
 0x1a5   : > { %11428 = vmatmul.mubr.msk.f32.vlgmr.msra.gmra.mrb[36].mxu0 %vm623_vm0, %v3624_v30  ;;  %4983 = vmatprep.subr.mxu1 %v12901_v8 }
 0x1a6   : > { %4197 = vmatpush1.msra.mxu0 %v12982_v27  ;;  %4260 = vmatprep.mubr.f32.mxu0 %v12330_v2 }
 0x1a7   : > { %4628 = vmatprep.subr.mxu0 %v12905_v10  ;;  %11435 = vmatmul.mubr.msk.f32.vlgmr.msra.gmra.mrb[42].mxu1 %vm623_vm0, %v4624_v31 }
 0x1a8   : > { %4984 = vmatpush1.msra.mxu1 %v12911_v12  ;;  %5047 = vmatprep.mubr.f32.mxu1 %v12330_v2 }
 0x1a9   : > { %11430 = vmatmul.mubr.msk.f32.vlgmr.msra.gmra.mrb[38].mxu0 %vm623_vm0, %v3624_v30  ;;  %5125 = vmatprep.subr.mxu1 %v12933_v16 }
 0x1aa   : > { %4629 = vmatpush1.msra.mxu0 %v12907_v11  ;;  %4692 = vmatprep.mubr.f32.mxu0 %v12330_v2 }
 0x1ab   : > { %4770 = vmatprep.subr.mxu0 %v12916_v13  ;;  %11437 = vmatmul.mubr.msk.f32.vlgmr.msra.gmra.mrb[44].mxu1 %vm623_vm0, %v4624_v31 }
 0x1ac   : > { %5126 = vmatpush1.msra.mxu1 %v12940_v19  ;;  %5189 = vmatprep.mubr.f32.mxu1 %v12330_v2 }
 0x1ad   : > { %11432 = vmatmul.mubr.msk.f32.vlgmr.msra.gmra.mrb[40].mxu0 %vm623_vm0, %v4624_v31  ;;  %5267 = vmatprep.subr.mxu1 %v12955_v23 }
 0x1ae   : > { %4771 = vmatpush1.msra.mxu0 %v12920_v14  ;;  %4834 = vmatprep.mubr.f32.mxu0 %v12330_v2 }
 0x1af   : > { %4912 = vmatprep.subr.mxu0 %v12926_v15  ;;  %11439 = vmatmul.mubr.msk.f32.vlgmr.msra.gmra.mrb[46].mxu1 %vm623_vm0, %v4624_v31 }
 0x1b0   : > { %5268 = vmatpush1.msra.mxu1 %v12960_v24  ;;  %5331 = vmatprep.mubr.f32.mxu1 %v12330_v2 }
 0x1b1   : > { %11434 = vmatmul.mubr.msk.f32.vlgmr.msra.gmra.mrb[42].mxu0 %vm623_vm0, %v4624_v31  ;;  %5544 = vmatprep.subr.mxu1 %v12878_v0 }
 0x1b2   : > { %4913 = vmatpush1.msra.mxu0 %v12946_v21  ;;  %4976 = vmatprep.mubr.f32.mxu0 %v12330_v2 }
 0x1b3   : > { %5054 = vmatprep.subr.mxu0 %v12952_v22  ;;  %11441 = vmatmul.mubr.msk.f32.vlgmr.msra.gmra.mrb[48].mxu1 %vm623_vm0, %v4624_v31 }
 0x1b4   : > { %5545 = vmatpush1.msra.mxu1 %v12881_v1  ;;  %5608 = vmatprep.mubr.f32.mxu1 %v12330_v2 }
 0x1b5   : > { %11436 = vmatmul.mubr.msk.f32.vlgmr.msra.gmra.mrb[44].mxu0 %vm623_vm0, %v4624_v31  ;;  %5686 = vmatprep.subr.mxu1 %v12892_v6 }
 0x1b6   : > { %5055 = vmatpush1.msra.mxu0 %v12966_v25  ;;  %5118 = vmatprep.mubr.f32.mxu0 %v12330_v2 }
 0x1b7   : > { %5196 = vmatprep.subr.mxu0 %v12972_v26  ;;  %11443 = vmatmul.mubr.msk.f32.vlgmr.msra.gmra.mrb[50].mxu1 %vm623_vm0, %v5469_v32 }
 0x1b8   : > { %5687 = vmatpush1.msra.mxu1 %v12895_v7  ;;  %5750 = vmatprep.mubr.f32.mxu1 %v12330_v2 }
 0x1b9   : > { %11438 = vmatmul.mubr.msk.f32.vlgmr.msra.gmra.mrb[46].mxu0 %vm623_vm0, %v4624_v31  ;;  %5828 = vmatprep.subr.mxu1 %v12901_v8 }
 0x1ba   : > { %5197 = vmatpush1.msra.mxu0 %v12982_v27  ;;  %5260 = vmatprep.mubr.f32.mxu0 %v12330_v2 }
 0x1bb   : > { %5473 = vmatprep.subr.mxu0 %v12905_v10  ;;  %11445 = vmatmul.mubr.msk.f32.vlgmr.msra.gmra.mrb[52].mxu1 %vm623_vm0, %v5469_v32 }
 0x1bc   : > { %5829 = vmatpush1.msra.mxu1 %v12911_v12  ;;  %5892 = vmatprep.mubr.f32.mxu1 %v12330_v2 }
 0x1bd   : > { %11440 = vmatmul.mubr.msk.f32.vlgmr.msra.gmra.mrb[48].mxu0 %vm623_vm0, %v4624_v31  ;;  %5970 = vmatprep.subr.mxu1 %v12933_v16 }
 0x1be   : > { %5474 = vmatpush1.msra.mxu0 %v12907_v11  ;;  %5537 = vmatprep.mubr.f32.mxu0 %v12330_v2 }
 0x1bf   : > { %5615 = vmatprep.subr.mxu0 %v12916_v13  ;;  %11447 = vmatmul.mubr.msk.f32.vlgmr.msra.gmra.mrb[54].mxu1 %vm623_vm0, %v5469_v32 }
 0x1c0   : > { %5971 = vmatpush1.msra.mxu1 %v12940_v19  ;;  %6034 = vmatprep.mubr.f32.mxu1 %v12330_v2 }
 0x1c1   : > { %11442 = vmatmul.mubr.msk.f32.vlgmr.msra.gmra.mrb[50].mxu0 %vm623_vm0, %v5469_v32  ;;  %6112 = vmatprep.subr.mxu1 %v12955_v23 }
 0x1c2   : > { %5616 = vmatpush1.msra.mxu0 %v12920_v14  ;;  %5679 = vmatprep.mubr.f32.mxu0 %v12330_v2 }
 0x1c3   : > { %5757 = vmatprep.subr.mxu0 %v12926_v15  ;;  %11449 = vmatmul.mubr.msk.f32.vlgmr.msra.gmra.mrb[56].mxu1 %vm623_vm0, %v5469_v32 }
 0x1c4   : > { %6113 = vmatpush1.msra.mxu1 %v12960_v24  ;;  %6176 = vmatprep.mubr.f32.mxu1 %v12330_v2 }
 0x1c5   : > { %11444 = vmatmul.mubr.msk.f32.vlgmr.msra.gmra.mrb[52].mxu0 %vm623_vm0, %v5469_v32  ;;  %6544 = vmatprep.subr.mxu1 %v12878_v0 }
 0x1c6   : > { %5758 = vmatpush1.msra.mxu0 %v12946_v21  ;;  %5821 = vmatprep.mubr.f32.mxu0 %v12330_v2 }
 0x1c7   : > { %5899 = vmatprep.subr.mxu0 %v12952_v22  ;;  %11451 = vmatmul.mubr.msk.f32.vlgmr.msra.gmra.mrb[58].mxu1 %vm623_vm0, %v5469_v32 }
 0x1c8   : > { %6545 = vmatpush1.msra.mxu1 %v12881_v1  ;;  %6608 = vmatprep.mubr.f32.mxu1 %v12330_v2 }
 0x1c9   : > { %11446 = vmatmul.mubr.msk.f32.vlgmr.msra.gmra.mrb[54].mxu0 %vm623_vm0, %v5469_v32  ;;  %6686 = vmatprep.subr.mxu1 %v12892_v6 }
 0x1ca   : > { %5900 = vmatpush1.msra.mxu0 %v12966_v25  ;;  %5963 = vmatprep.mubr.f32.mxu0 %v12330_v2 }
 0x1cb   : > { %6041 = vmatprep.subr.mxu0 %v12972_v26  ;;  %11453 = vmatmul.mubr.msk.f32.vlgmr.msra.gmra.mrb[60].mxu1 %vm623_vm0, %v6469_v33 }
 0x1cc   : > { %6687 = vmatpush1.msra.mxu1 %v12895_v7  ;;  %6750 = vmatprep.mubr.f32.mxu1 %v12330_v2 }
 0x1cd   : > { %11448 = vmatmul.mubr.msk.f32.vlgmr.msra.gmra.mrb[56].mxu0 %vm623_vm0, %v5469_v32  ;;  %6828 = vmatprep.subr.mxu1 %v12901_v8 }
 0x1ce   : > { %6042 = vmatpush1.msra.mxu0 %v12982_v27  ;;  %6105 = vmatprep.mubr.f32.mxu0 %v12330_v2 }
 0x1cf   : > { %6473 = vmatprep.subr.mxu0 %v12905_v10  ;;  %11455 = vmatmul.mubr.msk.f32.vlgmr.msra.gmra.mrb[62].mxu1 %vm623_vm0, %v6469_v33 }
 0x1d0   : > { %6829 = vmatpush1.msra.mxu1 %v12911_v12  ;;  %6892 = vmatprep.mubr.f32.mxu1 %v12330_v2 }
 0x1d1   : > { %11450 = vmatmul.mubr.msk.f32.vlgmr.msra.gmra.mrb[58].mxu0 %vm623_vm0, %v5469_v32  ;;  %6970 = vmatprep.subr.mxu1 %v12933_v16 }
 0x1d2   : > { %6474 = vmatpush1.msra.mxu0 %v12907_v11  ;;  %6537 = vmatprep.mubr.f32.mxu0 %v12330_v2 }
 0x1d3   : > { %6615 = vmatprep.subr.mxu0 %v12916_v13  ;;  %11457 = vmatmul.mubr.msk.f32.vlgmr.msra.gmra.mrb[64].mxu1 %vm623_vm0, %v6469_v33 }
 0x1d4   : > { %6971 = vmatpush1.msra.mxu1 %v12940_v19  ;;  %7034 = vmatprep.mubr.f32.mxu1 %v12330_v2 }
 0x1d5   : > { %11452 = vmatmul.mubr.msk.f32.vlgmr.msra.gmra.mrb[60].mxu0 %vm623_vm0, %v6469_v33  ;;  %7112 = vmatprep.subr.mxu1 %v12955_v23 }
 0x1d6   : > { %6616 = vmatpush1.msra.mxu0 %v12920_v14  ;;  %6679 = vmatprep.mubr.f32.mxu0 %v12330_v2 }
 0x1d7   : > { %6757 = vmatprep.subr.mxu0 %v12926_v15  ;;  %11459 = vmatmul.mubr.msk.f32.vlgmr.msra.gmra.mrb[66].mxu1 %vm623_vm0, %v6469_v33 }
 0x1d8   : > { %7113 = vmatpush1.msra.mxu1 %v12960_v24  ;;  %7176 = vmatprep.mubr.f32.mxu1 %v12330_v2 }
 0x1d9   : > { %11454 = vmatmul.mubr.msk.f32.vlgmr.msra.gmra.mrb[62].mxu0 %vm623_vm0, %v6469_v33  ;;  %7544 = vmatprep.subr.mxu1 %v12878_v0 }
 0x1da   : > { %6758 = vmatpush1.msra.mxu0 %v12946_v21  ;;  %6821 = vmatprep.mubr.f32.mxu0 %v12330_v2 }
 0x1db   : > { %6899 = vmatprep.subr.mxu0 %v12952_v22  ;;  %11461 = vmatmul.mubr.msk.f32.vlgmr.msra.gmra.mrb[68].mxu1 %vm623_vm0, %v6469_v33 }
 0x1dc   : > { %7545 = vmatpush1.msra.mxu1 %v12881_v1  ;;  %7608 = vmatprep.mubr.f32.mxu1 %v12330_v2 }
 0x1dd   : > { %11456 = vmatmul.mubr.msk.f32.vlgmr.msra.gmra.mrb[64].mxu0 %vm623_vm0, %v6469_v33  ;;  %7686 = vmatprep.subr.mxu1 %v12892_v6 }
 0x1de   : > { %6900 = vmatpush1.msra.mxu0 %v12966_v25  ;;  %6963 = vmatprep.mubr.f32.mxu0 %v12330_v2 }
 0x1df   : > { %7041 = vmatprep.subr.mxu0 %v12972_v26  ;;  %11463 = vmatmul.mubr.msk.f32.vlgmr.msra.gmra.mrb[70].mxu1 %vm623_vm0, %v7469_v34 }
 0x1e0   : > { %7687 = vmatpush1.msra.mxu1 %v12895_v7  ;;  %7750 = vmatprep.mubr.f32.mxu1 %v12330_v2 }
 0x1e1   : > { %11458 = vmatmul.mubr.msk.f32.vlgmr.msra.gmra.mrb[66].mxu0 %vm623_vm0, %v6469_v33  ;;  %7828 = vmatprep.subr.mxu1 %v12901_v8 }
 0x1e2   : > { %7042 = vmatpush1.msra.mxu0 %v12982_v27  ;;  %7105 = vmatprep.mubr.f32.mxu0 %v12330_v2 }
 0x1e3   : > { %7473 = vmatprep.subr.mxu0 %v12905_v10  ;;  %11465 = vmatmul.mubr.msk.f32.vlgmr.msra.gmra.mrb[72].mxu1 %vm623_vm0, %v7469_v34 }
 0x1e4   : > { %7829 = vmatpush1.msra.mxu1 %v12911_v12  ;;  %7892 = vmatprep.mubr.f32.mxu1 %v12330_v2 }
 0x1e5   : > { %11460 = vmatmul.mubr.msk.f32.vlgmr.msra.gmra.mrb[68].mxu0 %vm623_vm0, %v6469_v33  ;;  %7970 = vmatprep.subr.mxu1 %v12933_v16 }
 0x1e6   : > { %7474 = vmatpush1.msra.mxu0 %v12907_v11  ;;  %7537 = vmatprep.mubr.f32.mxu0 %v12330_v2 }
 0x1e7   : > { %7615 = vmatprep.subr.mxu0 %v12916_v13  ;;  %11467 = vmatmul.mubr.msk.f32.vlgmr.msra.gmra.mrb[74].mxu1 %vm623_vm0, %v7469_v34 }
 0x1e8   : > { %7971 = vmatpush1.msra.mxu1 %v12940_v19  ;;  %8034 = vmatprep.mubr.f32.mxu1 %v12330_v2 }
 0x1e9   : > { %11462 = vmatmul.mubr.msk.f32.vlgmr.msra.gmra.mrb[70].mxu0 %vm623_vm0, %v7469_v34  ;;  %8112 = vmatprep.subr.mxu1 %v12955_v23 }
 0x1ea   : > { %7616 = vmatpush1.msra.mxu0 %v12920_v14  ;;  %7679 = vmatprep.mubr.f32.mxu0 %v12330_v2 }
 0x1eb   : > { %7757 = vmatprep.subr.mxu0 %v12926_v15  ;;  %11469 = vmatmul.mubr.msk.f32.vlgmr.msra.gmra.mrb[76].mxu1 %vm623_vm0, %v7469_v34 }
 0x1ec   : > { %8113 = vmatpush1.msra.mxu1 %v12960_v24  ;;  %8176 = vmatprep.mubr.f32.mxu1 %v12330_v2 }
 0x1ed   : > { %11464 = vmatmul.mubr.msk.f32.vlgmr.msra.gmra.mrb[72].mxu0 %vm623_vm0, %v7469_v34  ;;  %8544 = vmatprep.subr.mxu1 %v12878_v0 }
 0x1ee   : > { %7758 = vmatpush1.msra.mxu0 %v12946_v21  ;;  %7821 = vmatprep.mubr.f32.mxu0 %v12330_v2 }
 0x1ef   : > { %7899 = vmatprep.subr.mxu0 %v12952_v22  ;;  %11471 = vmatmul.mubr.msk.f32.vlgmr.msra.gmra.mrb[78].mxu1 %vm623_vm0, %v7469_v34 }
 0x1f0   : > { %8545 = vmatpush1.msra.mxu1 %v12881_v1  ;;  %8608 = vmatprep.mubr.f32.mxu1 %v12330_v2 }
 0x1f1   : > { %11466 = vmatmul.mubr.msk.f32.vlgmr.msra.gmra.mrb[74].mxu0 %vm623_vm0, %v7469_v34  ;;  %8686 = vmatprep.subr.mxu1 %v12892_v6 }
 0x1f2   : > { %7900 = vmatpush1.msra.mxu0 %v12966_v25  ;;  %7963 = vmatprep.mubr.f32.mxu0 %v12330_v2 }
 0x1f3   : > { %8041 = vmatprep.subr.mxu0 %v12972_v26  ;;  %11473 = vmatmul.mubr.msk.f32.vlgmr.msra.gmra.mrb[80].mxu1 %vm623_vm0, %v8469_v35 }
 0x1f4   : > { %8687 = vmatpush1.msra.mxu1 %v12895_v7  ;;  %8750 = vmatprep.mubr.f32.mxu1 %v12330_v2 }
 0x1f5   : > { %11468 = vmatmul.mubr.msk.f32.vlgmr.msra.gmra.mrb[76].mxu0 %vm623_vm0, %v7469_v34  ;;  %8828 = vmatprep.subr.mxu1 %v12901_v8 }
 0x1f6   : > { %8042 = vmatpush1.msra.mxu0 %v12982_v27  ;;  %8105 = vmatprep.mubr.f32.mxu0 %v12330_v2 }
 0x1f7   : > { %8473 = vmatprep.subr.mxu0 %v12905_v10  ;;  %11475 = vmatmul.mubr.msk.f32.vlgmr.msra.gmra.mrb[82].mxu1 %vm623_vm0, %v8469_v35 }
 0x1f8   : > { %8829 = vmatpush1.msra.mxu1 %v12911_v12  ;;  %8892 = vmatprep.mubr.f32.mxu1 %v12330_v2 }
 0x1f9   : > { %11470 = vmatmul.mubr.msk.f32.vlgmr.msra.gmra.mrb[78].mxu0 %vm623_vm0, %v7469_v34  ;;  %8970 = vmatprep.subr.mxu1 %v12933_v16 }
 0x1fa   : > { %8474 = vmatpush1.msra.mxu0 %v12907_v11  ;;  %8537 = vmatprep.mubr.f32.mxu0 %v12330_v2 }
 0x1fb   : > { %8615 = vmatprep.subr.mxu0 %v12916_v13  ;;  %11477 = vmatmul.mubr.msk.f32.vlgmr.msra.gmra.mrb[84].mxu1 %vm623_vm0, %v8469_v35 }
 0x1fc   : > { %8971 = vmatpush1.msra.mxu1 %v12940_v19  ;;  %9034 = vmatprep.mubr.f32.mxu1 %v12330_v2 }
 0x1fd   : > { %11472 = vmatmul.mubr.msk.f32.vlgmr.msra.gmra.mrb[80].mxu0 %vm623_vm0, %v8469_v35  ;;  %9112 = vmatprep.subr.mxu1 %v12955_v23 }
 0x1fe   : > { %8616 = vmatpush1.msra.mxu0 %v12920_v14  ;;  %8679 = vmatprep.mubr.f32.mxu0 %v12330_v2 }
 0x1ff   : > { %8757 = vmatprep.subr.mxu0 %v12926_v15  ;;  %11479 = vmatmul.mubr.msk.f32.vlgmr.msra.gmra.mrb[86].mxu1 %vm623_vm0, %v8469_v35 }
 0x200   : > { %9113 = vmatpush1.msra.mxu1 %v12960_v24  ;;  %9176 = vmatprep.mubr.f32.mxu1 %v12330_v2 }
 0x201   : > { %11474 = vmatmul.mubr.msk.f32.vlgmr.msra.gmra.mrb[82].mxu0 %vm623_vm0, %v8469_v35 }
 0x202   : > { %8758 = vmatpush1.msra.mxu0 %v12946_v21  ;;  %8821 = vmatprep.mubr.f32.mxu0 %v12330_v2 }
 0x203   : > { %8899 = vmatprep.subr.mxu0 %v12952_v22  ;;  %11481 = vmatmul.mubr.msk.f32.vlgmr.msra.gmra.mrb[88].mxu1 %vm623_vm0, %v8469_v35 }
 0x205   : > { %11476 = vmatmul.mubr.msk.f32.vlgmr.msra.gmra.mrb[84].mxu0 %vm623_vm0, %v8469_v35 }
 0x206   : > { %8900 = vmatpush1.msra.mxu0 %v12966_v25  ;;  %8963 = vmatprep.mubr.f32.mxu0 %v12330_v2 }
 0x207   : > { %9041 = vmatprep.subr.mxu0 %v12972_v26 }
 0x209   : > { %11478 = vmatmul.mubr.msk.f32.vlgmr.msra.gmra.mrb[86].mxu0 %vm623_vm0, %v8469_v35 }
 0x20a   : > { %9042 = vmatpush1.msra.mxu0 %v12982_v27  ;;  %9105 = vmatprep.mubr.f32.mxu0 %v12330_v2 }
 0x20d   : > { %11480 = vmatmul.mubr.msk.f32.vlgmr.msra.gmra.mrb[88].mxu0 %vm623_vm0, %v8469_v35 }
 0x224   : > { %v764_v36 = vpop.f32.mrb[0].mxu1 }
 0x225   : > { %v766_v37 = vpop.f32.mrb[1].mxu1  ;;  %v1353_v38 = vrot.slane %v764_v36, 2 }
 0x226   : > { %v1354_v39 = vrot.slane %v766_v37, 2 }
 0x228   : > { %v906_v40 = vpop.f32.mrb[2].mxu1 }
 0x229   : > { %v908_v41 = vpop.f32.mrb[3].mxu1  ;;  %v1357_v45 = vrot.slane %v906_v40, 2  ;;  %v1405_v52 = vrot.slane %v906_v40, 4 }
 0x22a   : > { %v1358_v47 = vrot.slane %v908_v41, 2  ;;  %v1406_v49 = vrot.slane %v908_v41, 4 }
 0x22c   : > { %v1048_v48 = vpop.f32.mrb[4].mxu1 }
 0x22d   : > { %v1050_v51 = vpop.f32.mrb[5].mxu1  ;;  %v1361_v57 = vrot.slane %v1048_v48, 2  ;;  %v1409_v63 = vrot.slane %v1048_v48, 4 }
 0x22e   : > { %v1362_v61 = vrot.slane %v1050_v51, 2  ;;  %v1410_v4 = vrot.slane %v1050_v51, 4 }
 0x230   : > { %v693_v42 = vpop.f32.mrb[0].mxu0 }
 0x231   : > { %v1385_v43 = vadd.f32 %v1353_v38, %v693_v42  ;;  %v695_v44 = vpop.f32.mrb[1].mxu0 }
 0x232   : > { %v1386_v46 = vadd.f32 %v1354_v39, %v695_v44  ;;  %v1190_v1 = vpop.f32.mrb[6].mxu1 }
 0x233   : > { %v1365_v6 = vrot.slane %v1190_v1, 2  ;;  %v1192_v7 = vpop.f32.mrb[7].mxu1  ;;  %v1413_v23 = vrot.slane %v1190_v1, 4 }
 0x234   : > { %v835_v50 = vpop.f32.mrb[2].mxu0  ;;  %v1366_v19 = vrot.slane %v1192_v7, 2  ;;  %v1414_v24 = vrot.slane %v1192_v7, 4 }
 0x235   : > { %v1355_v53 = vrot.slane %v835_v50, 2  ;;  %v1389_v54 = vadd.f32 %v1357_v45, %v835_v50  ;;  %v837_v55 = vpop.f32.mrb[3].mxu0  ;;  %v1403_v56 = vrot.slane %v835_v50, 4 }
 0x236   : > { %v1356_v58 = vrot.slane %v837_v55, 2  ;;  %v1390_v59 = vadd.f32 %v1358_v47, %v837_v55  ;;  %v1404_v60 = vrot.slane %v837_v55, 4  ;;  %v1332_v20 = vpop.f32.mrb[8].mxu1 }
 0x237   : > { %v1435_v62 = vadd.f32 %v1403_v56, %v1385_v43  ;;  %v1387_v0 = vadd.f32 %v1355_v53, %v764_v36  ;;  %v1334_v26 = vpop.f32.mrb[9].mxu1 }
 0x238   : > { %v1388_v2 = vadd.f32 %v1356_v58, %v766_v37  ;;  %v977_v3 = vpop.f32.mrb[4].mxu0  ;;  %v1436_v5 = vadd.f32 %v1404_v60, %v1386_v46  ;;  %v1418_v42 = vrot.slane %v1334_v26, 4 }
 0x239   : > { %v1359_v8 = vrot.slane %v977_v3, 2  ;;  %v1407_v9 = vrot.slane %v977_v3, 4  ;;  %1451 = vrot.lane.b32.xlu0 %v1435_v62, %s12331_s14  ;;  %v979_v10 = vpop.f32.mrb[5].mxu0  ;;  %v1393_v11 = vadd.f32 %v1361_v57, %v977_v3  ;;  %v1437_v12 = vadd.f32 %v1405_v52, %v1387_v0 }
 0x23a   : > { %v1360_v13 = vrot.slane %v979_v10, 2  ;;  %v1408_v14 = vrot.slane %v979_v10, 4  ;;  %v1394_v15 = vadd.f32 %v1362_v61, %v979_v10  ;;  %v1438_v16 = vadd.f32 %v1406_v49, %v1388_v2  ;;  %v1765_v38 = vpop.f32.mrb[10].mxu1 }
 0x23b   : > { %v1391_v17 = vadd.f32 %v1359_v8, %v906_v40  ;;  %1455 = vrot.lane.b32.xlu1 %v1437_v12, %s12331_s14  ;;  %v1439_v18 = vadd.f32 %v1407_v9, %v1389_v54  ;;  %v1767_v44 = vpop.f32.mrb[11].mxu1  ;;  %v2354_v50 = vrot.slane %v1765_v38, 2 }
 0x23c   : > { %v1392_v21 = vadd.f32 %v1360_v13, %v908_v41  ;;  %v1119_v22 = vpop.f32.mrb[6].mxu0  ;;  %v1440_v25 = vadd.f32 %v1408_v14, %v1390_v59  ;;  %v1417_v41 = vrot.slane %v1332_v20, 4  ;;  %v2355_v54 = vrot.slane %v1767_v44, 2 }
 0x23d   : > { %1453 = vrot.lane.b32.xlu0 %v1436_v5, %s12331_s14  ;;  %v1363_v27 = vrot.slane %v1119_v22, 2  ;;  %v1411_v28 = vrot.slane %v1119_v22, 4  ;;  %v1121_v29 = vpop.f32.mrb[7].mxu0  ;;  %v1397_v30 = vadd.f32 %v1365_v6, %v1119_v22  ;;  %v1441_v31 = vadd.f32 %v1409_v63, %v1391_v17 }
 0x23e   : > { %v1364_v32 = vrot.slane %v1121_v29, 2  ;;  %v1412_v33 = vrot.slane %v1121_v29, 4  ;;  %v1398_v34 = vadd.f32 %v1366_v19, %v1121_v29  ;;  %v1442_v35 = vadd.f32 %v1410_v4, %v1392_v21  ;;  %v1907_v56 = vpop.f32.mrb[12].mxu1 }
 0x23f   : > { %v1395_v36 = vadd.f32 %v1363_v27, %v1048_v48  ;;  %1457 = vrot.lane.b32.xlu1 %v1438_v16, %s12331_s14  ;;  %v1443_v37 = vadd.f32 %v1411_v28, %v1393_v11  ;;  %v1909_v60 = vpop.f32.mrb[13].mxu1  ;;  %v2358_v0 = vrot.slane %v1907_v56, 2  ;;  %v2406_v6 = vrot.slane %v1907_v56, 4 }
 0x240   : > { %v1396_v39 = vadd.f32 %v1364_v32, %v1050_v51  ;;  %v1261_v40 = vpop.f32.mrb[8].mxu0  ;;  %v1444_v43 = vadd.f32 %v1412_v33, %v1394_v15  ;;  %v2359_v4 = vrot.slane %v1909_v60, 2 }
 0x241   : > { %1459 = vrot.lane.b32.xlu0 %v1439_v18, %s12331_s14  ;;  %v1367_v45 = vrot.slane %v1261_v40, 2  ;;  %v1415_v46 = vrot.slane %v1261_v40, 4  ;;  %v1263_v47 = vpop.f32.mrb[9].mxu0  ;;  %v1445_v49 = vadd.f32 %v1413_v23, %v1395_v36 }
 0x242   : > { %v1368_v52 = vrot.slane %v1263_v47, 2  ;;  %v1416_v53 = vrot.slane %v1263_v47, 4  ;;  %v1446_v48 = vadd.f32 %v1414_v24, %v1396_v39 }
 0x243   : > { %1461 = vrot.lane.b32.xlu1 %v1440_v25, %s12331_s14  ;;  %v1399_v55 = vadd.f32 %v1367_v45, %v1190_v1  ;;  %v1447_v51 = vadd.f32 %v1415_v46, %v1397_v30  ;;  %v2049_v1 = vpop.f32.mrb[14].mxu1 }
 0x244   : > { %v1400_v57 = vadd.f32 %v1368_v52, %v1192_v7  ;;  %v13319_v58 = vadd.f32 %v1416_v53, %v1398_v34  ;;  %v1694_v59 = vpop.f32.mrb[10].mxu0  ;;  %v2407_v7 = vrot.slane %v1909_v60, 4  ;;  %v2051_v8 = vpop.f32.mrb[15].mxu1  ;;  %v2362_v13 = vrot.slane %v2049_v1, 2 }
 0x245   : > { %1463 = vrot.lane.b32.xlu0 %v1441_v31, %s12331_s14  ;;  %v13322_v61 = vadd.f32 %v1417_v41, %v1399_v55  ;;  %v2386_v62 = vadd.f32 %v2354_v50, %v1694_v59  ;;  %v1696_v63 = vpop.f32.mrb[11].mxu0  ;;  %v2363_v17 = vrot.slane %v2051_v8, 2  ;;  %v2410_v19 = vrot.slane %v2049_v1, 4 }
 0x246   : > { %v13324_v2 = vadd.f32 %v1418_v42, %v1400_v57  ;;  %v2387_v3 = vadd.f32 %v2355_v54, %v1696_v63  ;;  %v2191_v21 = vpop.f32.mrb[16].mxu1  ;;  %v2411_v24 = vrot.slane %v2051_v8, 4 }
 0x247   : > { %1465 = vrot.lane.b32.xlu1 %v1442_v35, %s12331_s14  ;;  %v2366_v26 = vrot.slane %v2191_v21, 2  ;;  %v2193_v27 = vpop.f32.mrb[17].mxu1 }
 0x248   : > { %v1836_v5 = vpop.f32.mrb[12].mxu0  ;;  %v2367_v39 = vrot.slane %v2193_v27, 2 }
 0x249   : > { %1467 = vrot.lane.b32.xlu0 %v1443_v37, %s12331_s14  ;;  %v2356_v9 = vrot.slane %v1836_v5, 2  ;;  %v2404_v10 = vrot.slane %v1836_v5, 4  ;;  %v1838_v11 = vpop.f32.mrb[13].mxu0  ;;  %v2390_v12 = vadd.f32 %v2358_v0, %v1836_v5 }
 0x24a   : > { %v2357_v14 = vrot.slane %v1838_v11, 2  ;;  %v2405_v15 = vrot.slane %v1838_v11, 4  ;;  %v2391_v16 = vadd.f32 %v2359_v4, %v1838_v11  ;;  %v2333_v40 = vpop.f32.mrb[18].mxu1 }
 0x24b   : > { %1469 = vrot.lane.b32.xlu1 %v1444_v43, %s12331_s14  ;;  %v2388_v18 = vadd.f32 %v2356_v9, %v1765_v38  ;;  %v13329_v20 = vadd.f32 %v2404_v10, %v2386_v62  ;;  %v2414_v43 = vrot.slane %v2191_v21, 4  ;;  %v2335_v46 = vpop.f32.mrb[19].mxu1  ;;  %v2418_v63 = vrot.slane %v2333_v40, 4 }
 0x24c   : > { %v2389_v22 = vadd.f32 %v2357_v14, %v1767_v44  ;;  %v1978_v23 = vpop.f32.mrb[14].mxu0  ;;  %v13331_v25 = vadd.f32 %v2405_v15, %v2387_v3  ;;  %v2415_v44 = vrot.slane %v2193_v27, 4  ;;  %v2419_v0 = vrot.slane %v2335_v46, 4 }
 0x24d   : > { %1471 = vrot.lane.b32.xlu0 %v1445_v49, %s12331_s14  ;;  %v2360_v28 = vrot.slane %v1978_v23, 2  ;;  %v2408_v29 = vrot.slane %v1978_v23, 4  ;;  %v1980_v30 = vpop.f32.mrb[15].mxu0  ;;  %v2394_v31 = vadd.f32 %v2362_v13, %v1978_v23  ;;  %v13334_v32 = vadd.f32 %v2406_v6, %v2388_v18 }
 0x24e   : > { %v2361_v33 = vrot.slane %v1980_v30, 2  ;;  %v2409_v34 = vrot.slane %v1980_v30, 4  ;;  %v2395_v35 = vadd.f32 %v2363_v17, %v1980_v30  ;;  %v13336_v36 = vadd.f32 %v2407_v7, %v2389_v22 }
 0x24f   : > { %1473 = vrot.lane.b32.xlu1 %v1446_v48, %s12331_s14  ;;  %v2392_v37 = vadd.f32 %v2360_v28, %v1907_v56  ;;  %v13339_v38 = vadd.f32 %v2408_v29, %v2390_v12 }
 0x250   : > { %v2393_v41 = vadd.f32 %v2361_v33, %v1909_v60  ;;  %v2120_v42 = vpop.f32.mrb[16].mxu0  ;;  %v13341_v45 = vadd.f32 %v2409_v34, %v2391_v16  ;;  %v2765_v60 = vpop.f32.mrb[20].mxu1 }
 0x251   : > { %1475 = vrot.lane.b32.xlu0 %v1447_v51, %s12331_s14  ;;  %v2364_v47 = vrot.slane %v2120_v42, 2  ;;  %v2412_v49 = vrot.slane %v2120_v42, 4  ;;  %v2122_v50 = vpop.f32.mrb[17].mxu0  ;;  %v2398_v52 = vadd.f32 %v2366_v26, %v2120_v42  ;;  %v13344_v53 = vadd.f32 %v2410_v19, %v2392_v37  ;;  %v2767_v4 = vpop.f32.mrb[21].mxu1 }
 0x252   : > { %v2365_v48 = vrot.slane %v2122_v50, 2  ;;  %v2413_v54 = vrot.slane %v2122_v50, 4  ;;  %v2399_v55 = vadd.f32 %v2367_v39, %v2122_v50  ;;  %v13346_v56 = vadd.f32 %v2411_v24, %v2393_v41  ;;  %v2907_v14 = vpop.f32.mrb[22].mxu1 }
 0x253   : > { %1477 = vrot.lane.b32.xlu1 %v13319_v58, %s12331_s14  ;;  %v2396_v57 = vadd.f32 %v2364_v47, %v2049_v1  ;;  %v13350_v59 = vadd.f32 %v2412_v49, %v2394_v31  ;;  %v3354_v58 = vrot.slane %v2765_v60, 2  ;;  %v2909_v17 = vpop.f32.mrb[23].mxu1  ;;  %v3358_v23 = vrot.slane %v2907_v14, 2 }
 0x254   : > { %v2397_v62 = vadd.f32 %v2365_v48, %v2051_v8  ;;  %v2262_v51 = vpop.f32.mrb[18].mxu0  ;;  %v13352_v3 = vadd.f32 %v2413_v54, %v2395_v35  ;;  %v3355_v8 = vrot.slane %v2767_v4, 2  ;;  %v3406_v28 = vrot.slane %v2907_v14, 4 }
 0x255   : > { %1479 = vrot.lane.b32.xlu0 %v13322_v61, %s12331_s14  ;;  %v2368_v5 = vrot.slane %v2262_v51, 2  ;;  %v2416_v6 = vrot.slane %v2262_v51, 4  ;;  %v2264_v7 = vpop.f32.mrb[19].mxu0  ;;  %v13356_v9 = vadd.f32 %v2414_v43, %v2396_v57  ;;  %v3407_v29 = vrot.slane %v2909_v17, 4 }
 0x256   : > { %v2369_v1 = vrot.slane %v2264_v7, 2  ;;  %v2417_v10 = vrot.slane %v2264_v7, 4  ;;  %v13358_v11 = vadd.f32 %v2415_v44, %v2397_v62  ;;  %v3049_v26 = vpop.f32.mrb[24].mxu1 }
 0x257   : > { %1481 = vrot.lane.b32.xlu1 %v13324_v2, %s12331_s14  ;;  %v2400_v12 = vadd.f32 %v2368_v5, %v2191_v21  ;;  %v13362_v13 = vadd.f32 %v2416_v6, %v2398_v52  ;;  %v3359_v21 = vrot.slane %v2909_v17, 2  ;;  %v3051_v30 = vpop.f32.mrb[25].mxu1  ;;  %v3362_v35 = vrot.slane %v3049_v26, 2  ;;  %s14879_s14 = sld [smem:[#allocation12 + %s14864_s1]] }
 0x258   : > { %v2401_v15 = vadd.f32 %v2369_v1, %v2193_v27  ;;  %v13364_v61 = vadd.f32 %v2417_v10, %v2399_v55  ;;  %v2694_v16 = vpop.f32.mrb[20].mxu0  ;;  %v3363_v41 = vrot.slane %v3051_v30, 2  ;;  %v3410_v47 = vrot.slane %v3049_v26, 4 }
 0x259   : > { %2452 = vrot.lane.b32.xlu0 %v13329_v20, %s12332_s26  ;;  %v13368_v18 = vadd.f32 %v2418_v63, %v2400_v12  ;;  %v3386_v19 = vadd.f32 %v3354_v58, %v2694_v16  ;;  %v2696_v22 = vpop.f32.mrb[21].mxu0 }
 0x25a   : > { %v13370_v24 = vadd.f32 %v2419_v0, %v2401_v15  ;;  %v3387_v2 = vadd.f32 %v3355_v8, %v2696_v22  ;;  %v3191_v43 = vpop.f32.mrb[26].mxu1  ;;  %v3411_v0 = vrot.slane %v3051_v30, 4 }
 0x25b   : > { %2454 = vrot.lane.b32.xlu1 %v13331_v25, %s12332_s26  ;;  %v3366_v49 = vrot.slane %v3191_v43, 2  ;;  %v3193_v50 = vpop.f32.mrb[27].mxu1  ;;  %v3414_v58 = vrot.slane %v3191_v43, 4 }
 0x25c   : > { %v2836_v27 = vpop.f32.mrb[22].mxu0 }
 0x25d   : > { %2456 = vrot.lane.b32.xlu0 %v13334_v32, %s12332_s26  ;;  %v3356_v20 = vrot.slane %v2836_v27, 2  ;;  %v3404_v31 = vrot.slane %v2836_v27, 4  ;;  %v2838_v33 = vpop.f32.mrb[23].mxu0  ;;  %v3390_v34 = vadd.f32 %v3358_v23, %v2836_v27 }
 0x25e   : > { %v3357_v37 = vrot.slane %v2838_v33, 2  ;;  %v3405_v39 = vrot.slane %v2838_v33, 4  ;;  %v3391_v40 = vadd.f32 %v3359_v21, %v2838_v33 }
 0x25f   : > { %2458 = vrot.lane.b32.xlu1 %v13336_v36, %s12332_s26  ;;  %v3388_v25 = vadd.f32 %v3356_v20, %v2765_v60  ;;  %v13378_v42 = vadd.f32 %v3404_v31, %v3386_v19 }
 0x260   : > { %v3389_v44 = vadd.f32 %v3357_v37, %v2767_v4  ;;  %v2978_v46 = vpop.f32.mrb[24].mxu0  ;;  %v13380_v32 = vadd.f32 %v3405_v39, %v3387_v2  ;;  %v3367_v4 = vrot.slane %v3193_v50, 2 }
 0x261   : > { %2460 = vrot.lane.b32.xlu0 %v13339_v38, %s12332_s26  ;;  %v3360_v52 = vrot.slane %v2978_v46, 2  ;;  %v3408_v48 = vrot.slane %v2978_v46, 4  ;;  %v2980_v54 = vpop.f32.mrb[25].mxu0  ;;  %v3394_v55 = vadd.f32 %v3362_v35, %v2978_v46  ;;  %v13384_v57 = vadd.f32 %v3406_v28, %v3388_v25  ;;  %v3333_v38 = vpop.f32.mrb[28].mxu1 }
 0x262   : > { %v3361_v36 = vrot.slane %v2980_v54, 2  ;;  %v3409_v60 = vrot.slane %v2980_v54, 4  ;;  %v3395_v62 = vadd.f32 %v3363_v41, %v2980_v54  ;;  %v13386_v51 = vadd.f32 %v3407_v29, %v3389_v44  ;;  %v3335_v10 = vpop.f32.mrb[29].mxu1 }
 0x263   : > { %2462 = vrot.lane.b32.xlu1 %v13341_v45, %s12332_s26  ;;  %v3392_v63 = vadd.f32 %v3360_v52, %v2907_v14  ;;  %v13390_v5 = vadd.f32 %v3408_v48, %v3390_v34  ;;  %v3415_v45 = vrot.slane %v3193_v50, 4  ;;  %v3765_v2 = vpop.f32.mrb[30].mxu1  ;;  %v3418_v29 = vrot.slane %v3333_v38, 4 }
 0x264   : > { %v3393_v6 = vadd.f32 %v3361_v36, %v2909_v17  ;;  %v3120_v7 = vpop.f32.mrb[26].mxu0  ;;  %v13392_v1 = vadd.f32 %v3409_v60, %v3391_v40  ;;  %v3419_v20 = vrot.slane %v3335_v10, 4  ;;  %v3767_v31 = vpop.f32.mrb[31].mxu1 }
 0x265   : > { %2464 = vrot.lane.b32.xlu0 %v13344_v53, %s12332_s26  ;;  %v3364_v8 = vrot.slane %v3120_v7, 2  ;;  %v3412_v12 = vrot.slane %v3120_v7, 4  ;;  %v3122_v15 = vpop.f32.mrb[27].mxu0  ;;  %v3398_v16 = vadd.f32 %v3366_v49, %v3120_v7  ;;  %v13396_v23 = vadd.f32 %v3410_v47, %v3392_v63 }
 0x266   : > { %v3365_v14 = vrot.slane %v3122_v15, 2  ;;  %v3413_v19 = vrot.slane %v3122_v15, 4  ;;  %v3399_v22 = vadd.f32 %v3367_v4, %v3122_v15  ;;  %v13400_v21 = vadd.f32 %v3411_v0, %v3393_v6  ;;  %v3907_v46 = vpop.f32.mrb[32].mxu1 }
 0x267   : > { %2466 = vrot.lane.b32.xlu1 %v13346_v56, %s12332_s26  ;;  %v3396_v17 = vadd.f32 %v3364_v8, %v3049_v26  ;;  %v13402_v27 = vadd.f32 %v3412_v12, %v3394_v55  ;;  %v4354_v56 = vrot.slane %v3765_v2, 2  ;;  %v4355_v41 = vrot.slane %v3767_v31, 2  ;;  %v3909_v52 = vpop.f32.mrb[33].mxu1 }
 0x268   : > { %v3397_v53 = vadd.f32 %v3365_v14, %v3051_v30  ;;  %v3262_v28 = vpop.f32.mrb[28].mxu0  ;;  %v13404_v33 = vadd.f32 %v3413_v19, %v3395_v62  ;;  %v4358_v36 = vrot.slane %v3907_v46, 2  ;;  %v4407_v15 = vrot.slane %v3909_v52, 4 }
 0x269   : > { %2468 = vrot.lane.b32.xlu0 %v13350_v59, %s12332_s26  ;;  %v3368_v34 = vrot.slane %v3262_v28, 2  ;;  %v3416_v35 = vrot.slane %v3262_v28, 4  ;;  %v3264_v37 = vpop.f32.mrb[29].mxu0  ;;  %v13408_v26 = vadd.f32 %v3414_v58, %v3396_v17 }
 0x26a   : > { %v3369_v39 = vrot.slane %v3264_v37, 2  ;;  %v3417_v40 = vrot.slane %v3264_v37, 4  ;;  %v13410_v25 = vadd.f32 %v3415_v45, %v3397_v53 }
 0x26b   : > { %2470 = vrot.lane.b32.xlu1 %v13352_v3, %s12332_s26  ;;  %v3400_v30 = vadd.f32 %v3368_v34, %v3191_v43  ;;  %v13414_v44 = vadd.f32 %v3416_v35, %v3398_v16  ;;  %v4359_v43 = vrot.slane %v3909_v52, 2 }
 0x26c   : > { %v3401_v47 = vadd.f32 %v3369_v39, %v3193_v50  ;;  %v13416_v59 = vadd.f32 %v3417_v40, %v3399_v22  ;;  %v3694_v49 = vpop.f32.mrb[30].mxu0  ;;  %v4049_v50 = vpop.f32.mrb[34].mxu1 }
 0x26d   : > { %2472 = vrot.lane.b32.xlu0 %v13356_v9, %s12332_s26  ;;  %v13420_v48 = vadd.f32 %v3418_v29, %v3400_v30  ;;  %v4386_v54 = vadd.f32 %v4354_v56, %v3694_v49  ;;  %v3696_v55 = vpop.f32.mrb[31].mxu0  ;;  %v4051_v63 = vpop.f32.mrb[35].mxu1  ;;  %v4362_v6 = vrot.slane %v4049_v50, 2  ;;  %v4410_v19 = vrot.slane %v4049_v50, 4 }
 0x26e   : > { %v13422_v60 = vadd.f32 %v3419_v20, %v3401_v47  ;;  %v4387_v3 = vadd.f32 %v4355_v41, %v3696_v55  ;;  %v4363_v8 = vrot.slane %v4051_v63, 2  ;;  %v4191_v16 = vpop.f32.mrb[36].mxu1  ;;  %v4411_v22 = vrot.slane %v4051_v63, 4 }
 0x26f   : > { %2474 = vrot.lane.b32.xlu1 %v13358_v11, %s12332_s26  ;;  %v4406_v11 = vrot.slane %v3907_v46, 4  ;;  %v4193_v17 = vpop.f32.mrb[37].mxu1  ;;  %v4414_v49 = vrot.slane %v4191_v16, 4 }
 0x270   : > { %v3836_v62 = vpop.f32.mrb[32].mxu0  ;;  %v4367_v56 = vrot.slane %v4193_v17, 2 }
 0x271   : > { %2476 = vrot.lane.b32.xlu0 %v13362_v13, %s12332_s26  ;;  %v4356_v0 = vrot.slane %v3836_v62, 2  ;;  %v4404_v9 = vrot.slane %v3836_v62, 4  ;;  %v3838_v4 = vpop.f32.mrb[33].mxu0  ;;  %v4390_v38 = vadd.f32 %v4358_v36, %v3836_v62 }
 0x272   : > { %v4357_v7 = vrot.slane %v3838_v4, 2  ;;  %v4405_v58 = vrot.slane %v3838_v4, 4  ;;  %v4391_v10 = vadd.f32 %v4359_v43, %v3838_v4  ;;  %v4333_v39 = vpop.f32.mrb[38].mxu1  ;;  %v4415_v43 = vrot.slane %v4193_v17, 4 }
 0x273   : > { %2478 = vrot.lane.b32.xlu1 %v13364_v61, %s12332_s26  ;;  %v4388_v12 = vadd.f32 %v4356_v0, %v3765_v2  ;;  %v13430_v45 = vadd.f32 %v4404_v9, %v4386_v54  ;;  %v4366_v2 = vrot.slane %v4191_v16, 2  ;;  %v4335_v54 = vpop.f32.mrb[39].mxu1 }
 0x274   : > { %v4389_v14 = vadd.f32 %v4357_v7, %v3767_v31  ;;  %v3978_v13 = vpop.f32.mrb[34].mxu0  ;;  %v13432_v53 = vadd.f32 %v4405_v58, %v4387_v3 }
 0x275   : > { %2480 = vrot.lane.b32.xlu0 %v13368_v18, %s12332_s26  ;;  %v4360_v28 = vrot.slane %v3978_v13, 2  ;;  %v4408_v29 = vrot.slane %v3978_v13, 4  ;;  %v3980_v20 = vpop.f32.mrb[35].mxu0  ;;  %v4394_v61 = vadd.f32 %v4362_v6, %v3978_v13  ;;  %v13438_v40 = vadd.f32 %v4406_v11, %v4388_v12 }
 0x276   : > { %v4361_v34 = vrot.slane %v3980_v20, 2  ;;  %v4409_v35 = vrot.slane %v3980_v20, 4  ;;  %v4395_v37 = vadd.f32 %v4363_v8, %v3980_v20  ;;  %v13440_v41 = vadd.f32 %v4407_v15, %v4389_v14 }
 0x277   : > { %2482 = vrot.lane.b32.xlu1 %v13370_v24, %s12332_s26  ;;  %v4392_v31 = vadd.f32 %v4360_v28, %v3907_v46  ;;  %v13442_v30 = vadd.f32 %v4408_v29, %v4390_v38  ;;  %v4765_v38 = vpop.f32.mrb[40].mxu1  ;;  %v4419_v8 = vrot.slane %v4335_v54, 4  ;;  %s10320_s26 = sadd.s32 3, %s14864_s1 }
 0x278   : > { %v4393_v18 = vadd.f32 %v4361_v34, %v3909_v52  ;;  %v4120_v47 = vpop.f32.mrb[36].mxu0  ;;  %v13444_v55 = vadd.f32 %v4409_v35, %v4391_v10  ;;  %v4418_v10 = vrot.slane %v4333_v39, 4  ;;  %v4767_v12 = vpop.f32.mrb[41].mxu1 }
 0x279   : > { %3452 = vrot.lane.b32.xlu0 %v13378_v42, %s12333_s6  ;;  %v4364_v36 = vrot.slane %v4120_v47, 2  ;;  %v4412_v24 = vrot.slane %v4120_v47, 4  ;;  %v4122_v46 = vpop.f32.mrb[37].mxu0  ;;  %v4398_v3 = vadd.f32 %v4366_v2, %v4120_v47  ;;  %v13448_v4 = vadd.f32 %v4410_v19, %v4392_v31 }
 0x27a   : > { %v4365_v62 = vrot.slane %v4122_v46, 2  ;;  %v4413_v0 = vrot.slane %v4122_v46, 4  ;;  %v4399_v9 = vadd.f32 %v4367_v56, %v4122_v46  ;;  %v13452_v6 = vadd.f32 %v4411_v22, %v4393_v18 }
 0x27b   : > { %3454 = vrot.lane.b32.xlu1 %v13380_v32, %s12333_s6  ;;  %v4396_v52 = vadd.f32 %v4364_v36, %v4049_v50  ;;  %v13454_v7 = vadd.f32 %v4412_v24, %v4394_v61  ;;  %v5354_v32 = vrot.slane %v4765_v38, 2  ;;  %v5355_v28 = vrot.slane %v4767_v12, 2  ;;  %v4907_v61 = vpop.f32.mrb[42].mxu1 }
 0x27c   : > { %v4397_v42 = vadd.f32 %v4365_v62, %v4051_v63  ;;  %v4262_v58 = vpop.f32.mrb[38].mxu0  ;;  %v13456_v11 = vadd.f32 %v4413_v0, %v4395_v37  ;;  %v4909_v35 = vpop.f32.mrb[43].mxu1  ;;  %v5358_v39 = vrot.slane %v4907_v61, 2 }
 0x27d   : > { %3456 = vrot.lane.b32.xlu0 %v13384_v57, %s12333_s6  ;;  %v4368_v15 = vrot.slane %v4262_v58, 2  ;;  %v4416_v14 = vrot.slane %v4262_v58, 4  ;;  %v4264_v13 = vpop.f32.mrb[39].mxu0  ;;  %v13460_v50 = vadd.f32 %v4414_v49, %v4396_v52  ;;  %v5406_v49 = vrot.slane %v4907_v61, 4 }
 0x27e   : > { %v4369_v19 = vrot.slane %v4264_v13, 2  ;;  %v4417_v22 = vrot.slane %v4264_v13, 4  ;;  %v13462_v29 = vadd.f32 %v4415_v43, %v4397_v42  ;;  %v5407_v54 = vrot.slane %v4909_v35, 4 }
 0x27f   : > { %3458 = vrot.lane.b32.xlu1 %v13386_v51, %s12333_s6  ;;  %v4400_v63 = vadd.f32 %v4368_v15, %v4191_v16  ;;  %v13466_v20 = vadd.f32 %v4416_v14, %v4398_v3  ;;  %v5359_v16 = vrot.slane %v4909_v35, 2 }
 0x280   : > { %v4401_v2 = vadd.f32 %v4369_v19, %v4193_v17  ;;  %v13468_v57 = vadd.f32 %v4417_v22, %v4399_v9  ;;  %v4694_v34 = vpop.f32.mrb[40].mxu0  ;;  %v5049_v17 = vpop.f32.mrb[44].mxu1 }
 0x281   : > { %3460 = vrot.lane.b32.xlu0 %v13390_v5, %s12333_s6  ;;  %v13472_v37 = vadd.f32 %v4418_v10, %v4400_v63  ;;  %v5386_v56 = vadd.f32 %v5354_v32, %v4694_v34  ;;  %v4696_v31 = vpop.f32.mrb[41].mxu0  ;;  %v5051_v36 = vpop.f32.mrb[45].mxu1  ;;  %v5362_v43 = vrot.slane %v5049_v17, 2  ;;  %v5410_v58 = vrot.slane %v5049_v17, 4 }
 0x282   : > { %v13474_v18 = vadd.f32 %v4419_v8, %v4401_v2  ;;  %v5387_v51 = vadd.f32 %v5355_v28, %v4696_v31  ;;  %v5363_v52 = vrot.slane %v5051_v36, 2  ;;  %v5191_v10 = vpop.f32.mrb[46].mxu1  ;;  %v5411_v14 = vrot.slane %v5051_v36, 4 }
 0x283   : > { %3462 = vrot.lane.b32.xlu1 %v13392_v1, %s12333_s6  ;;  %v5366_v13 = vrot.slane %v5191_v10, 2  ;;  %v5193_v32 = vpop.f32.mrb[47].mxu1 }
 0x284   : > { %v4836_v47 = vpop.f32.mrb[42].mxu0 }
 0x285   : > { %3464 = vrot.lane.b32.xlu0 %v13396_v23, %s12333_s6  ;;  %v5356_v5 = vrot.slane %v4836_v47, 2  ;;  %v5404_v24 = vrot.slane %v4836_v47, 4  ;;  %v4838_v46 = vpop.f32.mrb[43].mxu0  ;;  %v5390_v3 = vadd.f32 %v5358_v39, %v4836_v47  ;;  %v5367_v39 = vrot.slane %v5193_v32, 2 }
 0x286   : > { %v5357_v62 = vrot.slane %v4838_v46, 2  ;;  %v5405_v0 = vrot.slane %v4838_v46, 4  ;;  %v5391_v9 = vadd.f32 %v5359_v16, %v4838_v46 }
 0x287   : > { %3466 = vrot.lane.b32.xlu1 %v13400_v21, %s12333_s6  ;;  %v5388_v1 = vadd.f32 %v5356_v5, %v4765_v38  ;;  %v13482_v42 = vadd.f32 %v5404_v24, %v5386_v56  ;;  %v5415_v5 = vrot.slane %v5193_v32, 4 }
 0x288   : > { %v5389_v8 = vadd.f32 %v5357_v62, %v4767_v12  ;;  %v13484_v15 = vadd.f32 %v5405_v0, %v5387_v51  ;;  %v4978_v23 = vpop.f32.mrb[44].mxu0  ;;  %v5333_v51 = vpop.f32.mrb[48].mxu1 }
 0x289   : > { %16446 = vst [vmem:[#allocation42_spill] sm:$0xff] %v13482_v42  ;;  %3468 = vrot.lane.b32.xlu0 %v13402_v27, %s12333_s6  ;;  %v13488_v19 = vadd.f32 %v5406_v49, %v5388_v1  ;;  %v5360_v22 = vrot.slane %v4978_v23, 2  ;;  %v5408_v28 = vrot.slane %v4978_v23, 4  ;;  %v4980_v21 = vpop.f32.mrb[45].mxu0  ;;  %v5394_v38 = vadd.f32 %v5362_v43, %v4978_v23  ;;  %v5335_v24 = vpop.f32.mrb[49].mxu1 }
 0x28a   : > { %16447 = vst [vmem:[#allocation43_spill] sm:$0xff] %v13484_v15  ;;  %v13490_v63 = vadd.f32 %v5407_v54, %v5389_v8  ;;  %v5361_v2 = vrot.slane %v4980_v21, 2  ;;  %v5409_v34 = vrot.slane %v4980_v21, 4  ;;  %v5395_v12 = vadd.f32 %v5363_v52, %v4980_v21  ;;  %v5610_v1 = vpop.f32.mrb[50].mxu1 }
 0x28b   : > { %16448 = vst [vmem:[#allocation44_spill] sm:$0xff] %v13488_v19  ;;  %3470 = vrot.lane.b32.xlu1 %v13404_v33, %s12333_s6  ;;  %v5392_v56 = vadd.f32 %v5360_v22, %v4907_v61  ;;  %v13494_v31 = vadd.f32 %v5408_v28, %v5390_v3  ;;  %v5414_v49 = vrot.slane %v5191_v10, 4  ;;  %v5418_v23 = vrot.slane %v5333_v51, 4  ;;  %v5612_v28 = vpop.f32.mrb[51].mxu1 }
 0x28c   : > { %16449 = vst [vmem:[#allocation45_spill] sm:$0xff] %v13490_v63  ;;  %v5393_v27 = vadd.f32 %v5361_v2, %v4909_v35  ;;  %v13496_v16 = vadd.f32 %v5409_v34, %v5391_v9  ;;  %v5120_v47 = vpop.f32.mrb[46].mxu0  ;;  %v5419_v22 = vrot.slane %v5335_v24, 4 }
 0x28d   : > { %16450 = vst [vmem:[#allocation46_spill] sm:$0xff] %v13494_v31  ;;  %3472 = vrot.lane.b32.xlu0 %v13408_v26, %s12333_s6  ;;  %v13500_v54 = vadd.f32 %v5410_v58, %v5392_v56  ;;  %v5364_v46 = vrot.slane %v5120_v47, 2  ;;  %v5412_v43 = vrot.slane %v5120_v47, 4  ;;  %v5122_v33 = vpop.f32.mrb[47].mxu0  ;;  %v5398_v61 = vadd.f32 %v5366_v13, %v5120_v47 }
 0x28e   : > { %16451 = vst [vmem:[#allocation47_spill] sm:$0xff] %v13496_v16  ;;  %v13502_v3 = vadd.f32 %v5411_v14, %v5393_v27  ;;  %v5365_v62 = vrot.slane %v5122_v33, 2  ;;  %v5413_v0 = vrot.slane %v5122_v33, 4  ;;  %v5399_v35 = vadd.f32 %v5367_v39, %v5122_v33  ;;  %v5752_v39 = vpop.f32.mrb[52].mxu1 }
 0x28f   : > { %16452 = vst [vmem:[#allocation48_spill] sm:$0xff] %v13500_v54  ;;  %3474 = vrot.lane.b32.xlu1 %v13410_v25, %s12333_s6  ;;  %v5396_v9 = vadd.f32 %v5364_v46, %v5049_v17  ;;  %v13506_v52 = vadd.f32 %v5412_v43, %v5394_v38  ;;  %v6199_v25 = vrot.slane %v5610_v1, 2  ;;  %v5754_v47 = vpop.f32.mrb[53].mxu1  ;;  %v6203_v46 = vrot.slane %v5752_v39, 2 }
 0x290   : > { %16453 = vst [vmem:[#allocation49_spill] sm:$0xff] %v13502_v3  ;;  %v5397_v8 = vadd.f32 %v5365_v62, %v5051_v36  ;;  %v13508_v26 = vadd.f32 %v5413_v0, %v5395_v12  ;;  %v5262_v58 = vpop.f32.mrb[48].mxu0  ;;  %v6200_v36 = vrot.slane %v5612_v28, 2  ;;  %v6252_v62 = vrot.slane %v5754_v47, 4 }
 0x291   : > { %16454 = vst [vmem:[#allocation50_spill] sm:$0xff] %v13506_v52  ;;  %3476 = vrot.lane.b32.xlu0 %v13414_v44, %s12333_s6  ;;  %v13512_v14 = vadd.f32 %v5414_v49, %v5396_v9  ;;  %v5368_v13 = vrot.slane %v5262_v58, 2  ;;  %v5416_v21 = vrot.slane %v5262_v58, 4  ;;  %v5264_v2 = vpop.f32.mrb[49].mxu0 }
 0x292   : > { %16455 = vst [vmem:[#allocation51_spill] sm:$0xff] %v13508_v26  ;;  %v13514_v17 = vadd.f32 %v5415_v5, %v5397_v8  ;;  %v5369_v38 = vrot.slane %v5264_v2, 2  ;;  %v5417_v34 = vrot.slane %v5264_v2, 4 }
 0x293   : > { %16456 = vst [vmem:[#allocation52_spill] sm:$0xff] %v13512_v14  ;;  %3478 = vrot.lane.b32.xlu1 %v13416_v59, %s12333_s6  ;;  %v5400_v12 = vadd.f32 %v5368_v13, %v5191_v10  ;;  %v13518_v56 = vadd.f32 %v5416_v21, %v5398_v61  ;;  %v6204_v10 = vrot.slane %v5754_v47, 2  ;;  %v6251_v61 = vrot.slane %v5752_v39, 4 }
 0x294   : > { %16457 = vst [vmem:[#allocation53_spill] sm:$0xff] %v13514_v17  ;;  %v5401_v51 = vadd.f32 %v5369_v38, %v5193_v32  ;;  %v13520_v44 = vadd.f32 %v5417_v34, %v5399_v35  ;;  %v5539_v27 = vpop.f32.mrb[50].mxu0  ;;  %v5894_v32 = vpop.f32.mrb[54].mxu1 }
 0x295   : > { %16458 = vst [vmem:[#allocation54_spill] sm:$0xff] %v13518_v56  ;;  %3480 = vrot.lane.b32.xlu0 %v13420_v48, %s12333_s6  ;;  %v13524_v49 = vadd.f32 %v5418_v23, %v5400_v12  ;;  %v6231_v5 = vadd.f32 %v6199_v25, %v5539_v27  ;;  %v5541_v24 = vpop.f32.mrb[51].mxu0  ;;  %v5896_v0 = vpop.f32.mrb[55].mxu1  ;;  %v6207_v58 = vrot.slane %v5894_v32, 2  ;;  %v6255_v2 = vrot.slane %v5894_v32, 4 }
 0x296   : > { %16459 = vst [vmem:[#allocation55_spill] sm:$0xff] %v13520_v44  ;;  %v13526_v43 = vadd.f32 %v5419_v22, %v5401_v51  ;;  %v6232_v59 = vadd.f32 %v6200_v36, %v5541_v24  ;;  %v6208_v21 = vrot.slane %v5896_v0, 2  ;;  %v6036_v38 = vpop.f32.mrb[56].mxu1 }
 0x297   : > { %16460 = vst [vmem:[#allocation56_spill] sm:$0xff] %v13524_v49  ;;  %3482 = vrot.lane.b32.xlu1 %v13422_v60, %s12333_s6  ;;  %v6211_v51 = vrot.slane %v6036_v38, 2  ;;  %v6038_v27 = vpop.f32.mrb[57].mxu1  ;;  %s10485_s6 = sadd.s32 4, %s14864_s1 }
 0x298   : > { %16461 = vst [vmem:[#allocation57_spill] sm:$0xff] %v13526_v43  ;;  %v5681_v33 = vpop.f32.mrb[52].mxu0  ;;  %v6259_v43 = vrot.slane %v6036_v38, 4  ;;  %v6260_v42 = vrot.slane %v6038_v27, 4 }
 0x299   : > { %4452 = vrot.lane.b32.xlu0 %v13430_v45, %s12334_s25  ;;  %v6201_v48 = vrot.slane %v5681_v33, 2  ;;  %v6249_v35 = vrot.slane %v5681_v33, 4  ;;  %v5683_v9 = vpop.f32.mrb[53].mxu0  ;;  %v6235_v8 = vadd.f32 %v6203_v46, %v5681_v33  ;;  %v6256_v45 = vrot.slane %v5896_v0, 4 }
 0x29a   : > { %v6202_v23 = vrot.slane %v5683_v9, 2  ;;  %v6250_v22 = vrot.slane %v5683_v9, 4  ;;  %v6236_v13 = vadd.f32 %v6204_v10, %v5683_v9  ;;  %v6212_v9 = vrot.slane %v6038_v27, 2 }
 0x29b   : > { %4454 = vrot.lane.b32.xlu1 %v13432_v53, %s12334_s25  ;;  %v6233_v60 = vadd.f32 %v6201_v48, %v5610_v1  ;;  %v13534_v25 = vadd.f32 %v6249_v35, %v6231_v5 }
 0x29c   : > { %v6234_v34 = vadd.f32 %v6202_v23, %v5612_v28  ;;  %v5823_v36 = vpop.f32.mrb[54].mxu0  ;;  %v13536_v12 = vadd.f32 %v6250_v22, %v6232_v59  ;;  %v6178_v23 = vpop.f32.mrb[58].mxu1 }
 0x29d   : > { %4456 = vrot.lane.b32.xlu0 %v13438_v40, %s12334_s25  ;;  %v6205_v24 = vrot.slane %v5823_v36, 2  ;;  %v6253_v46 = vrot.slane %v5823_v36, 4  ;;  %v5825_v10 = vpop.f32.mrb[55].mxu0  ;;  %v6239_v33 = vadd.f32 %v6207_v58, %v5823_v36  ;;  %v13540_v53 = vadd.f32 %v6251_v61, %v6233_v60  ;;  %v6180_v61 = vpop.f32.mrb[59].mxu1 }
 0x29e   : > { %v6206_v1 = vrot.slane %v5825_v10, 2  ;;  %v6254_v5 = vrot.slane %v5825_v10, 4  ;;  %v6240_v48 = vadd.f32 %v6208_v21, %v5825_v10  ;;  %v13542_v35 = vadd.f32 %v6252_v62, %v6234_v34 }
 0x29f   : > { %4458 = vrot.lane.b32.xlu1 %v13440_v41, %s12334_s25  ;;  %v6237_v28 = vadd.f32 %v6205_v24, %v5752_v39  ;;  %v13546_v59 = vadd.f32 %v6253_v46, %v6235_v8  ;;  %v6610_v46 = vpop.f32.mrb[60].mxu1 }
 0x2a0   : > { %v6238_v40 = vadd.f32 %v6206_v1, %v5754_v47  ;;  %v5965_v22 = vpop.f32.mrb[56].mxu0  ;;  %v13548_v58 = vadd.f32 %v6254_v5, %v6236_v13  ;;  %v6263_v1 = vrot.slane %v6178_v23, 4  ;;  %v6264_v5 = vrot.slane %v6180_v61, 4 }
 0x2a1   : > { %4460 = vrot.lane.b32.xlu0 %v13442_v30, %s12334_s25  ;;  %v6209_v62 = vrot.slane %v5965_v22, 2  ;;  %v6257_v21 = vrot.slane %v5965_v22, 4  ;;  %v5967_v60 = vpop.f32.mrb[57].mxu0  ;;  %v6243_v34 = vadd.f32 %v6211_v51, %v5965_v22  ;;  %v13552_v41 = vadd.f32 %v6255_v2, %v6237_v28  ;;  %v6612_v2 = vpop.f32.mrb[61].mxu1 }
 0x2a2   : > { %v6210_v39 = vrot.slane %v5967_v60, 2  ;;  %v6258_v8 = vrot.slane %v5967_v60, 4  ;;  %v6244_v36 = vadd.f32 %v6212_v9, %v5967_v60  ;;  %v13554_v24 = vadd.f32 %v6256_v45, %v6238_v40  ;;  %v6752_v22 = vpop.f32.mrb[62].mxu1 }
 0x2a3   : > { %4462 = vrot.lane.b32.xlu1 %v13444_v55, %s12334_s25  ;;  %v6241_v47 = vadd.f32 %v6209_v62, %v5894_v32  ;;  %v13558_v13 = vadd.f32 %v6257_v21, %v6239_v33  ;;  %v7199_v55 = vrot.slane %v6610_v46, 2  ;;  %v6754_v21 = vpop.f32.mrb[63].mxu1 }
 0x2a4   : > { %v6242_v10 = vadd.f32 %v6210_v39, %v5896_v0  ;;  %v6107_v30 = vpop.f32.mrb[58].mxu0  ;;  %v13560_v49 = vadd.f32 %v6258_v8, %v6240_v48  ;;  %v7200_v0 = vrot.slane %v6612_v2, 2  ;;  %v7203_v39 = vrot.slane %v6752_v22, 2 }
 0x2a5   : > { %4464 = vrot.lane.b32.xlu0 %v13448_v4, %s12334_s25  ;;  %v6213_v51 = vrot.slane %v6107_v30, 2  ;;  %v6261_v45 = vrot.slane %v6107_v30, 4  ;;  %v6109_v28 = vpop.f32.mrb[59].mxu0  ;;  %v13564_v9 = vadd.f32 %v6259_v43, %v6241_v47 }
 0x2a6   : > { %v6214_v32 = vrot.slane %v6109_v28, 2  ;;  %v6262_v33 = vrot.slane %v6109_v28, 4  ;;  %v13566_v40 = vadd.f32 %v6260_v42, %v6242_v10  ;;  %v1483_v10 = vlaneseq }
 0x2a7   : > { %4466 = vrot.lane.b32.xlu1 %v13452_v6, %s12334_s25  ;;  %v6245_v48 = vadd.f32 %v6213_v51, %v6036_v38  ;;  %v13570_v23 = vadd.f32 %v6261_v45, %v6243_v34  ;;  %v7204_v38 = vrot.slane %v6754_v21, 2 }
 0x2a8   : > { %v6246_v61 = vadd.f32 %v6214_v32, %v6038_v27  ;;  %v13572_v4 = vadd.f32 %v6262_v33, %v6244_v36  ;;  %v6539_v62 = vpop.f32.mrb[60].mxu0  ;;  %v13584_v27 = vpop.f32.mrb[64].mxu1  ;;  %v13627_v3 = vand.u32 127, %v1483_v10 }
 0x2a9   : > { %4468 = vrot.lane.b32.xlu0 %v13454_v7, %s12334_s25  ;;  %v13576_v43 = vadd.f32 %v6263_v1, %v6245_v48  ;;  %v7231_v42 = vadd.f32 %v7199_v55, %v6539_v62  ;;  %v6541_v60 = vpop.f32.mrb[61].mxu0  ;;  %v13586_v47 = vpop.f32.mrb[65].mxu1 }
 0x2aa   : > { %v13578_v8 = vadd.f32 %v6264_v5, %v6246_v61  ;;  %v7232_v6 = vadd.f32 %v7200_v0, %v6541_v60  ;;  %v7251_v0 = vrot.slane %v6752_v22, 4  ;;  %v13600_v61 = vpop.f32.mrb[66].mxu1  ;;  %v7252_v60 = vrot.slane %v6754_v21, 4  ;;  %16468 = vst [vmem:[#allocation64_spill] sm:$0xff] %v13627_v3 }
 0x2ab   : > { %v13580_v34 = vpop.permute.xlu0 %1451  ;;  %4470 = vrot.lane.b32.xlu1 %v13456_v11, %s12334_s25  ;;  %v7207_v11 = vrot.slane %v13584_v27, 2  ;;  %vm1485_vm1 = vcmp.lt.s32.totalorder %v13627_v3, 17  ;;  %vm2484_vm2 = vcmp.lt.s32.totalorder %v13627_v3, 16  ;;  %vm3484_vm3 = vcmp.lt.s32.totalorder %v13627_v3, 15 }
 0x2ac   : > { %16462 = vst [vmem:[#allocation58_spill] sm:$0xff] %v13580_v34  ;;  %v6681_v36 = vpop.f32.mrb[62].mxu0  ;;  %vm4484_vm4 = vcmp.lt.s32.totalorder %v13627_v3, 1  ;;  %vm6329_vm5 = vcmp.lt.s32.totalorder %v13627_v3, 127  ;;  %vm7329_vm6 = vcmp.lt.s32.totalorder %v13627_v3, 113  ;;  %vm8329_vm7 = vcmp.lt.s32.totalorder %v13627_v3, 112 }
 0x2ad   : > { %v13588_v7 = vpop.permute.xlu1 %1455  ;;  %4472 = vrot.lane.b32.xlu0 %v13460_v50, %s12334_s25  ;;  %v7201_v30 = vrot.slane %v6681_v36, 2  ;;  %v7249_v1 = vrot.slane %v6681_v36, 4  ;;  %v6683_v5 = vpop.f32.mrb[63].mxu0  ;;  %v7235_v51 = vadd.f32 %v7203_v39, %v6681_v36  ;;  %v7208_v50 = vrot.slane %v13586_v47, 2 }
 0x2ae   : > { %16463 = vst [vmem:[#allocation59_spill] sm:$0xff] %v13588_v7  ;;  %v7202_v45 = vrot.slane %v6683_v5, 2  ;;  %v7250_v28 = vrot.slane %v6683_v5, 4  ;;  %v7236_v55 = vadd.f32 %v7204_v38, %v6683_v5  ;;  %v13604_v38 = vpop.f32.mrb[67].mxu1  ;;  %vm9329_vm8 = vcmp.lt.s32.totalorder %v13627_v3, 111 }
 0x2af   : > { %v13593_v32 = vpop.permute.xlu0 %1453  ;;  %4474 = vrot.lane.b32.xlu1 %v13462_v29, %s12334_s25  ;;  %v7233_v33 = vadd.f32 %v7201_v30, %v6610_v46  ;;  %v13597_v48 = vadd.f32 %v7249_v1, %v7231_v42  ;;  %v13610_v42 = vshrl.u32 %v1483_v10, 7  ;;  %v7178_v56 = vpop.f32.mrb[68].mxu1  ;;  %v7256_v10 = vrot.slane %v13586_v47, 4 }
 0x2b0   : > { %16464 = vst [vmem:[#allocation60_spill] sm:$0xff] %v13593_v32  ;;  %v7234_v62 = vadd.f32 %v7202_v45, %v6612_v2  ;;  %v6823_v39 = vpop.f32.mrb[64].mxu0  ;;  %v13602_v36 = vadd.f32 %v7250_v28, %v7232_v6  ;;  %v13625_v52 = vpop.f32.mrb[69].mxu1 }
 0x2b1   : > { %v13606_v5 = vpop.permute.xlu1 %1457  ;;  %4476 = vrot.lane.b32.xlu0 %v13466_v20, %s12334_s25  ;;  %v7205_v29 = vrot.slane %v6823_v39, 2  ;;  %v6825_v46 = vpop.f32.mrb[65].mxu0  ;;  %16466 = vst [vmem:[#allocation62_spill] sm:$0xff] %v13610_v42  ;;  %v13612_v1 = vadd.f32 %v7207_v11, %v6823_v39  ;;  %v7253_v6 = vrot.slane %v6823_v39, 4  ;;  %v13620_v28 = vadd.f32 %v7251_v0, %v7233_v33 }
 0x2b2   : > { %16465 = vst [vmem:[#allocation61_spill] sm:$0xff] %v13606_v5  ;;  %v7206_v30 = vrot.slane %v6825_v46, 2  ;;  %v13618_v45 = vadd.f32 %v7208_v50, %v6825_v46  ;;  %v7254_v17 = vrot.slane %v6825_v46, 4  ;;  %v13622_v26 = vadd.f32 %v7252_v60, %v7234_v62  ;;  %v13649_v46 = vpop.f32.mrb[70].mxu1 }
 0x2b3   : > { %v13614_v44 = vpop.permute.xlu0 %1459  ;;  %4478 = vrot.lane.b32.xlu1 %v13468_v57, %s12334_s25  ;;  %v7237_v2 = vadd.f32 %v7205_v29, %v6752_v22  ;;  %v7211_v11 = vrot.slane %v13600_v61, 2  ;;  %v7255_v57 = vrot.slane %v13584_v27, 4  ;;  %v13638_v0 = vsub.s32 2, %v13610_v42  ;;  %v13654_v19 = vpop.f32.mrb[71].mxu1 }
 0x2b4   : > { %16467 = vst [vmem:[#allocation63_spill] sm:$0xff] %v13614_v44  ;;  %v7238_v20 = vadd.f32 %v7206_v30, %v6754_v21  ;;  %v6965_v14 = vpop.f32.mrb[66].mxu0  ;;  %v13635_v21 = vsub.s32 1, %v13610_v42  ;;  %v13646_v39 = vadd.f32 %v7253_v6, %v7235_v51  ;;  %v7212_v29 = vrot.slane %v13604_v38, 2 }
 0x2b5   : > { %v13629_v54 = vpop.permute.xlu1 %1461  ;;  %4480 = vrot.lane.b32.xlu0 %v13472_v37, %s12334_s25  ;;  %v7209_v22 = vrot.slane %v6965_v14, 2  ;;  %v6967_v33 = vpop.f32.mrb[67].mxu0  ;;  %v7243_v62 = vadd.f32 %v7211_v11, %v6965_v14  ;;  %v1506_v30 = vld [vmem:[#allocation16 + $0x40] ss:$8 sm:$0xf]  ;;  %v7257_v16 = vrot.slane %v6965_v14, 4  ;;  %v13652_v11 = vadd.f32 %v7254_v17, %v7236_v55 }
 0x2b6   : > { %16469 = vst [vmem:[#allocation65_spill] sm:$0xff] %v13629_v54  ;;  %v7210_v50 = vrot.slane %v6967_v33, 2  ;;  %v7259_v51 = vrot.slane %v13600_v61, 4  ;;  %v7244_v6 = vadd.f32 %v7212_v29, %v6967_v33  ;;  %v7260_v54 = vrot.slane %v13604_v38, 4 }
 0x2b7   : > { %v13640_v60 = vpop.permute.xlu0 %1463  ;;  %4482 = vrot.lane.b32.xlu1 %v13474_v18, %s12334_s25  ;;  %v7241_v37 = vadd.f32 %v7209_v22, %v13584_v27  ;;  %v1507_v27 = vld [vmem:[#allocation16 + $0x40] ss:$8 sm:$0xf0]  ;;  %v13661_v22 = vadd.f32 %v7255_v57, %v7237_v2  ;;  %v13669_v44 = vadd.f32 %v7256_v10, %v7238_v20  ;;  %v7263_v29 = vrot.slane %v7178_v56, 4  ;;  %v13671_v2 = vpop.f32.mrb[72].mxu1  ;;  %s10650_s25 = sadd.s32 5, %s14864_s1 }
 0x2b8   : > { %16470 = vst [vmem:[#allocation66_spill] sm:$0xff] %v13640_v60  ;;  %v7242_v31 = vadd.f32 %v7210_v50, %v13586_v47  ;;  %v7107_v63 = vpop.f32.mrb[68].mxu0  ;;  %v7258_v47 = vrot.slane %v6967_v33, 4  ;;  %v13674_v57 = vsub.s32 3, %v13610_v42  ;;  %v13683_v34 = vor.u32 %v1507_v27, %v1506_v30  ;;  %s14906_s4 = sld [smem:[#allocation12 + %s10650_s25]] }
 0x2b9   : > { %v13656_v18 = vpop.permute.xlu1 %1465  ;;  %6297 = vrot.lane.b32.xlu0 %v13534_v25, %s12335_s23  ;;  %v7213_v14 = vrot.slane %v7107_v63, 2  ;;  %v7109_v15 = vpop.f32.mrb[69].mxu0  ;;  %v7261_v17 = vrot.slane %v7107_v63, 4  ;;  %16472 = vst [vmem:[#allocation68_spill] sm:$0xff] %v13669_v44  ;;  %v13692_v20 = vadd.f32 %v7257_v16, %v13612_v1  ;;  %v13696_v10 = vsub.s32 0, %v13610_v42 }
 0x2ba   : > { %16471 = vst [vmem:[#allocation67_spill] sm:$0xff] %v13656_v18  ;;  %v7214_v55 = vrot.slane %v7109_v15, 2  ;;  %v7262_v50 = vrot.slane %v7109_v15, 4  ;;  %v13701_v30 = vadd.f32 %v7259_v51, %v7241_v37  ;;  %v8199_v27 = vrot.slane %v13649_v46, 2 }
 0x2bb   : > { %v13663_v60 = vpop.permute.xlu0 %1467  ;;  %6299 = vrot.lane.b32.xlu1 %v13536_v12, %s12335_s23  ;;  %v7245_v25 = vadd.f32 %v7213_v14, %v13600_v61  ;;  %v13676_v63 = vadd.f32 %v7261_v17, %v7243_v62  ;;  %v13681_v12 = vpop.f32.mrb[73].mxu1  ;;  %16476 = vst [vmem:[#allocation72_spill] sm:$0xff] %v13692_v20  ;;  %v7264_v62 = vrot.slane %v13625_v52, 4  ;;  %v13713_v52 = vadd.f32 %v7260_v54, %v7242_v31 }
 0x2bc   : > { %v7246_v15 = vadd.f32 %v7214_v55, %v13604_v38  ;;  %v13679_v33 = vadd.f32 %v7262_v50, %v7244_v6  ;;  %v7539_v5 = vpop.f32.mrb[70].mxu0  ;;  %v13699_v6 = vadd.f32 %v7258_v47, %v13618_v45  ;;  %16478 = vst [vmem:[#allocation74_spill] sm:$0xff] %v13701_v30  ;;  %v8200_v1 = vrot.slane %v13654_v19, 2  ;;  %v13716_v45 = vpop.f32.mrb[74].mxu1 }
 0x2bd   : > { %16473 = vst [vmem:[#allocation69_spill] sm:$0xff] %v13676_v63  ;;  %v13685_v61 = vpop.permute.xlu1 %1469  ;;  %6301 = vrot.lane.b32.xlu0 %v13540_v53, %s12335_s23  ;;  %v13689_v56 = vadd.f32 %v7263_v29, %v7245_v25  ;;  %v7541_v38 = vpop.f32.mrb[71].mxu0  ;;  %v13705_v53 = vsub.s32 4, %v13610_v42  ;;  %16480 = vst [vmem:[#allocation76_spill] sm:$0xff] %v13713_v52  ;;  %v13719_v37 = vsub.s32 5, %v13610_v42  ;;  %v13722_v51 = vsub.s32 6, %v13610_v42 }
 0x2be   : > { %16474 = vst [vmem:[#allocation70_spill] sm:$0xff] %v13679_v33  ;;  %16477 = vst [vmem:[#allocation73_spill] sm:$0xff] %v13699_v6  ;;  %v13711_v16 = vadd.f32 %v7264_v62, %v7246_v15  ;;  %v8231_v47 = vadd.f32 %v8199_v27, %v7539_v5  ;;  %v8203_v55 = vrot.slane %v13671_v2, 2  ;;  %v13725_v50 = vpop.f32.mrb[75].mxu1  ;;  %v8232_v54 = vadd.f32 %v8200_v1, %v7541_v38 }
 0x2bf   : > { %16475 = vst [vmem:[#allocation71_spill] sm:$0xff] %v13689_v56  ;;  %v13707_v14 = vpop.permute.xlu0 %1471  ;;  %6303 = vrot.lane.b32.xlu1 %v13542_v35, %s12335_s23  ;;  %16481 = vst [vmem:[#allocation77_spill] sm:$0xff] %v13719_v37  ;;  %v13728_v35 = vsub.s32 7, %v13610_v42  ;;  %v8251_v15 = vrot.slane %v13671_v2, 4  ;;  %v8204_v1 = vrot.slane %v13681_v12, 2  ;;  %v8252_v5 = vrot.slane %v13681_v12, 4 }
 0x2c0   : > { %16479 = vst [vmem:[#allocation75_spill] sm:$0xff] %v13711_v16  ;;  %16482 = vst [vmem:[#allocation78_spill] sm:$0xff] %v13722_v51  ;;  %v7681_v17 = vpop.f32.mrb[72].mxu0  ;;  %v2506_v27 = vld [vmem:[#allocation16 + $0x41] ss:$8 sm:$0xf] }
 0x2c1   : > { %16483 = vst [vmem:[#allocation79_spill] sm:$0xff] %v13728_v35  ;;  %v13730_v31 = vpop.permute.xlu1 %1473  ;;  %6305 = vrot.lane.b32.xlu0 %v13546_v59, %s12335_s23  ;;  %v8201_v25 = vrot.slane %v7681_v17, 2  ;;  %v7683_v29 = vpop.f32.mrb[73].mxu0  ;;  %v8235_v42 = vadd.f32 %v8203_v55, %v7681_v17  ;;  %v2507_v59 = vld [vmem:[#allocation16 + $0x41] ss:$8 sm:$0xf0] }
 0x2c2   : > { %v8202_v32 = vrot.slane %v7683_v29, 2  ;;  %v13748_v56 = vpop.f32.mrb[76].mxu1  ;;  %v8249_v62 = vrot.slane %v7681_v17, 4  ;;  %v8207_v63 = vrot.slane %v13716_v45, 2  ;;  %v8255_v55 = vrot.slane %v13716_v45, 4 }
 0x2c3   : > { %v13741_v16 = vpop.permute.xlu0 %1475  ;;  %6307 = vrot.lane.b32.xlu1 %v13548_v58, %s12335_s23  ;;  %v8233_v38 = vadd.f32 %v8201_v25, %v13649_v46  ;;  %v13754_v52 = vpop.f32.mrb[77].mxu1  ;;  %v8236_v25 = vadd.f32 %v8204_v1, %v7683_v29  ;;  %v8250_v17 = vrot.slane %v7683_v29, 4 }
 0x2c4   : > { %v8234_v7 = vadd.f32 %v8202_v32, %v13654_v19  ;;  %v7823_v33 = vpop.f32.mrb[74].mxu0 }
 0x2c5   : > { %6309 = vrot.lane.b32.xlu0 %v13552_v41, %s12335_s23  ;;  %v13758_v58 = vpop.permute.xlu1 %1477  ;;  %v13760_v46 = vadd.f32 %v8251_v15, %v8233_v38  ;;  %v8205_v30 = vrot.slane %v7823_v33, 2  ;;  %v7825_v6 = vpop.f32.mrb[75].mxu0  ;;  %v8253_v19 = vrot.slane %v7823_v33, 4  ;;  %v13769_v41 = vor.u32 %v2507_v59, %v2506_v27 }
 0x2c6   : > { %v13763_v20 = vadd.f32 %v8252_v5, %v8234_v7  ;;  %v8206_v32 = vrot.slane %v7825_v6, 2  ;;  %v8254_v38 = vrot.slane %v7825_v6, 4  ;;  %v8239_v1 = vadd.f32 %v8207_v63, %v7823_v33 }
 0x2c7   : > { %16484 = vst [vmem:[#allocation80_spill] sm:$0xff] %v13760_v46  ;;  %v13765_v44 = vpop.permute.xlu0 %1479  ;;  %6311 = vrot.lane.b32.xlu1 %v13554_v24, %s12335_s23  ;;  %v8237_v15 = vadd.f32 %v8205_v30, %v13671_v2  ;;  %v13772_v46 = vpop.f32.mrb[78].mxu1  ;;  %v13777_v29 = vadd.f32 %v8253_v19, %v8235_v42  ;;  %v8208_v42 = vrot.slane %v13725_v50, 2  ;;  %v8256_v59 = vrot.slane %v13725_v50, 4 }
 0x2c8   : > { %16485 = vst [vmem:[#allocation81_spill] sm:$0xff] %v13763_v20  ;;  %v8238_v5 = vadd.f32 %v8206_v32, %v13681_v12  ;;  %v13780_v20 = vadd.f32 %v8249_v62, %v8231_v47  ;;  %v7965_v24 = vpop.f32.mrb[76].mxu0  ;;  %v13782_v27 = vpop.f32.mrb[79].mxu1  ;;  %v13790_v33 = vadd.f32 %v8254_v38, %v8236_v25  ;;  %v13800_v19 = vadd.f32 %v8250_v17, %v8232_v54 }
 0x2c9   : > { %16486 = vst [vmem:[#allocation82_spill] sm:$0xff] %v13777_v29  ;;  %6313 = vrot.lane.b32.xlu0 %v13558_v13, %s12335_s23  ;;  %v13788_v63 = vpop.permute.xlu1 %1481  ;;  %v13792_v30 = vadd.f32 %v8255_v55, %v8237_v15  ;;  %v7967_v12 = vpop.f32.mrb[77].mxu0  ;;  %v8240_v32 = vadd.f32 %v8208_v42, %v7825_v6  ;;  %v8209_v15 = vrot.slane %v7965_v24, 2  ;;  %v8257_v47 = vrot.slane %v7965_v24, 4 }
 0x2ca   : > { %16487 = vst [vmem:[#allocation83_spill] sm:$0xff] %v13790_v33  ;;  %v13810_v38 = vpop.f32.mrb[80].mxu1  ;;  %v13812_v62 = vadd.f32 %v8256_v59, %v8238_v5  ;;  %v8210_v54 = vrot.slane %v7967_v12, 2  ;;  %v8258_v17 = vrot.slane %v7967_v12, 4  ;;  %v8211_v6 = vrot.slane %v13748_v56, 2 }
 0x2cb   : > { %16488 = vst [vmem:[#allocation84_spill] sm:$0xff] %v13792_v30  ;;  %v13802_v13 = vpop.permute.xlu0 %2452  ;;  %6315 = vrot.lane.b32.xlu1 %v13560_v49, %s12335_s23  ;;  %v13814_v7 = vpop.f32.mrb[81].mxu1  ;;  %v8241_v55 = vadd.f32 %v8209_v15, %v13716_v45  ;;  %v8259_v42 = vrot.slane %v13748_v56, 4  ;;  %v8212_v5 = vrot.slane %v13754_v52, 2 }
 0x2cc   : > { %16489 = vst [vmem:[#allocation85_spill] sm:$0xff] %v13802_v13  ;;  %16490 = vst [vmem:[#allocation86_spill] sm:$0xff] %v13812_v62  ;;  %v8107_v2 = vpop.f32.mrb[78].mxu0  ;;  %v13826_v62 = vadd.f32 %v8257_v47, %v8239_v1  ;;  %v8242_v30 = vadd.f32 %v8210_v54, %v13725_v50  ;;  %v13829_v33 = vadd.f32 %v8258_v17, %v8240_v32  ;;  %v13839_v29 = vpop.f32.mrb[82].mxu1  ;;  %v8260_v50 = vrot.slane %v13754_v52, 4 }
 0x2cd   : > { %6317 = vrot.lane.b32.xlu0 %v13564_v9, %s12335_s23  ;;  %v13818_v49 = vpop.permute.xlu1 %2454  ;;  %v8109_v59 = vpop.f32.mrb[79].mxu0  ;;  %v8243_v15 = vadd.f32 %v8211_v6, %v7965_v24  ;;  %v8244_v13 = vadd.f32 %v8212_v5, %v7967_v12  ;;  %v8213_v47 = vrot.slane %v8107_v2, 2  ;;  %v8261_v32 = vrot.slane %v8107_v2, 4 }
 0x2ce   : > { %16491 = vst [vmem:[#allocation87_spill] sm:$0xff] %v13818_v49  ;;  %v13837_v49 = vadd.f32 %v8259_v42, %v8241_v55  ;;  %v13844_v17 = vpop.f32.mrb[83].mxu1  ;;  %v8214_v55 = vrot.slane %v8109_v59, 2  ;;  %v8262_v6 = vrot.slane %v8109_v59, 4  ;;  %v1492_v2 = vsel %vm1485_vm1, %v13663_v60, %v13685_v61 }
 0x2cf   : > { %v13831_v9 = vpop.permute.xlu0 %2456  ;;  %6319 = vrot.lane.b32.xlu1 %v13566_v40, %s12335_s23  ;;  %v1493_v40 = vsel %vm1485_vm1, %v13656_v18, %v13663_v60  ;;  %v13860_v5 = vadd.f32 %v8260_v50, %v8242_v30  ;;  %v8245_v1 = vadd.f32 %v8213_v47, %v13748_v56  ;;  %v13863_v45 = vadd.f32 %v8261_v32, %v8243_v15  ;;  %v13877_v56 = vpop.f32.mrb[84].mxu1 }
 0x2d0   : > { %16492 = vst [vmem:[#allocation88_spill] sm:$0xff] %v13837_v49  ;;  %v8539_v54 = vpop.f32.mrb[80].mxu0  ;;  %v8246_v60 = vadd.f32 %v8214_v55, %v13754_v52  ;;  %v13875_v30 = vadd.f32 %v8262_v6, %v8244_v13  ;;  %v16496_v15 = vrot.slane %v13683_v34, %v13696_v10  ;;  %v8263_v47 = vrot.slane %v13772_v46, 4  ;;  %v13887_v25 = vpop.f32.mrb[85].mxu1 }
 0x2d1   : > { %6321 = vrot.lane.b32.xlu0 %v13570_v23, %s12335_s23  ;;  %v13852_v24 = vpop.permute.xlu1 %2458  ;;  %v8541_v42 = vpop.f32.mrb[81].mxu0  ;;  %16493 = vst [vmem:[#allocation89_spill] sm:$0xff] %v13860_v5  ;;  %16494 = vst [vmem:[#allocation90_spill] sm:$0xff] %v13863_v45  ;;  %v9199_v32 = vrot.slane %v13810_v38, 2  ;;  %v16497_v52 = vrot.slane %v13683_v34, %v13635_v21  ;;  %v16504_v45 = vrot.slane %v13683_v34, %v13705_v53 }
 0x2d2   : > { %16495 = vst [vmem:[#allocation91_spill] sm:$0xff] %v13875_v30  ;;  %v13882_v50 = vmul.f32 %v16496_v15, %v1493_v40  ;;  %v1491_v40 = vsel %vm1485_vm1, %v13685_v61, %v13707_v14  ;;  %v13907_v15 = vadd.f32 %v8263_v47, %v8245_v1  ;;  %v1488_v61 = vsel %vm1485_vm1, %v13741_v16, %v13758_v58 }
 0x2d3   : > { %v13866_v23 = vpop.permute.xlu0 %2460  ;;  %6323 = vrot.lane.b32.xlu1 %v13572_v4, %s12335_s23  ;;  %v8264_v4 = vrot.slane %v13782_v27, 4  ;;  %v13892_v13 = vmul.f32 %v16497_v52, %v1492_v2  ;;  %v9200_v27 = vrot.slane %v13814_v7, 2  ;;  %v1490_v2 = vsel %vm1485_vm1, %v13707_v14, %v13730_v31 }
 0x2d4   : > { %v8681_v59 = vpop.f32.mrb[82].mxu0  ;;  %16498 = vst [vmem:[#allocation92_spill] sm:$0xff] %v13907_v15  ;;  %v9231_v12 = vadd.f32 %v9199_v32, %v8539_v54 }
 0x2d5   : > { %6325 = vrot.lane.b32.xlu0 %v13576_v43, %s12335_s23  ;;  %v13900_v46 = vpop.permute.xlu1 %2462  ;;  %v9201_v55 = vrot.slane %v8681_v59, 2  ;;  %v8683_v6 = vpop.f32.mrb[83].mxu0  ;;  %v13909_v52 = vadd.f32 %v8264_v4, %v8246_v60  ;;  %v1489_v43 = vsel %vm1485_vm1, %v13730_v31, %v13741_v16  ;;  %v9232_v14 = vadd.f32 %v9200_v27, %v8541_v42 }
 0x2d6   : > { %v13924_v60 = vpop.f32.mrb[86].mxu1  ;;  %v1487_v31 = vsel %vm1485_vm1, %v13758_v58, %v13765_v44  ;;  %v9249_v54 = vrot.slane %v8681_v59, 4  ;;  %v9202_v47 = vrot.slane %v8683_v6, 2  ;;  %v9250_v4 = vrot.slane %v8683_v6, 4 }
 0x2d7   : > { %16499 = vst [vmem:[#allocation93_spill] sm:$0xff] %v13909_v52  ;;  %v13919_v30 = vpop.permute.xlu0 %2464  ;;  %6327 = vrot.lane.b32.xlu1 %v13578_v8, %s12335_s23  ;;  %v9233_v1 = vadd.f32 %v9201_v55, %v13810_v38  ;;  %v13930_v16 = vpop.f32.mrb[87].mxu1  ;;  %v16501_v52 = vrot.slane %v13683_v34, %v13638_v0  ;;  %v16502_v38 = vrot.slane %v13683_v34, %v13674_v57  ;;  %v9203_v27 = vrot.slane %v13839_v29, 2  ;;  %s14886_s23 = sld [smem:[#allocation12 + %s9990_s21]] }
 0x2d8   : > { %16500 = vst [vmem:[#allocation94_spill] sm:$0xff] %v13919_v30  ;;  %v8823_v32 = vpop.f32.mrb[84].mxu0  ;;  %v9251_v55 = vrot.slane %v13839_v29, 4  ;;  %v16508_v30 = vrot.slane %v13683_v34, %v13722_v51  ;;  %s14904_s21 = sld [smem:[#allocation12 + %s10485_s6]] }
 0x2d9   : > { %v1601_v8 = vmul.f32 %v16501_v52, %v1491_v40  ;;  %v13938_v42 = vmul.f32 %v16502_v38, %v1490_v2  ;;  %7297 = vrot.lane.b32.xlu0 %v13597_v48, %s12336_s27  ;;  %v13942_v58 = vpop.permute.xlu1 %2466  ;;  %v8825_v15 = vpop.f32.mrb[85].mxu0  ;;  %v13949_v40 = vmul.f32 %v16504_v45, %v1489_v43  ;;  %v13951_v52 = vadd.f32 %v9249_v54, %v9231_v12  ;;  %s16813_s6 = sld [smem:[#allocation111_spill]] }
 0x2da   : > { %16503 = vst [vmem:[#allocation95_spill] sm:$0xff] %v13942_v58  ;;  %v9234_v2 = vadd.f32 %v9202_v47, %v13814_v7  ;;  %v13954_v38 = vadd.f32 %v9250_v4, %v9232_v14  ;;  %v16507_v48 = vrot.slane %v13683_v34, %v13719_v37  ;;  %v13964_v18 = vmul.f32 %v16508_v30, %v1487_v31  ;;  %v13970_v7 = vpop.f32.mrb[88].mxu1 }
 0x2db   : > { %16505 = vst [vmem:[#allocation96_spill] sm:$0xff] %v13951_v52  ;;  %v2469_v49 = vpop.permute.xlu0 %2468  ;;  %7299 = vrot.lane.b32.xlu1 %v13602_v36, %s12336_s27  ;;  %v9235_v45 = vadd.f32 %v9203_v27, %v8681_v59  ;;  %v13968_v12 = vadd.f32 %v9251_v55, %v9233_v1  ;;  %v9252_v14 = vrot.slane %v13844_v17, 4  ;;  %v9205_v54 = vrot.slane %v8823_v32, 2  ;;  %v13977_v31 = vpop.f32.mrb[89].mxu1 }
 0x2dc   : > { %16506 = vst [vmem:[#allocation97_spill] sm:$0xff] %v13954_v38  ;;  %v13959_v5 = vmul.f32 %v16507_v48, %v1488_v61  ;;  %v2492_v43 = vsel %vm2484_vm2, %v13942_v58, %v2469_v49  ;;  %v9204_v61 = vrot.slane %v13844_v17, 2  ;;  %v8965_v30 = vpop.f32.mrb[86].mxu0  ;;  %v13983_v36 = vsel %vm1485_vm1, %v13765_v44, %v13788_v63 }
 0x2dd   : > { %16509 = vst [vmem:[#allocation98_spill] sm:$0xff] %v13968_v12  ;;  %v16510_v59 = vrot.slane %v13769_v41, %v13696_v10  ;;  %7301 = vrot.lane.b32.xlu0 %v13620_v28, %s12336_s27  ;;  %v2471_v47 = vpop.permute.xlu1 %2470  ;;  %v9253_v4 = vrot.slane %v8823_v32, 4  ;;  %v9206_v27 = vrot.slane %v8825_v15, 2  ;;  %v13990_v55 = vpop.f32.mrb[87].mxu0  ;;  %v13994_v38 = vadd.f32 %v9252_v14, %v9234_v2 }
 0x2de   : > { %v2491_v48 = vsel %vm2484_vm2, %v2469_v49, %v2471_v47  ;;  %v9236_v12 = vadd.f32 %v9204_v61, %v8683_v6  ;;  %v9237_v44 = vadd.f32 %v9205_v54, %v13839_v29  ;;  %v9254_v2 = vrot.slane %v8825_v15, 4 }
 0x2df   : > { %v2599_v1 = vmul.f32 %v16510_v59, %v2492_v43  ;;  %v16511_v43 = vrot.slane %v13769_v41, %v13635_v21  ;;  %v2473_v59 = vpop.permute.xlu0 %2472  ;;  %7303 = vrot.lane.b32.xlu1 %v13622_v26, %s12336_s27  ;;  %v14005_v58 = vadd.f32 %v9253_v4, %v9235_v45  ;;  %v9238_v49 = vadd.f32 %v9206_v27, %v13844_v17 }
 0x2e0   : > { %v2490_v6 = vsel %vm2484_vm2, %v2471_v47, %v2473_v59  ;;  %v9207_v29 = vrot.slane %v13877_v56, 2  ;;  %v9107_v61 = vpop.f32.mrb[88].mxu0  ;;  %v16513_v54 = vrot.slane %v13769_v41, %v13638_v0  ;;  %v9208_v45 = vrot.slane %v13887_v25, 2 }
 0x2e1   : > { %v13998_v52 = vadd.f32 %v2599_v1, %v13882_v50  ;;  %v2600_v28 = vmul.f32 %v16511_v43, %v2491_v48  ;;  %16512 = vst [vmem:[#allocation99_spill] sm:$0xff] %v14005_v58  ;;  %v9255_v50 = vrot.slane %v13877_v56, 4  ;;  %7305 = vrot.lane.b32.xlu0 %v13646_v39, %s12336_s27  ;;  %v2475_v17 = vpop.permute.xlu1 %2474  ;;  %v9256_v1 = vrot.slane %v13887_v25, 4  ;;  %v14022_v47 = vpop.f32.mrb[89].mxu0 }
 0x2e2   : > { %v2601_v26 = vmul.f32 %v16513_v54, %v2490_v6  ;;  %v2489_v4 = vsel %vm2484_vm2, %v2473_v59, %v2475_v17  ;;  %v14026_v27 = vadd.f32 %v9254_v2, %v9236_v12  ;;  %v16515_v39 = vrot.slane %v13769_v41, %v13674_v57 }
 0x2e3   : > { %v14013_v14 = vadd.f32 %v2600_v28, %v13892_v13  ;;  %v9239_v13 = vadd.f32 %v9207_v29, %v8823_v32  ;;  %v14028_v48 = vadd.f32 %v9255_v50, %v9237_v44  ;;  %v2477_v6 = vpop.permute.xlu0 %2476  ;;  %7307 = vrot.lane.b32.xlu1 %v13652_v11, %s12336_s27  ;;  %v9240_v54 = vadd.f32 %v9208_v45, %v8825_v15 }
 0x2e4   : > { %v14030_v43 = vadd.f32 %v2601_v26, %v1601_v8  ;;  %v2602_v28 = vmul.f32 %v16515_v39, %v2489_v4  ;;  %v14037_v58 = vadd.f32 %v9256_v1, %v9238_v49  ;;  %v2488_v12 = vsel %vm2484_vm2, %v2475_v17, %v2477_v6  ;;  %v16520_v39 = vld [vmem:[#allocation68_spill] sm:$0xff] }
 0x2e5   : > { %16514 = vst [vmem:[#allocation100_spill] sm:$0xff] %v14028_v48  ;;  %v9209_v59 = vrot.slane %v8965_v30, 2  ;;  %v9257_v32 = vrot.slane %v8965_v30, 4  ;;  %v9210_v44 = vrot.slane %v13990_v55, 2  ;;  %v16517_v2 = vrot.slane %v13769_v41, %v13705_v53  ;;  %7309 = vrot.lane.b32.xlu0 %v13661_v22, %s12336_s27  ;;  %v2479_v11 = vpop.permute.xlu1 %2478  ;;  %v16550_v48 = vld [vmem:[#allocation63_spill] sm:$0xff] }
 0x2e6   : > { %16516 = vst [vmem:[#allocation101_spill] sm:$0xff] %v14037_v58  ;;  %v14043_v8 = vadd.f32 %v2602_v28, %v13938_v42  ;;  %v9258_v15 = vrot.slane %v13990_v55, 4  ;;  %v9211_v49 = vrot.slane %v13924_v60, 2  ;;  %v2487_v50 = vsel %vm2484_vm2, %v2477_v6, %v2479_v11 }
 0x2e7   : > { %v2603_v29 = vmul.f32 %v16517_v2, %v2488_v12  ;;  %v9241_v26 = vadd.f32 %v9209_v59, %v13877_v56  ;;  %v14055_v17 = vadd.f32 %v9257_v32, %v9239_v13  ;;  %v9242_v42 = vadd.f32 %v9210_v44, %v13887_v25  ;;  %v2481_v4 = vpop.permute.xlu0 %2480  ;;  %7311 = vrot.lane.b32.xlu1 %v16520_v39, %s12336_s27 }
 0x2e8   : > { %v16519_v22 = vrot.slane %v13769_v41, %v13719_v37  ;;  %v14066_v28 = vadd.f32 %v9258_v15, %v9240_v54  ;;  %v9243_v6 = vadd.f32 %v9211_v49, %v8965_v30  ;;  %v2486_v56 = vsel %vm2484_vm2, %v2479_v11, %v2481_v4  ;;  %v16523_v54 = vld [vmem:[#allocation72_spill] sm:$0xff] }
 0x2e9   : > { %16518 = vst [vmem:[#allocation102_spill] sm:$0xff] %v14055_v17  ;;  %v14059_v45 = vadd.f32 %v2603_v29, %v13949_v40  ;;  %v9259_v13 = vrot.slane %v13924_v60, 4  ;;  %v9212_v25 = vrot.slane %v13930_v16, 2  ;;  %v9260_v40 = vrot.slane %v13930_v16, 4  ;;  %7313 = vrot.lane.b32.xlu0 %v16523_v54, %s12336_s27  ;;  %v14081_v30 = vpop.permute.xlu1 %2482 }
 0x2ea   : > { %v2604_v1 = vmul.f32 %v16519_v22, %v2487_v50  ;;  %16521 = vst [vmem:[#allocation68_spill] sm:$0xff] %v14066_v28  ;;  %v16522_v59 = vrot.slane %v13769_v41, %v13722_v51  ;;  %v9213_v44 = vrot.slane %v9107_v61, 2  ;;  %v9261_v2 = vrot.slane %v9107_v61, 4  ;;  %v16547_v28 = vld [vmem:[#allocation83_spill] sm:$0xff] }
 0x2eb   : > { %v2485_v29 = vsel %vm2484_vm2, %v2481_v4, %v14081_v30  ;;  %v14087_v11 = vadd.f32 %v9259_v13, %v9241_v26  ;;  %v16526_v15 = vrot.slane %v13683_v34, %v13728_v35  ;;  %v16527_v61 = vrot.slane %v13769_v41, %v13728_v35  ;;  %v16528_v4 = vld [vmem:[#allocation73_spill] sm:$0xff]  ;;  %v16530_v41 = vld [vmem:[#allocation74_spill] sm:$0xff] }
 0x2ec   : > { %v14074_v12 = vadd.f32 %v2604_v1, %v13959_v5  ;;  %v2605_v32 = vmul.f32 %v16522_v59, %v2486_v56  ;;  %v14089_v5 = vadd.f32 %v9260_v40, %v9242_v42  ;;  %v14101_v1 = vpop.permute.xlu0 %3452  ;;  %7315 = vrot.lane.b32.xlu1 %v16528_v4, %s12336_s27  ;;  %v9245_v26 = vadd.f32 %v9213_v44, %v13924_v60  ;;  %v1502_v42 = vld [vmem:[#allocation16] ss:$8 sm:$0xf] }
 0x2ed   : > { %16524 = vst [vmem:[#allocation72_spill] sm:$0xff] %v14087_v11  ;;  %v1606_v49 = vmul.f32 %v16526_v15, %v13983_v36  ;;  %v2606_v22 = vmul.f32 %v16527_v61, %v2485_v29  ;;  %v14106_v39 = vadd.f32 %v9261_v2, %v9243_v6  ;;  %v9214_v34 = vrot.slane %v14022_v47, 2  ;;  %v1503_v56 = vld [vmem:[#allocation16] ss:$8 sm:$0xf0]  ;;  %7317 = vrot.lane.b32.xlu0 %v16530_v41, %s12336_s27  ;;  %v3455_v40 = vpop.permute.xlu1 %3454 }
 0x2ee   : > { %16525 = vst [vmem:[#allocation103_spill] sm:$0xff] %v14089_v5  ;;  %v14096_v50 = vadd.f32 %v2605_v32, %v13964_v18  ;;  %v9244_v36 = vadd.f32 %v9212_v25, %v13990_v55  ;;  %v9262_v18 = vrot.slane %v14022_v47, 4  ;;  %v9263_v59 = vrot.slane %v13970_v7, 4  ;;  %v16532_v32 = vld [vmem:[#allocation76_spill] sm:$0xff]  ;;  %v16544_v11 = vld [vmem:[#allocation82_spill] sm:$0xff] }
 0x2ef   : > { %16529 = vst [vmem:[#allocation73_spill] sm:$0xff] %v14106_v39  ;;  %v14111_v13 = vadd.f32 %v2606_v22, %v1606_v49  ;;  %v9264_v60 = vrot.slane %v13977_v31, 4  ;;  %v14120_v6 = vsel %vm3484_vm3, %v14101_v1, %v3455_v40  ;;  %v9246_v55 = vadd.f32 %v9214_v34, %v13930_v16  ;;  %v2502_v7 = vld [vmem:[#allocation16 + $0x1] ss:$8 sm:$0xf] }
 0x2f0   : > { %v14123_v25 = vadd.f32 %v9262_v18, %v9244_v36  ;;  %v3457_v47 = vpop.permute.xlu0 %3456  ;;  %7319 = vrot.lane.b32.xlu1 %v16532_v32, %s12336_s27  ;;  %v14127_v54 = vadd.f32 %v9263_v59, %v9245_v26  ;;  %v14129_v44 = vor.u32 %v1503_v56, %v1502_v42  ;;  %v2503_v2 = vld [vmem:[#allocation16 + $0x1] ss:$8 sm:$0xf0]  ;;  %v3506_v61 = vld [vmem:[#allocation16 + $0x42] ss:$8 sm:$0xf] }
 0x2f1   : > { %v14133_v31 = vsel %vm3484_vm3, %v3455_v40, %v3457_v47  ;;  %v14135_v29 = vadd.f32 %v9264_v60, %v9246_v55  ;;  %v16535_v16 = vld [vmem:[#allocation69_spill] sm:$0xff]  ;;  %v3459_v15 = vpop.permute.xlu1 %3458  ;;  %v14143_v4 = vor.u32 %v2503_v2, %v2502_v7  ;;  %v16536_v36 = vld [vmem:[#allocation70_spill] sm:$0xff]  ;;  %v16537_v60 = vld [vmem:[#allocation71_spill] sm:$0xff] }
 0x2f2   : > { %16531 = vst [vmem:[#allocation74_spill] sm:$0xff] %v14123_v25  ;;  %16533 = vst [vmem:[#allocation76_spill] sm:$0xff] %v14127_v54  ;;  %7321 = vrot.lane.b32.xlu0 %v16535_v16, %s12336_s27  ;;  %v14141_v49 = vsel %vm3484_vm3, %v3457_v47, %v3459_v15  ;;  %v3507_v22 = vld [vmem:[#allocation16 + $0x42] ss:$8 sm:$0xf0] }
 0x2f3   : > { %16534 = vst [vmem:[#allocation104_spill] sm:$0xff] %v14135_v29  ;;  %v3502_v26 = vld [vmem:[#allocation16 + $0x2] ss:$8 sm:$0xf]  ;;  %v14161_v47 = vor.u32 %v3507_v22, %v3506_v61 }
 0x2f4   : > { %v3503_v42 = vld [vmem:[#allocation16 + $0x2] ss:$8 sm:$0xf0]  ;;  %v3461_v34 = vpop.permute.xlu0 %3460  ;;  %7323 = vrot.lane.b32.xlu1 %v16536_v36, %s12336_s27  ;;  %v4502_v32 = vld [vmem:[#allocation16 + $0x3] ss:$8 sm:$0xf] }
 0x2f5   : > { %v14151_v56 = vsel %vm3484_vm3, %v3459_v15, %v3461_v34  ;;  %v3463_v55 = vpop.permute.xlu1 %3462  ;;  %v14167_v2 = vor.u32 %v3503_v42, %v3502_v26  ;;  %v16538_v26 = vld [vmem:[#allocation75_spill] sm:$0xff]  ;;  %v3550_v22 = vrot.slane %v14161_v47, %v13635_v21  ;;  %v3554_v59 = vrot.slane %v14161_v47, %v13638_v0  ;;  %v16540_v54 = vld [vmem:[#allocation81_spill] sm:$0xff]  ;;  %v16543_v25 = vld [vmem:[#allocation58_spill] sm:$0xff] }
 0x2f6   : > { %7325 = vrot.lane.b32.xlu0 %v16537_v60, %s12336_s27  ;;  %v14171_v16 = vsel %vm3484_vm3, %v3461_v34, %v3463_v55  ;;  %v4503_v61 = vld [vmem:[#allocation16 + $0x3] ss:$8 sm:$0xf0] }
 0x2f7   : > { %v14221_v34 = vor.u32 %v4503_v61, %v4502_v32  ;;  %v3558_v32 = vrot.slane %v14161_v47, %v13674_v57  ;;  %v3562_v61 = vrot.slane %v14161_v47, %v13705_v53  ;;  %v4506_v39 = vld [vmem:[#allocation16 + $0x43] ss:$8 sm:$0xf] }
 0x2f8   : > { %v3465_v60 = vpop.permute.xlu0 %3464  ;;  %7327 = vrot.lane.b32.xlu1 %v16538_v26, %s12336_s27  ;;  %v3570_v26 = vrot.slane %v14161_v47, %v13722_v51  ;;  %v4507_v5 = vld [vmem:[#allocation16 + $0x43] ss:$8 sm:$0xf0]  ;;  %s10815_s27 = sadd.s32 6, %s14864_s1 }
 0x2f9   : > { %v14191_v7 = vsel %vm3484_vm3, %v3463_v55, %v3465_v60  ;;  %v3467_v15 = vpop.permute.xlu1 %3466  ;;  %v3546_v55 = vrot.slane %v14161_v47, %v13696_v10  ;;  %v14283_v58 = vor.u32 %v4507_v5, %v4506_v39  ;;  %v16548_v5 = vrot.slane %v14129_v44, %v13635_v21 }
 0x2fa   : > { %8297 = vrot.lane.b32.xlu0 %v13780_v20, %s12337_s11  ;;  %v14211_v36 = vsel %vm3484_vm3, %v3465_v60, %v3467_v15  ;;  %v3566_v60 = vrot.slane %v14161_v47, %v13719_v37 }
 0x2fc   : > { %v3469_v42 = vpop.permute.xlu0 %3468  ;;  %8299 = vrot.lane.b32.xlu1 %v13800_v19, %s12337_s11  ;;  %v16539_v19 = vld [vmem:[#allocation80_spill] sm:$0xff] }
 0x2fd   : > { %v3492_v20 = vsel %vm3484_vm3, %v3467_v15, %v3469_v42  ;;  %v3471_v41 = vpop.permute.xlu1 %3470 }
 0x2fe   : > { %v3599_v40 = vmul.f32 %v3546_v55, %v3492_v20  ;;  %8301 = vrot.lane.b32.xlu0 %v16539_v19, %s12337_s11  ;;  %v3491_v15 = vsel %vm3484_vm3, %v3469_v42, %v3471_v41 }
 0x2ff   : > { %v3600_v18 = vmul.f32 %v3550_v22, %v3491_v15  ;;  %v16541_v22 = vld [vmem:[#allocation59_spill] sm:$0xff]  ;;  %v16542_v15 = vld [vmem:[#allocation60_spill] sm:$0xff] }
 0x300   : > { %v14248_v19 = vadd.f32 %v3599_v40, %v13998_v52  ;;  %v3473_v29 = vpop.permute.xlu0 %3472  ;;  %8303 = vrot.lane.b32.xlu1 %v16540_v54, %s12337_s11  ;;  %v1499_v42 = vsel %vm1485_vm1, %v16542_v15, %v16541_v22  ;;  %v1500_v20 = vsel %vm1485_vm1, %v16543_v25, %v16542_v15  ;;  %v16545_v15 = vld [vmem:[#allocation61_spill] sm:$0xff] }
 0x301   : > { %v3490_v55 = vsel %vm3484_vm3, %v3471_v41, %v3473_v29  ;;  %v14273_v41 = vadd.f32 %v3600_v18, %v14013_v14  ;;  %v3475_v40 = vpop.permute.xlu1 %3474  ;;  %v1498_v14 = vsel %vm1485_vm1, %v16541_v22, %v16545_v15  ;;  %v16546_v18 = vld [vmem:[#allocation85_spill] sm:$0xff]  ;;  %v1592_v39 = vmul.f32 %v16548_v5, %v1500_v20 }
 0x302   : > { %v3601_v52 = vmul.f32 %v3554_v59, %v3490_v55  ;;  %8305 = vrot.lane.b32.xlu0 %v16544_v11, %s12337_s11  ;;  %v3489_v54 = vsel %vm3484_vm3, %v3473_v29, %v3475_v40  ;;  %v2500_v11 = vsel %vm2484_vm2, %v14081_v30, %v16546_v18  ;;  %v16549_v22 = vrot.slane %v14129_v44, %v13638_v0 }
 0x303   : > { %v3602_v59 = vmul.f32 %v3558_v32, %v3489_v54  ;;  %v16551_v32 = vld [vmem:[#allocation87_spill] sm:$0xff]  ;;  %v16552_v54 = vld [vmem:[#allocation84_spill] sm:$0xff] }
 0x304   : > { %v14294_v29 = vadd.f32 %v3601_v52, %v14030_v43  ;;  %v3477_v55 = vpop.permute.xlu0 %3476  ;;  %8307 = vrot.lane.b32.xlu1 %v16547_v28, %s12337_s11  ;;  %v1593_v17 = vmul.f32 %v16549_v22, %v1499_v42  ;;  %v1497_v43 = vsel %vm1485_vm1, %v16545_v15, %v16550_v48  ;;  %v1501_v28 = vsel %vm1485_vm1, %v13788_v63, %v16543_v25  ;;  %v16556_v22 = vld [vmem:[#allocation65_spill] sm:$0xff] }
 0x305   : > { %v3488_v30 = vsel %vm3484_vm3, %v3475_v40, %v3477_v55  ;;  %v2499_v20 = vsel %vm2484_vm2, %v16546_v18, %v16551_v32  ;;  %v14320_v42 = vadd.f32 %v3602_v59, %v14043_v8  ;;  %v3479_v15 = vpop.permute.xlu1 %3478  ;;  %v16553_v40 = vrot.slane %v14129_v44, %v13674_v57 }
 0x306   : > { %v3603_v52 = vmul.f32 %v3562_v61, %v3488_v30  ;;  %8309 = vrot.lane.b32.xlu0 %v16552_v54, %s12337_s11  ;;  %v2498_v63 = vsel %vm2484_vm2, %v16551_v32, %v13831_v9  ;;  %v16554_v25 = vrot.slane %v14143_v4, %v13696_v10  ;;  %v3487_v8 = vsel %vm3484_vm3, %v3477_v55, %v3479_v15 }
 0x307   : > { %v1594_v5 = vmul.f32 %v16553_v40, %v1498_v14  ;;  %v16555_v61 = vrot.slane %v14129_v44, %v13705_v53  ;;  %v1496_v14 = vsel %vm1485_vm1, %v16550_v48, %v16556_v22  ;;  %v3604_v32 = vmul.f32 %v3566_v60, %v3487_v8  ;;  %v16557_v40 = vld [vmem:[#allocation86_spill] sm:$0xff] }
 0x308   : > { %v2591_v18 = vmul.f32 %v16554_v25, %v2500_v11  ;;  %v14344_v30 = vadd.f32 %v3603_v52, %v14059_v45  ;;  %v3481_v54 = vpop.permute.xlu0 %3480  ;;  %8311 = vrot.lane.b32.xlu1 %v16557_v40, %s12337_s11  ;;  %v16558_v11 = vld [vmem:[#allocation66_spill] sm:$0xff]  ;;  %v16560_v48 = vrot.slane %v14143_v4, %v13635_v21  ;;  %v16561_v60 = vrot.slane %v14143_v4, %v13638_v0 }
 0x309   : > { %v1595_v59 = vmul.f32 %v16555_v61, %v1497_v43  ;;  %v1495_v55 = vsel %vm1485_vm1, %v16556_v22, %v16558_v11  ;;  %v16559_v43 = vrot.slane %v14129_v44, %v13696_v10  ;;  %v3486_v45 = vsel %vm3484_vm3, %v3479_v15, %v3481_v54 }
 0x30a   : > { %v2592_v61 = vmul.f32 %v16560_v48, %v2499_v20  ;;  %v2593_v52 = vmul.f32 %v16561_v60, %v2498_v63  ;;  %v2497_v8 = vsel %vm2484_vm2, %v13831_v9, %v13852_v24  ;;  %v14368_v22 = vadd.f32 %v3604_v32, %v14074_v12  ;;  %8313 = vrot.lane.b32.xlu0 %v13826_v62, %s12337_s11  ;;  %v3483_v20 = vpop.permute.xlu1 %3482 }
 0x30b   : > { %v1591_v25 = vmul.f32 %v16559_v43, %v1501_v28  ;;  %v3605_v28 = vmul.f32 %v3570_v26, %v3486_v45  ;;  %v2496_v15 = vsel %vm2484_vm2, %v13852_v24, %v13866_v23  ;;  %v3485_v63 = vsel %vm3484_vm3, %v3481_v54, %v3483_v20 }
 0x30c   : > { %v3500_v9 = vsel %vm3484_vm3, %v3483_v20, %v14101_v1  ;;  %v16562_v12 = vrot.slane %v14167_v2, %v13635_v21  ;;  %v16563_v32 = vrot.slane %v14167_v2, %v13696_v10  ;;  %v14394_v43 = vpop.permute.xlu0 %4452  ;;  %8315 = vrot.lane.b32.xlu1 %v13829_v33, %s12337_s11  ;;  %v16565_v1 = vrot.slane %v14129_v44, %v13719_v37 }
 0x30d   : > { %v2607_v40 = vadd.f32 %v2591_v18, %v1591_v25  ;;  %v14386_v62 = vadd.f32 %v3605_v28, %v14096_v50  ;;  %v16564_v18 = vrot.slane %v14161_v47, %v13728_v35  ;;  %v16566_v50 = vrot.slane %v14129_v44, %v13722_v51 }
 0x30e   : > { %v3592_v26 = vmul.f32 %v16562_v12, %v14120_v6  ;;  %v3591_v24 = vmul.f32 %v16563_v32, %v3500_v9  ;;  %v1596_v6 = vmul.f32 %v16565_v1, %v1496_v14  ;;  %v2608_v48 = vadd.f32 %v2592_v61, %v1592_v39  ;;  %v16569_v39 = vld [vmem:[#allocation88_spill] sm:$0xff]  ;;  %v16570_v61 = vld [vmem:[#allocation67_spill] sm:$0xff] }
 0x30f   : > { %v3606_v54 = vmul.f32 %v16564_v18, %v3485_v63  ;;  %v1597_v25 = vmul.f32 %v16566_v50, %v1495_v55  ;;  %v16567_v45 = vrot.slane %v14143_v4, %v13674_v57  ;;  %v2495_v47 = vsel %vm2484_vm2, %v13866_v23, %v13900_v46  ;;  %8317 = vrot.lane.b32.xlu0 %v16569_v39, %s12337_s11  ;;  %v4455_v55 = vpop.permute.xlu1 %4454  ;;  %v16578_v50 = vld [vmem:[#allocation95_spill] sm:$0xff] }
 0x310   : > { %v16568_v33 = vrot.slane %v14167_v2, %v13638_v0  ;;  %v14415_v14 = vadd.f32 %v3591_v24, %v2607_v40  ;;  %v2609_v23 = vadd.f32 %v2593_v52, %v1593_v17  ;;  %v16571_v63 = vrot.slane %v14143_v4, %v13705_v53  ;;  %v16575_v24 = vld [vmem:[#allocation89_spill] sm:$0xff] }
 0x311   : > { %v2594_v60 = vmul.f32 %v16567_v45, %v2497_v8  ;;  %v14418_v20 = vadd.f32 %v3606_v54, %v14111_v13  ;;  %v1494_v8 = vsel %vm1485_vm1, %v16558_v11, %v16570_v61  ;;  %v16572_v13 = vld [vmem:[#allocation94_spill] sm:$0xff]  ;;  %v3608_v12 = vadd.f32 %v3592_v26, %v2608_v48  ;;  %8319 = vrot.lane.b32.xlu1 %v16575_v24, %s12337_s11 }
 0x312   : > { %v3593_v28 = vmul.f32 %v16568_v33, %v14133_v31  ;;  %v2595_v9 = vmul.f32 %v16571_v63, %v2496_v15  ;;  %v4499_v31 = vsel %vm4484_vm4, %v14394_v43, %v4455_v55  ;;  %v2494_v40 = vsel %vm2484_vm2, %v13900_v46, %v16572_v13  ;;  %v4457_v15 = vpop.permute.xlu0 %4456 }
 0x313   : > { %v16573_v32 = vrot.slane %v14167_v2, %v13674_v57  ;;  %v16574_v17 = vrot.slane %v14221_v34, %v13635_v21  ;;  %v2610_v18 = vadd.f32 %v2594_v60, %v1594_v5  ;;  %v16576_v54 = vrot.slane %v14143_v4, %v13719_v37  ;;  %v4459_v39 = vpop.permute.xlu1 %4458 }
 0x314   : > { %v16577_v46 = vrot.slane %v14167_v2, %v13705_v53  ;;  %v2493_v48 = vsel %vm2484_vm2, %v16572_v13, %v16578_v50  ;;  %v3609_v45 = vadd.f32 %v3593_v28, %v2609_v23  ;;  %v16579_v5 = vrot.slane %v14221_v34, %v13638_v0 }
 0x315   : > { %v3594_v11 = vmul.f32 %v16573_v32, %v14141_v49  ;;  %v4592_v52 = vmul.f32 %v16574_v17, %v4499_v31  ;;  %v2596_v1 = vmul.f32 %v16576_v54, %v2495_v47  ;;  %v4498_v49 = vsel %vm4484_vm4, %v4455_v55, %v4457_v15  ;;  %v16580_v47 = vld [vmem:[#allocation90_spill] sm:$0xff] }
 0x316   : > { %v3595_v26 = vmul.f32 %v16577_v46, %v14151_v56  ;;  %v4593_v60 = vmul.f32 %v16579_v5, %v4498_v49  ;;  %8321 = vrot.lane.b32.xlu0 %v16580_v47, %s12337_s11  ;;  %v2611_v61 = vadd.f32 %v2595_v9, %v1595_v59  ;;  %v16581_v56 = vrot.slane %v14143_v4, %v13722_v51  ;;  %v4461_v17 = vpop.permute.xlu0 %4460  ;;  %v16584_v59 = vld [vmem:[#allocation91_spill] sm:$0xff] }
 0x317   : > { %v4608_v33 = vadd.f32 %v4592_v52, %v3608_v12  ;;  %v16582_v63 = vrot.slane %v14167_v2, %v13719_v37  ;;  %v4497_v28 = vsel %vm4484_vm4, %v4457_v15, %v4459_v39  ;;  %v3610_v23 = vadd.f32 %v3594_v11, %v2610_v18  ;;  %8323 = vrot.lane.b32.xlu1 %v16584_v59, %s12337_s11  ;;  %v16585_v9 = vld [vmem:[#allocation43_spill] sm:$0xff] }
 0x318   : > { %v2597_v55 = vmul.f32 %v16581_v56, %v2494_v40  ;;  %v4609_v13 = vadd.f32 %v4593_v60, %v3609_v45  ;;  %v16583_v12 = vrot.slane %v14221_v34, %v13674_v57  ;;  %v2612_v52 = vadd.f32 %v2596_v1, %v1596_v6  ;;  %v16589_v6 = vld [vmem:[#allocation92_spill] sm:$0xff]  ;;  %v4463_v1 = vpop.permute.xlu1 %4462 }
 0x319   : > { %v3596_v31 = vmul.f32 %v16582_v63, %v14171_v16  ;;  %v14478_v40 = vadd.f32 %v16585_v9, %v4608_v33  ;;  %v16586_v16 = vrot.slane %v14143_v4, %v13728_v35  ;;  %v3611_v54 = vadd.f32 %v3595_v26, %v2611_v61  ;;  %v16590_v4 = vld [vmem:[#allocation44_spill] sm:$0xff] }
 0x31a   : > { %v4594_v32 = vmul.f32 %v16583_v12, %v4497_v28  ;;  %v4496_v11 = vsel %vm4484_vm4, %v4459_v39, %v4461_v17  ;;  %v16587_v15 = vrot.slane %v14167_v2, %v13722_v51  ;;  %v16588_v49 = vrot.slane %v14221_v34, %v13705_v53  ;;  %8325 = vrot.lane.b32.xlu0 %v16589_v6, %s12337_s11  ;;  %v4465_v63 = vpop.permute.xlu0 %4464  ;;  %v16594_v28 = vld [vmem:[#allocation93_spill] sm:$0xff]  ;;  %v16597_v12 = vld [vmem:[#allocation96_spill] sm:$0xff] }
 0x31b   : > { %v2598_v24 = vmul.f32 %v16586_v16, %v2493_v48  ;;  %v14495_v48 = vadd.f32 %v16590_v4, %v4609_v13  ;;  %v16591_v26 = vrot.slane %v14129_v44, %v13728_v35  ;;  %v2613_v33 = vadd.f32 %v2597_v55, %v1597_v25  ;;  %8327 = vrot.lane.b32.xlu1 %v16594_v28, %s12337_s11  ;;  %v16595_v44 = vld [vmem:[#allocation45_spill] sm:$0xff]  ;;  %v16602_v4 = vld [vmem:[#allocation98_spill] sm:$0xff]  ;;  %s14891_s11 = sld [smem:[#allocation12 + %s10155_s30]] }
 0x31c   : > { %v3597_v18 = vmul.f32 %v16587_v15, %v14191_v7  ;;  %v4610_v46 = vadd.f32 %v4594_v32, %v3610_v23  ;;  %v4595_v50 = vmul.f32 %v16588_v49, %v4496_v11  ;;  %v3612_v5 = vadd.f32 %v3596_v31, %v2612_v52  ;;  %v4467_v32 = vpop.permute.xlu1 %4466  ;;  %s14914_s30 = sld [smem:[#allocation12 + %s10815_s27]] }
 0x31d   : > { %v1598_v45 = vmul.f32 %v16591_v26, %v1494_v8  ;;  %v4495_v7 = vsel %vm4484_vm4, %v4461_v17, %v4463_v1  ;;  %v16592_v60 = vrot.slane %v14167_v2, %v13728_v35  ;;  %v16593_v61 = vrot.slane %v14221_v34, %v13719_v37  ;;  %v16598_v17 = vld [vmem:[#allocation46_spill] sm:$0xff] }
 0x31e   : > { %v4611_v39 = vadd.f32 %v4595_v50, %v3611_v54  ;;  %v14512_v25 = vadd.f32 %v16595_v44, %v4610_v46  ;;  %v4494_v55 = vsel %vm4484_vm4, %v4463_v1, %v4465_v63  ;;  %v4546_v2 = vrot.slane %v14283_v58, %v13696_v10  ;;  %9297 = vrot.lane.b32.xlu0 %v16597_v12, %s12338_s8  ;;  %v4469_v15 = vpop.permute.xlu0 %4468  ;;  %v16601_v46 = vld [vmem:[#allocation47_spill] sm:$0xff] }
 0x31f   : > { %v3598_v47 = vmul.f32 %v16592_v60, %v14211_v36  ;;  %v4596_v56 = vmul.f32 %v16593_v61, %v4495_v7  ;;  %v2614_v8 = vadd.f32 %v2598_v24, %v1598_v45  ;;  %v3613_v36 = vadd.f32 %v3597_v18, %v2613_v33  ;;  %v16600_v18 = vld [vmem:[#allocation97_spill] sm:$0xff]  ;;  %v16603_v33 = vld [vmem:[#allocation48_spill] sm:$0xff] }
 0x320   : > { %v16596_v23 = vrot.slane %v14221_v34, %v13722_v51  ;;  %v14524_v59 = vadd.f32 %v16598_v17, %v4611_v39  ;;  %v4493_v9 = vsel %vm4484_vm4, %v4465_v63, %v4467_v32  ;;  %v4550_v52 = vrot.slane %v14283_v58, %v13635_v21  ;;  %9299 = vrot.lane.b32.xlu1 %v16600_v18, %s12338_s8  ;;  %v4471_v26 = vpop.permute.xlu1 %4470  ;;  %v6348_v17 = vld [vmem:[#allocation16 + $0x5] ss:$8 sm:$0xf0] }
 0x321   : > { %v4612_v31 = vadd.f32 %v4596_v56, %v3612_v5  ;;  %v3614_v16 = vadd.f32 %v3598_v47, %v2614_v8  ;;  %v16599_v54 = vrot.slane %v14221_v34, %v13728_v35  ;;  %v4492_v50 = vsel %vm4484_vm4, %v4467_v32, %v4469_v15  ;;  %v16604_v56 = vld [vmem:[#allocation49_spill] sm:$0xff] }
 0x322   : > { %v4597_v13 = vmul.f32 %v16596_v23, %v4494_v55  ;;  %v4599_v1 = vmul.f32 %v4546_v2, %v4492_v50  ;;  %9301 = vrot.lane.b32.xlu0 %v16602_v4, %s12338_s8  ;;  %v4554_v45 = vrot.slane %v14283_v58, %v13638_v0  ;;  %v4491_v7 = vsel %vm4484_vm4, %v4469_v15, %v4471_v26  ;;  %v4473_v39 = vpop.permute.xlu0 %4472  ;;  %v16605_v55 = vld [vmem:[#allocation99_spill] sm:$0xff]  ;;  %v16609_v15 = vld [vmem:[#allocation52_spill] sm:$0xff] }
 0x323   : > { %v4598_v11 = vmul.f32 %v16599_v54, %v4493_v9  ;;  %v14536_v49 = vadd.f32 %v16601_v46, %v4612_v31  ;;  %v4600_v47 = vmul.f32 %v4550_v52, %v4491_v7  ;;  %v4558_v61 = vrot.slane %v14283_v58, %v13674_v57  ;;  %v6347_v32 = vld [vmem:[#allocation16 + $0x5] ss:$8 sm:$0xf] }
 0x324   : > { %v4613_v24 = vadd.f32 %v4597_v13, %v3613_v36  ;;  %v4615_v60 = vadd.f32 %v4599_v1, %v14248_v19  ;;  %9303 = vrot.lane.b32.xlu1 %v13994_v38, %s12338_s8  ;;  %v4490_v28 = vsel %vm4484_vm4, %v4471_v26, %v4473_v39  ;;  %v4475_v19 = vpop.permute.xlu1 %4474  ;;  %v4562_v2 = vrot.slane %v14283_v58, %v13705_v53  ;;  %v16606_v38 = vld [vmem:[#allocation50_spill] sm:$0xff]  ;;  %v16607_v9 = vld [vmem:[#allocation51_spill] sm:$0xff]  ;;  %v16610_v26 = vld [vmem:[#allocation101_spill] sm:$0xff] }
 0x325   : > { %v4614_v6 = vadd.f32 %v4598_v11, %v3614_v16  ;;  %v4616_v44 = vadd.f32 %v4600_v47, %v14273_v41  ;;  %v4601_v8 = vmul.f32 %v4554_v45, %v4490_v28  ;;  %v4489_v31 = vsel %vm4484_vm4, %v4473_v39, %v4475_v19  ;;  %v16612_v39 = vld [vmem:[#allocation102_spill] sm:$0xff] }
 0x326   : > { %v14545_v5 = vadd.f32 %v16603_v33, %v4613_v24  ;;  %9305 = vrot.lane.b32.xlu0 %v16605_v55, %s12338_s8  ;;  %v14565_v36 = vadd.f32 %v16606_v38, %v4615_v60  ;;  %v4602_v13 = vmul.f32 %v4558_v61, %v4489_v31  ;;  %v4477_v12 = vpop.permute.xlu0 %4476  ;;  %v4566_v41 = vrot.slane %v14283_v58, %v13719_v37  ;;  %v16611_v33 = vld [vmem:[#allocation53_spill] sm:$0xff]  ;;  %v16613_v61 = vld [vmem:[#allocation54_spill] sm:$0xff]  ;;  %v16615_v38 = vld [vmem:[#allocation55_spill] sm:$0xff] }
 0x327   : > { %v14555_v63 = vadd.f32 %v16604_v56, %v4614_v6  ;;  %v4617_v23 = vadd.f32 %v4601_v8, %v14294_v29  ;;  %v14575_v52 = vadd.f32 %v16607_v9, %v4616_v44  ;;  %v4488_v16 = vsel %vm4484_vm4, %v4475_v19, %v4477_v12  ;;  %v16608_v29 = vld [vmem:[#allocation100_spill] sm:$0xff]  ;;  %v16618_v9 = vld [vmem:[#allocation42_spill] sm:$0xff] }
 0x328   : > { %9307 = vrot.lane.b32.xlu1 %v14026_v27, %s12338_s8  ;;  %v4618_v24 = vadd.f32 %v4602_v13, %v14320_v42  ;;  %v4603_v54 = vmul.f32 %v4562_v2, %v4488_v16  ;;  %v4479_v11 = vpop.permute.xlu1 %4478  ;;  %v4570_v27 = vrot.slane %v14283_v58, %v13722_v51  ;;  %v4514_v50 = vrot.slane %v14221_v34, %v13696_v10  ;;  %v16614_v2 = vld [vmem:[#allocation68_spill] sm:$0xff] }
 0x329   : > { %v14585_v18 = vadd.f32 %v16609_v15, %v4617_v23  ;;  %v4487_v46 = vsel %vm4484_vm4, %v4477_v12, %v4479_v11  ;;  %v14591_v6 = vor.u32 %v6348_v17, %v6347_v32  ;;  %v4574_v45 = vrot.slane %v14283_v58, %v13728_v35  ;;  %v16616_v13 = vld [vmem:[#allocation72_spill] sm:$0xff] }
 0x32a   : > { %9309 = vrot.lane.b32.xlu0 %v16608_v29, %s12338_s8  ;;  %v4619_v42 = vadd.f32 %v4603_v54, %v14344_v30  ;;  %v4604_v1 = vmul.f32 %v4566_v41, %v4487_v46  ;;  %v4481_v4 = vpop.permute.xlu0 %4480  ;;  %v14599_v7 = vadd.f32 %v16611_v33, %v4618_v24  ;;  %v16617_v41 = vld [vmem:[#allocation56_spill] sm:$0xff]  ;;  %v16620_v29 = vld [vmem:[#allocation57_spill] sm:$0xff] }
 0x32b   : > { %v4486_v60 = vsel %vm4484_vm4, %v4479_v11, %v4481_v4  ;;  %v6367_v54 = vrot.slane %v14591_v6, %v13638_v0 }
 0x32c   : > { %9311 = vrot.lane.b32.xlu1 %v16610_v26, %s12338_s8  ;;  %v4620_v34 = vadd.f32 %v4604_v1, %v14368_v22  ;;  %v4605_v47 = vmul.f32 %v4570_v27, %v4486_v60  ;;  %v4483_v30 = vpop.permute.xlu1 %4482  ;;  %v14607_v56 = vadd.f32 %v16613_v61, %v4619_v42  ;;  %v6359_v22 = vrot.slane %v14591_v6, %v13696_v10  ;;  %v16622_v60 = vld [vmem:[#allocation74_spill] sm:$0xff] }
 0x32d   : > { %v4485_v28 = vsel %vm4484_vm4, %v4481_v4, %v4483_v30  ;;  %v4500_v58 = vsel %vm4484_vm4, %v4483_v30, %v14394_v43  ;;  %v6371_v1 = vrot.slane %v14591_v6, %v13674_v57  ;;  %v6352_v30 = vld [vmem:[#allocation16 + $0x45] ss:$8 sm:$0xf0] }
 0x32e   : > { %9313 = vrot.lane.b32.xlu0 %v16612_v39, %s12338_s8  ;;  %v4621_v44 = vadd.f32 %v4605_v47, %v14386_v62  ;;  %v4591_v8 = vmul.f32 %v4514_v50, %v4500_v58  ;;  %v4606_v55 = vmul.f32 %v4574_v45, %v4485_v28  ;;  %v14618_v19 = vpop.permute.xlu0 %6297  ;;  %v14623_v31 = vadd.f32 %v16615_v38, %v4620_v34  ;;  %v16621_v50 = vld [vmem:[#allocation73_spill] sm:$0xff]  ;;  %v16624_v38 = vld [vmem:[#allocation104_spill] sm:$0xff] }
 0x32f   : > { %v6363_v62 = vrot.slane %v14591_v6, %v13635_v21  ;;  %v6375_v34 = vrot.slane %v14591_v6, %v13705_v53  ;;  %v6351_v39 = vld [vmem:[#allocation16 + $0x45] ss:$8 sm:$0xf] }
 0x330   : > { %9315 = vrot.lane.b32.xlu1 %v16614_v2, %s12338_s8  ;;  %v4607_v23 = vadd.f32 %v4591_v8, %v14415_v14  ;;  %v4622_v43 = vadd.f32 %v4606_v55, %v14418_v20  ;;  %v6300_v12 = vpop.permute.xlu1 %6299  ;;  %v14632_v32 = vadd.f32 %v16617_v41, %v4621_v44  ;;  %v16619_v20 = vld [vmem:[#allocation103_spill] sm:$0xff] }
 0x331   : > { %v6344_v17 = vsel %vm6329_vm5, %v14618_v19, %v6300_v12 }
 0x332   : > { %9317 = vrot.lane.b32.xlu0 %v16616_v13, %s12338_s8  ;;  %v5452_v16 = vadd.f32 %v16618_v9, %v4607_v23  ;;  %v6436_v24 = vmul.f32 %v6359_v22, %v6344_v17  ;;  %v6302_v14 = vpop.permute.xlu0 %6301  ;;  %v14643_v11 = vadd.f32 %v16620_v29, %v4622_v43  ;;  %v6379_v22 = vrot.slane %v14591_v6, %v13719_v37 }
 0x333   : > { %v6343_v27 = vsel %vm6329_vm5, %v6300_v12, %v6302_v14  ;;  %v6353_v23 = vor.u32 %v6352_v30, %v6351_v39  ;;  %v7347_v39 = vld [vmem:[#allocation16 + $0x6] ss:$8 sm:$0xf] }
 0x334   : > { %9319 = vrot.lane.b32.xlu1 %v16619_v20, %s12338_s8  ;;  %v14647_v15 = vadd.f32 %v6436_v24, %v5452_v16  ;;  %v6437_v46 = vmul.f32 %v6363_v62, %v6343_v27  ;;  %v6304_v42 = vpop.permute.xlu1 %6303  ;;  %v7348_v30 = vld [vmem:[#allocation16 + $0x6] ss:$8 sm:$0xf0] }
 0x335   : > { %v6342_v4 = vsel %vm6329_vm5, %v6302_v14, %v6304_v42  ;;  %v6391_v24 = vrot.slane %v6353_v23, %v13696_v10 }
 0x336   : > { %9321 = vrot.lane.b32.xlu0 %v16621_v50, %s12338_s8  ;;  %v14656_v26 = vadd.f32 %v6437_v46, %v14478_v40  ;;  %v6438_v45 = vmul.f32 %v6367_v54, %v6342_v4  ;;  %v6306_v33 = vpop.permute.xlu0 %6305  ;;  %v16623_v40 = vld [vmem:[#allocation76_spill] sm:$0xff]  ;;  %v6399_v50 = vrot.slane %v6353_v23, %v13638_v0 }
 0x337   : > { %v6341_v47 = vsel %vm6329_vm5, %v6304_v42, %v6306_v33 }
 0x338   : > { %9323 = vrot.lane.b32.xlu1 %v16622_v60, %s12338_s8  ;;  %v14665_v61 = vadd.f32 %v6438_v45, %v14495_v48  ;;  %v6439_v28 = vmul.f32 %v6371_v1, %v6341_v47  ;;  %v6308_v58 = vpop.permute.xlu1 %6307  ;;  %v6383_v48 = vrot.slane %v14591_v6, %v13722_v51  ;;  %v6403_v45 = vrot.slane %v6353_v23, %v13674_v57 }
 0x339   : > { %v6340_v44 = vsel %vm6329_vm5, %v6306_v33, %v6308_v58  ;;  %v6407_v47 = vrot.slane %v6353_v23, %v13705_v53 }
 0x33a   : > { %9325 = vrot.lane.b32.xlu0 %v16623_v40, %s12338_s8  ;;  %v14674_v8 = vadd.f32 %v6439_v28, %v14512_v25  ;;  %v6440_v55 = vmul.f32 %v6375_v34, %v6340_v44  ;;  %v6310_v2 = vpop.permute.xlu0 %6309  ;;  %v6387_v25 = vrot.slane %v14591_v6, %v13728_v35  ;;  %v6395_v6 = vrot.slane %v6353_v23, %v13635_v21 }
 0x33b   : > { %v6339_v43 = vsel %vm6329_vm5, %v6308_v58, %v6310_v2  ;;  %v14725_v44 = vor.u32 %v7348_v30, %v7347_v39 }
 0x33c   : > { %9327 = vrot.lane.b32.xlu1 %v16624_v38, %s12338_s8  ;;  %v14683_v13 = vadd.f32 %v6440_v55, %v14524_v59  ;;  %v6441_v12 = vmul.f32 %v6379_v22, %v6339_v43  ;;  %v6312_v62 = vpop.permute.xlu1 %6311  ;;  %v6411_v22 = vrot.slane %v6353_v23, %v13719_v37  ;;  %v6419_v43 = vrot.slane %v6353_v23, %v13728_v35  ;;  %s14893_s8 = sld [smem:[#allocation12 + %s10320_s26]]  ;;  %s10980_s26 = sadd.s32 7, %s14864_s1 }
 0x33d   : > { %v6338_v41 = vsel %vm6329_vm5, %v6310_v2, %v6312_v62  ;;  %s14945_s1 = sld [smem:[#allocation12 + %s10980_s26]] }
 0x33e   : > { %v14690_v17 = vadd.f32 %v6441_v12, %v14536_v49  ;;  %v6442_v9 = vmul.f32 %v6383_v48, %v6338_v41  ;;  %v6314_v16 = vpop.permute.xlu0 %6313  ;;  %v6415_v48 = vrot.slane %v6353_v23, %v13722_v51 }
 0x33f   : > { %v6337_v14 = vsel %vm6329_vm5, %v6312_v62, %v6314_v16 }
 0x340   : > { %v14696_v59 = vadd.f32 %v6442_v9, %v14545_v5  ;;  %v6443_v20 = vmul.f32 %v6387_v25, %v6337_v14  ;;  %v6316_v54 = vpop.permute.xlu1 %6315 }
 0x341   : > { %v6336_v29 = vsel %vm6329_vm5, %v6314_v16, %v6316_v54 }
 0x342   : > { %v14702_v49 = vadd.f32 %v6443_v20, %v14555_v63  ;;  %v6444_v27 = vmul.f32 %v6391_v24, %v6336_v29  ;;  %v6318_v46 = vpop.permute.xlu0 %6317 }
 0x343   : > { %v6335_v42 = vsel %vm6329_vm5, %v6316_v54, %v6318_v46 }
 0x344   : > { %16625 = vst [vmem:[#allocation69_spill] sm:$0xff] %v14702_v49  ;;  %v14708_v5 = vadd.f32 %v6444_v27, %v14565_v36  ;;  %v6445_v1 = vmul.f32 %v6395_v6, %v6335_v42  ;;  %v6320_v4 = vpop.permute.xlu1 %6319  ;;  %v7367_v27 = vrot.slane %v14725_v44, %v13638_v0  ;;  %v7371_v42 = vrot.slane %v14725_v44, %v13674_v57 }
 0x345   : > { %v6334_v33 = vsel %vm6329_vm5, %v6318_v46, %v6320_v4  ;;  %v15029_v49 = vstv %s14906_s4  ;;  %s15569_s4 = scalar_lea.vmem [#allocation18], %s12827_s17  ;;  %s11607_s17 = sshll.u32 %s16445_s29, 4 }
 0x346   : > { %v14714_v63 = vadd.f32 %v6445_v1, %v14575_v52  ;;  %v6446_v60 = vmul.f32 %v6399_v50, %v6334_v33  ;;  %v6322_v34 = vpop.permute.xlu0 %6321  ;;  %16647 = vst [vmem:[#allocation67_spill] sm:$0xff] %v15029_v49  ;;  %s11146_s29 = sshll.u32 %s15569_s4, 4  ;;  %s16176_s29 = int_to_ptr.vmem [resolvable:$true] %s11146_s29 }
 0x347   : > { %v6333_v36 = vsel %vm6329_vm5, %v6320_v4, %v6322_v34  ;;  %s12143_s27 = scalar_lea.vmem %s16176_s29, 2048 }
 0x348   : > { %v14720_v28 = vadd.f32 %v6446_v60, %v14585_v18  ;;  %v6447_v40 = vmul.f32 %v6403_v45, %v6333_v36  ;;  %v6324_v58 = vpop.permute.xlu1 %6323  ;;  %v7375_v60 = vrot.slane %v14725_v44, %v13705_v53  ;;  %p12144_p13 = scmp.ne.s32.totalorder %s16176_s29, %s12143_s27 }
 0x349   : > { %v6332_v52 = vsel %vm6329_vm5, %v6322_v34, %v6324_v58  ;;  %v7351_v34 = vld [vmem:[#allocation16 + $0x46] ss:$8 sm:$0xf] }
 0x34a   : > { %v14728_v55 = vadd.f32 %v6447_v40, %v14599_v7  ;;  %v6448_v2 = vmul.f32 %v6407_v47, %v6332_v52  ;;  %v6326_v38 = vpop.permute.xlu0 %6325  ;;  %v7352_v47 = vld [vmem:[#allocation16 + $0x46] ss:$8 sm:$0xf0]  ;;  %v7379_v40 = vrot.slane %v14725_v44, %v13719_v37 }
 0x34b   : > { %v6331_v18 = vsel %vm6329_vm5, %v6324_v58, %v6326_v38 }
 0x34c   : > { %v14735_v12 = vadd.f32 %v6448_v2, %v14607_v56  ;;  %v6449_v62 = vmul.f32 %v6411_v22, %v6331_v18  ;;  %v6328_v25 = vpop.permute.xlu1 %6327  ;;  %v7359_v56 = vrot.slane %v14725_v44, %v13696_v10  ;;  %v7383_v2 = vrot.slane %v14725_v44, %v13722_v51 }
 0x34d   : > { %v6330_v41 = vsel %vm6329_vm5, %v6326_v38, %v6328_v25  ;;  %v6345_v7 = vsel %vm6329_vm5, %v6328_v25, %v14618_v19  ;;  %v7363_v19 = vrot.slane %v14725_v44, %v13635_v21  ;;  %v7353_v38 = vor.u32 %v7352_v47, %v7351_v34 }
 0x34e   : > { %v14744_v9 = vadd.f32 %v6449_v62, %v14623_v31  ;;  %v6450_v23 = vmul.f32 %v6415_v48, %v6330_v41  ;;  %v6451_v16 = vmul.f32 %v6419_v43, %v6345_v7  ;;  %v14746_v24 = vpop.permute.xlu0 %7297 }
 0x34f   : > { %v7391_v7 = vrot.slane %v7353_v38, %v13696_v10 }
 0x350   : > { %v14751_v14 = vadd.f32 %v6450_v23, %v14632_v32  ;;  %v14754_v20 = vadd.f32 %v6451_v16, %v14643_v11  ;;  %v7300_v54 = vpop.permute.xlu1 %7299  ;;  %v7395_v16 = vrot.slane %v7353_v38, %v13635_v21 }
 0x351   : > { %v7344_v31 = vsel %vm7329_vm6, %v14746_v24, %v7300_v54 }
 0x352   : > { %v7436_v6 = vmul.f32 %v7359_v56, %v7344_v31  ;;  %v7302_v29 = vpop.permute.xlu0 %7301 }
 0x353   : > { %v7343_v32 = vsel %vm7329_vm6, %v7300_v54, %v7302_v29 }
 0x354   : > { %v14766_v46 = vadd.f32 %v7436_v6, %v14647_v15  ;;  %v7437_v11 = vmul.f32 %v7363_v19, %v7343_v32  ;;  %v7304_v50 = vpop.permute.xlu1 %7303 }
 0x355   : > { %v7342_v1 = vsel %vm7329_vm6, %v7302_v29, %v7304_v50 }
 0x356   : > { %16626 = vst [vmem:[#allocation70_spill] sm:$0xff] %v14766_v46  ;;  %v14773_v4 = vadd.f32 %v7437_v11, %v14656_v26  ;;  %v7438_v45 = vmul.f32 %v7367_v27, %v7342_v1  ;;  %v7306_v33 = vpop.permute.xlu0 %7305  ;;  %v7403_v27 = vrot.slane %v7353_v38, %v13674_v57  ;;  %v7407_v1 = vrot.slane %v7353_v38, %v13705_v53 }
 0x357   : > { %v7341_v15 = vsel %vm7329_vm6, %v7304_v50, %v7306_v33 }
 0x358   : > { %16627 = vst [vmem:[#allocation71_spill] sm:$0xff] %v14773_v4  ;;  %v14780_v39 = vadd.f32 %v7438_v45, %v14665_v61  ;;  %v7439_v30 = vmul.f32 %v7371_v42, %v7341_v15  ;;  %v7308_v36 = vpop.permute.xlu1 %7307  ;;  %v7411_v15 = vrot.slane %v7353_v38, %v13719_v37 }
 0x359   : > { %v7340_v26 = vsel %vm7329_vm6, %v7306_v33, %v7308_v36 }
 0x35a   : > { %16628 = vst [vmem:[#allocation75_spill] sm:$0xff] %v14780_v39  ;;  %v14787_v58 = vadd.f32 %v7439_v30, %v14674_v8  ;;  %v7440_v22 = vmul.f32 %v7375_v60, %v7340_v26  ;;  %v7310_v52 = vpop.permute.xlu0 %7309  ;;  %v16646_v39 = vld [vmem:[#allocation62_spill] sm:$0xff] }
 0x35b   : > { %v7339_v61 = vsel %vm7329_vm6, %v7308_v36, %v7310_v52  ;;  %v7415_v36 = vrot.slane %v7353_v38, %v13722_v51 }
 0x35c   : > { %16629 = vst [vmem:[#allocation80_spill] sm:$0xff] %v14787_v58  ;;  %v14794_v48 = vadd.f32 %v7440_v22, %v14683_v13  ;;  %v7441_v43 = vmul.f32 %v7379_v40, %v7339_v61  ;;  %v14796_v18 = vpop.permute.xlu1 %7311  ;;  %v7419_v40 = vrot.slane %v7353_v38, %v13728_v35 }
 0x35d   : > { %v7338_v8 = vsel %vm7329_vm6, %v7310_v52, %v14796_v18 }
 0x35e   : > { %16630 = vst [vmem:[#allocation81_spill] sm:$0xff] %v14794_v48  ;;  %v14802_v62 = vadd.f32 %v7441_v43, %v14690_v17  ;;  %v7442_v25 = vmul.f32 %v7383_v2, %v7338_v8  ;;  %v14804_v41 = vpop.permute.xlu0 %7313  ;;  %v7399_v17 = vrot.slane %v7353_v38, %v13638_v0  ;;  %v15013_v48 = vstv %s14893_s8 }
 0x35f   : > { %16644 = vst [vmem:[#allocation66_spill] sm:$0xff] %v15013_v48 }
 0x360   : > { %16631 = vst [vmem:[#allocation59_spill] sm:$0xff] %v14802_v62  ;;  %v14808_v23 = vadd.f32 %v7442_v25, %v14696_v59  ;;  %v7316_v13 = vpop.permute.xlu1 %7315  ;;  %v11551_v62 = vld [vmem:[%s12839_s20 + $0x3] ss:$8 sm:$0xf0] }
 0x361   : > { %v7336_v56 = vsel %vm7329_vm6, %v14804_v41, %v7316_v13 }
 0x362   : > { %16632 = vst [vmem:[#allocation60_spill] sm:$0xff] %v14808_v23  ;;  %v7444_v54 = vmul.f32 %v7391_v7, %v7336_v56  ;;  %v7318_v19 = vpop.permute.xlu0 %7317 }
 0x363   : > { %v7335_v31 = vsel %vm7329_vm6, %v7316_v13, %v7318_v19 }
 0x364   : > { %v14818_v6 = vadd.f32 %v7444_v54, %v14708_v5  ;;  %v7445_v29 = vmul.f32 %v7395_v16, %v7335_v31  ;;  %v7320_v59 = vpop.permute.xlu1 %7319  ;;  %v8351_v16 = vld [vmem:[#allocation16 + $0x47] ss:$8 sm:$0xf]  ;;  %v9347_v54 = vld [vmem:[#allocation16 + $0x80] ss:$8 sm:$0xf] }
 0x365   : > { %v7334_v32 = vsel %vm7329_vm6, %v7318_v19, %v7320_v59  ;;  %v9348_v19 = vld [vmem:[#allocation16 + $0x80] ss:$8 sm:$0xf0] }
 0x366   : > { %v14824_v11 = vadd.f32 %v7445_v29, %v14714_v63  ;;  %v7446_v50 = vmul.f32 %v7399_v17, %v7334_v32  ;;  %v7322_v42 = vpop.permute.xlu0 %7321  ;;  %v11526_v29 = vld [vmem:[%s12839_s20 + $0x1] ss:$8 sm:$0xf] }
 0x367   : > { %v7333_v45 = vsel %vm7329_vm6, %v7320_v59, %v7322_v42  ;;  %v14986_v59 = vld [vmem:[%s12831_s28 + $0x2] ss:$8 sm:$0xf0] }
 0x368   : > { %v14830_v5 = vadd.f32 %v7446_v50, %v14720_v28  ;;  %v7447_v33 = vmul.f32 %v7403_v27, %v7333_v45  ;;  %v7324_v60 = vpop.permute.xlu1 %7323  ;;  %v12339_v45 = vmov 1966171168   ;;  %v14975_v50 = vld [vmem:[%s12831_s28 + $0x1] ss:$8 sm:$0xf] }
 0x369   : > { %v7332_v34 = vsel %vm7329_vm6, %v7322_v42, %v7324_v60  ;;  %v14972_v42 = vstv %s14879_s14  ;;  %v14978_v27 = vld [vmem:[%s12831_s28 + $0x1] ss:$8 sm:$0xf0] }
 0x36a   : > { %v14836_v63 = vadd.f32 %v7447_v33, %v14728_v55  ;;  %v7448_v47 = vmul.f32 %v7407_v1, %v7332_v34  ;;  %v7326_v30 = vpop.permute.xlu0 %7325  ;;  %v14912_v1 = vor.u32 %v9348_v19, %v9347_v54  ;;  %v9752_v33 = vunpack.c.l.s4 %v12339_v45  ;;  %v14955_v54 = vld [vmem:[%s12831_s28] ss:$8 sm:$0xf]  ;;  %16641 = vst [vmem:[#allocation84_spill] sm:$0xff] %v14972_v42 }
 0x36b   : > { %v7331_v28 = vsel %vm7329_vm6, %v7324_v60, %v7326_v30  ;;  %v14958_v19 = vld [vmem:[%s12831_s28] ss:$8 sm:$0xf0]  ;;  %v15004_v42 = vld [vmem:[%s12831_s28 + $0x3] ss:$8 sm:$0xf0] }
 0x36c   : > { %v14843_v26 = vadd.f32 %v7448_v47, %v14735_v12  ;;  %v7449_v22 = vmul.f32 %v7411_v15, %v7331_v28  ;;  %v7328_v52 = vpop.permute.xlu1 %7327  ;;  %16636 = vst [vmem:[#allocation61_spill] sm:$0xff] %v14912_v1  ;;  %v9703_v45 = vld [vmem:[%s12839_s20] ss:$8 sm:$0xf]  ;;  %v14998_v28 = vstv %s14891_s11  ;;  %v15032_v1 = vstv %s14914_s30  ;;  %s12340_s11 = smov [#allocation18]  }
 0x36d   : > { %v7330_v2 = vsel %vm7329_vm6, %v7326_v30, %v7328_v52  ;;  %v7345_v55 = vsel %vm7329_vm6, %v7328_v52, %v14746_v24  ;;  %v8348_v24 = vld [vmem:[#allocation16 + $0x7] ss:$8 sm:$0xf0]  ;;  %v9704_v30 = vld [vmem:[%s12839_s20] ss:$8 sm:$0xf0] }
 0x36e   : > { %v14851_v61 = vadd.f32 %v7449_v22, %v14744_v9  ;;  %v7450_v43 = vmul.f32 %v7415_v36, %v7330_v2  ;;  %v7451_v38 = vmul.f32 %v7419_v40, %v7345_v55  ;;  %v14853_v8 = vpop.permute.xlu0 %8297  ;;  %v8347_v9 = vld [vmem:[#allocation16 + $0x7] ss:$8 sm:$0xf]  ;;  %v9351_v47 = vld [vmem:[#allocation16 + $0xc0] ss:$8 sm:$0xf]  ;;  %v14993_v55 = vstv %s14886_s23 }
 0x36f   : > { %v9352_v15 = vld [vmem:[#allocation16 + $0xc0] ss:$8 sm:$0xf0]  ;;  %16642 = vst [vmem:[#allocation65_spill] sm:$0xff] %v14993_v55  ;;  %16643 = vst [vmem:[#allocation86_spill] sm:$0xff] %v14998_v28  ;;  %v15036_v46 = vor.u32 %v9704_v30, %v9703_v45  ;;  %v15089_v45 = vstv %s14945_s1  ;;  %s11130_s23 = scalar_lea.sflag [#allocation5], %s12824_s0 }
 0x370   : > { %v14856_v25 = vadd.f32 %v7450_v43, %v14751_v14  ;;  %v14859_v12 = vadd.f32 %v7451_v38, %v14754_v20  ;;  %v14861_v7 = vpop.permute.xlu1 %8299  ;;  %v8352_v14 = vld [vmem:[#allocation16 + $0x47] ss:$8 sm:$0xf0]  ;;  %v14874_v20 = vor.u32 %v8348_v24, %v8347_v9  ;;  %v14950_v24 = vstv %s14868_s12  ;;  %v11527_v38 = vld [vmem:[%s12839_s20 + $0x1] ss:$8 sm:$0xf0] }
 0x371   : > { %v14889_v31 = vor.u32 %v8352_v14, %v8351_v16  ;;  %16638 = vst [vmem:[#allocation83_spill] sm:$0xff] %v14950_v24  ;;  %v9753_v14 = vunpack.c.0.s8 %v9752_v33  ;;  %v14965_v9 = vstv %s14870_s22  ;;  %v14983_v43 = vld [vmem:[%s12831_s28 + $0x2] ss:$8 sm:$0xf]  ;;  %v15018_v24 = vstv %s14904_s21  ;;  %16648 = vst [vmem:[#allocation94_spill] sm:$0xff] %v15032_v1  ;;  %s12147_s8 = sshll.u32 %s12340_s11, 4  ;;  %s12148_s8 = int_to_ptr.vmem [resolvable:$false] %s12147_s8 }
 0x372   : > { %16634 = vst [vmem:[#allocation58_spill] sm:$0xff] %v14856_v25  ;;  %16635 = vst [vmem:[#allocation82_spill] sm:$0xff] %v14859_v12  ;;  %v14866_v13 = vpop.permute.xlu0 %8301  ;;  %v11538_v2 = vld [vmem:[%s12839_s20 + $0x2] ss:$8 sm:$0xf]  ;;  %v15040_v25 = vor.u32 %v9352_v15, %v9351_v47  ;;  %v15046_v1 = vor.u32 %v11527_v38, %v11526_v29  ;;  %s12149_s21 = scalar_lea.vmem %s12148_s8, 4096  ;;  %p12150_p8 = scmp.lt.s32.totalorder %s16176_s29, %s12148_s8 }
 0x373   : > { %v8391_v36 = vrot.slane %v14889_v31, %v13696_v10  ;;  %16640 = vst [vmem:[#allocation87_spill] sm:$0xff] %v14965_v9  ;;  %v11539_v22 = vld [vmem:[%s12839_s20 + $0x2] ss:$8 sm:$0xf0]  ;;  %16645 = vst [vmem:[#allocation88_spill] sm:$0xff] %v15018_v24  ;;  %v15024_v4 = vsub.s32 %v9753_v14, %v16646_v39  ;;  %v9698_v24 = vor.u32 %v14958_v19, %v14955_v54  ;;  %p12151_p10 = scmp.lt.s32.totalorder %s12149_s21, %s12143_s27 }
 0x374   : > { %v14876_v56 = vpop.permute.xlu1 %8303  ;;  %v15001_v40 = vld [vmem:[%s12831_s28 + $0x3] ss:$8 sm:$0xf]  ;;  %v11558_v28 = vld [vmem:[%s12831_s28 + $0x4] ss:$8 sm:$0xf]  ;;  %v9977_v14 = vor.u32 %v14978_v27, %v14975_v50  ;;  %v16650_v15 = vrot.slane %v14889_v31, %v13635_v21  ;;  %v15058_v19 = vor.u32 %v11539_v22, %v11538_v2  ;;  %v16651_v22 = vrot.slane %v14889_v31, %v13638_v0 }
 0x375   : > { %v11550_v55 = vld [vmem:[%s12839_s20 + $0x3] ss:$8 sm:$0xf]  ;;  %v11559_v9 = vld [vmem:[%s12831_s28 + $0x4] ss:$8 sm:$0xf0]  ;;  %v10307_v29 = vor.u32 %v15004_v42, %v15001_v40  ;;  %p12152_p6 = por %p12151_p10, %p12150_p8 }
 0x376   : > { %v14884_v17 = vpop.permute.xlu0 %8305  ;;  %v11562_v16 = vld [vmem:[%s12839_s20 + $0x4] ss:$8 sm:$0xf]  ;;  %v11570_v12 = vld [vmem:[%s12831_s28 + $0x5] ss:$8 sm:$0xf]  ;;  %v15064_v27 = vor.u32 %v11551_v62, %v11550_v55 }
 0x377   : > { %v11563_v33 = vld [vmem:[%s12839_s20 + $0x4] ss:$8 sm:$0xf0]  ;;  %16649 = vst [vmem:[#allocation89_spill] sm:$0xff] %v15040_v25  ;;  %16652 = vst [vmem:[#allocation95_spill] sm:$0xff] %v15089_v45 }
 0x378   : > { %v14902_v32 = vpop.permute.xlu1 %8307  ;;  %v11575_v30 = vld [vmem:[%s12839_s20 + $0x5] ss:$8 sm:$0xf0]  ;;  %v11582_v50 = vld [vmem:[%s12831_s28 + $0x6] ss:$8 sm:$0xf] }
 0x379   : > { %v11587_v2 = vld [vmem:[%s12839_s20 + $0x6] ss:$8 sm:$0xf0] }
 0x37a   : > { %v14921_v34 = vpop.permute.xlu0 %8309 }
 0x37c   : > { %v14935_v52 = vpop.permute.xlu1 %8311 }
 0x37d   : > { %16637 = vst [vmem:[#allocation85_spill] sm:$0xff] %v14935_v52 }
 0x37e   : > { %v14962_v60 = vpop.permute.xlu0 %8313 }
 0x37f   : > { %16639 = vst [vmem:[#allocation63_spill] sm:$0xff] %v14962_v60 }
 0x380   : > { %v8316_v23 = vpop.permute.xlu1 %8315 }
 0x381   : > { %v8336_v58 = vsel %vm8329_vm7, %v14962_v60, %v8316_v23  ;;  %v11571_v60 = vld [vmem:[%s12831_s28 + $0x5] ss:$8 sm:$0xf0] }
 0x382   : > { %v8444_v48 = vmul.f32 %v8391_v36, %v8336_v58  ;;  %v8318_v52 = vpop.permute.xlu0 %8317  ;;  %v10142_v58 = vor.u32 %v14986_v59, %v14983_v43  ;;  %v11574_v36 = vld [vmem:[%s12839_s20 + $0x5] ss:$8 sm:$0xf]  ;;  %v11583_v43 = vld [vmem:[%s12831_s28 + $0x6] ss:$8 sm:$0xf0]  ;;  %v10637_v62 = vor.u32 %v11571_v60, %v11570_v12  ;;  %v16653_v60 = vrot.slane %v14889_v31, %v13674_v57 }
 0x383   : > { %v8335_v39 = vsel %vm8329_vm7, %v8316_v23, %v8318_v52 }
 0x384   : > { %v15053_v54 = vadd.f32 %v8444_v48, %v14818_v6  ;;  %v8445_v47 = vmul.f32 %v16650_v15, %v8335_v39  ;;  %v8320_v23 = vpop.permute.xlu1 %8319  ;;  %v10472_v48 = vor.u32 %v11559_v9, %v11558_v28  ;;  %v15066_v6 = vor.u32 %v11563_v33, %v11562_v16  ;;  %v11586_v28 = vld [vmem:[%s12839_s20 + $0x6] ss:$8 sm:$0xf]  ;;  %v11594_v9 = vld [vmem:[%s12831_s28 + $0x7] ss:$8 sm:$0xf] }
 0x385   : > { %v8334_v59 = vsel %vm8329_vm7, %v8318_v52, %v8320_v23  ;;  %v15077_v52 = vor.u32 %v11575_v30, %v11574_v36  ;;  %v11595_v16 = vld [vmem:[%s12831_s28 + $0x7] ss:$8 sm:$0xf0]  ;;  %v15100_v30 = vsub.f32 %v9977_v14, %v15046_v1  ;;  %v8344_v14 = vsel %vm8329_vm7, %v14853_v8, %v14861_v7 }
 0x386   : > { %v15071_v38 = vadd.f32 %v8445_v47, %v14824_v11  ;;  %v8446_v42 = vmul.f32 %v16651_v22, %v8334_v59  ;;  %v15084_v11 = vsub.f32 %v9698_v24, %v15036_v46  ;;  %v15103_v24 = vsub.f32 %v10142_v58, %v15058_v19  ;;  %v11598_v15 = vld [vmem:[%s12839_s20 + $0x7] ss:$8 sm:$0xf] }
 0x387   : > { %v11599_v47 = vld [vmem:[%s12839_s20 + $0x7] ss:$8 sm:$0xf0]  ;;  %v15110_v59 = vsub.f32 %v10307_v29, %v15064_v27  ;;  %v10802_v22 = vor.u32 %v11583_v43, %v11582_v50  ;;  %v15126_v29 = vsub.f32 %v10637_v62, %v15077_v52  ;;  %v15130_v50 = vor.u32 %v11587_v2, %v11586_v28 }
 0x388   : > { %v8322_v40 = vpop.permute.xlu0 %8321  ;;  %v15094_v12 = vadd.f32 %v8446_v42, %v14830_v5  ;;  %v15113_v5 = vsub.f32 %v10472_v48, %v15066_v6  ;;  %v16654_v42 = vrot.slane %v14889_v31, %v13705_v53  ;;  %v10967_v43 = vor.u32 %v11595_v16, %v11594_v9 }
 0x389   : > { %v8333_v55 = vsel %vm8329_vm7, %v8320_v23, %v8322_v40  ;;  %v8324_v36 = vpop.permute.xlu1 %8323  ;;  %16655 = vst [vmem:[#allocation90_spill] sm:$0xff] %v15126_v29  ;;  %16656 = vst [vmem:[#allocation91_spill] sm:$0xff] %v15130_v50  ;;  %v16659_v28 = vrot.slane %v14889_v31, %v13719_v37  ;;  %v16660_v16 = vrot.slane %v14874_v20, %v13696_v10 }
 0x38a   : > { %v8447_v39 = vmul.f32 %v16653_v60, %v8333_v55  ;;  %v8332_v23 = vsel %vm8329_vm7, %v8322_v40, %v8324_v36  ;;  %v15132_v60 = vor.u32 %v11599_v47, %v11598_v15  ;;  %v16662_v47 = vrot.slane %v14889_v31, %v13722_v51 }
 0x38b   : > { %v8448_v55 = vmul.f32 %v16654_v42, %v8332_v23 }
 0x38c   : > { %v15120_v58 = vadd.f32 %v8447_v39, %v14836_v63  ;;  %v8326_v40 = vpop.permute.xlu0 %8325  ;;  %16657 = vst [vmem:[#allocation43_spill] sm:$0xff] %v15132_v60  ;;  %v7337_v63 = vsel %vm7329_vm6, %v14796_v18, %v14804_v41  ;;  %v8343_v39 = vsel %vm8329_vm7, %v14861_v7, %v14866_v13  ;;  %v8342_v18 = vsel %vm8329_vm7, %v14866_v13, %v14876_v56 }
 0x38d   : > { %v8331_v48 = vsel %vm8329_vm7, %v8324_v36, %v8326_v40  ;;  %v15143_v62 = vadd.f32 %v8448_v55, %v14843_v26  ;;  %v8328_v9 = vpop.permute.xlu1 %8327  ;;  %v8436_v36 = vmul.f32 %v16660_v16, %v8344_v14  ;;  %v8341_v7 = vsel %vm8329_vm7, %v14876_v56, %v14884_v17 }
 0x38e   : > { %v8449_v2 = vmul.f32 %v16659_v28, %v8331_v48  ;;  %v8330_v41 = vsel %vm8329_vm7, %v8326_v40, %v8328_v9  ;;  %v8345_v26 = vsel %vm8329_vm7, %v8328_v9, %v14853_v8  ;;  %v16663_v13 = vrot.slane %v14889_v31, %v13728_v35 }
 0x38f   : > { %16658 = vst [vmem:[#allocation92_spill] sm:$0xff] %v15143_v62  ;;  %v8450_v23 = vmul.f32 %v16662_v47, %v8330_v41  ;;  %v16665_v8 = vrot.slane %v14725_v44, %v13728_v35  ;;  %v16666_v56 = vrot.slane %v14874_v20, %v13635_v21  ;;  %v15185_v48 = vsub.f32 %v10967_v43, %v15132_v60  ;;  %v16692_v60 = vld [vmem:[#allocation63_spill] sm:$0xff] }
 0x390   : > { %v15165_v15 = vadd.f32 %v8449_v2, %v14851_v61  ;;  %v8451_v14 = vmul.f32 %v16663_v13, %v8345_v26  ;;  %v15173_v42 = vpop.permute.xlu0 %9297  ;;  %v15182_v61 = vsub.f32 %v10802_v22, %v15130_v50  ;;  %v8340_v31 = vsel %vm8329_vm7, %v14884_v17, %v14902_v32  ;;  %v16675_v26 = vld [vmem:[#allocation70_spill] sm:$0xff] }
 0x391   : > { %16664 = vst [vmem:[#allocation93_spill] sm:$0xff] %v15173_v42  ;;  %v7443_v55 = vmul.f32 %v16665_v8, %v7337_v63  ;;  %v8437_v40 = vmul.f32 %v16666_v56, %v8343_v39  ;;  %16668 = vst [vmem:[#allocation96_spill] sm:$0xff] %v15185_v48  ;;  %v8339_v44 = vsel %vm8329_vm7, %v14902_v32, %v14921_v34  ;;  %v16669_v63 = vld [vmem:[#allocation58_spill] sm:$0xff]  ;;  %v16682_v32 = vld [vmem:[#allocation71_spill] sm:$0xff] }
 0x392   : > { %16661 = vst [vmem:[#allocation44_spill] sm:$0xff] %v15165_v15  ;;  %16667 = vst [vmem:[#allocation45_spill] sm:$0xff] %v15182_v61  ;;  %v15196_v28 = vadd.f32 %v8450_v23, %v16669_v63  ;;  %v16671_v39 = vld [vmem:[#allocation82_spill] sm:$0xff]  ;;  %v9300_v22 = vpop.permute.xlu1 %9299  ;;  %v16673_v43 = vrot.slane %v14874_v20, %v13638_v0  ;;  %v16674_v16 = vrot.slane %v14874_v20, %v13674_v57  ;;  %v16676_v23 = vld [vmem:[#allocation85_spill] sm:$0xff] }
 0x393   : > { %v15199_v2 = vadd.f32 %v8451_v14, %v16671_v39  ;;  %v9344_v41 = vsel %vm9329_vm8, %v15173_v42, %v9300_v22  ;;  %v8452_v47 = vadd.f32 %v8436_v36, %v16675_v26  ;;  %v8338_v13 = vsel %vm8329_vm7, %v14921_v34, %v16676_v23  ;;  %v16677_v14 = vld [vmem:[#allocation61_spill] sm:$0xff] }
 0x394   : > { %16670 = vst [vmem:[#allocation46_spill] sm:$0xff] %v15196_v28  ;;  %v8438_v9 = vmul.f32 %v16673_v43, %v8342_v18  ;;  %v8439_v17 = vmul.f32 %v16674_v16, %v8341_v7  ;;  %v16678_v18 = vrot.slane %v16677_v14, %v13696_v10  ;;  %v9302_v56 = vpop.permute.xlu0 %9301  ;;  %v16679_v63 = vld [vmem:[#allocation69_spill] sm:$0xff]  ;;  %v16680_v43 = vrot.slane %v14874_v20, %v13705_v53 }
 0x395   : > { %16672 = vst [vmem:[#allocation97_spill] sm:$0xff] %v15199_v2  ;;  %v15223_v39 = vadd.f32 %v7443_v55, %v16679_v63  ;;  %v16681_v16 = vrot.slane %v14874_v20, %v13719_v37  ;;  %v9343_v34 = vsel %vm9329_vm8, %v9300_v22, %v9302_v56  ;;  %v16683_v7 = vrot.slane %v16677_v14, %v13635_v21  ;;  %v16684_v2 = vld [vmem:[#allocation75_spill] sm:$0xff] }
 0x396   : > { %v9436_v8 = vmul.f32 %v16678_v18, %v9344_v41  ;;  %v8440_v36 = vmul.f32 %v16680_v43, %v8340_v31  ;;  %v8453_v41 = vadd.f32 %v8437_v40, %v16682_v32  ;;  %v9304_v55 = vpop.permute.xlu1 %9303  ;;  %v8454_v31 = vadd.f32 %v8438_v9, %v16684_v2  ;;  %v16685_v43 = vld [vmem:[#allocation80_spill] sm:$0xff]  ;;  %v16687_v22 = vld [vmem:[#allocation83_spill] sm:$0xff]  ;;  %v16690_v2 = vld [vmem:[#allocation81_spill] sm:$0xff] }
 0x397   : > { %v8441_v26 = vmul.f32 %v16681_v16, %v8339_v44  ;;  %v9437_v33 = vmul.f32 %v16683_v7, %v9343_v34  ;;  %v8455_v28 = vadd.f32 %v8439_v17, %v16685_v43  ;;  %v16686_v44 = vrot.slane %v14874_v20, %v13722_v51  ;;  %v16691_v17 = vld [vmem:[#allocation59_spill] sm:$0xff] }
 0x398   : > { %v9452_v18 = vadd.f32 %v9436_v8, %v8452_v47  ;;  %v9342_v40 = vsel %vm9329_vm8, %v9302_v56, %v9304_v55  ;;  %v16688_v47 = vld [vmem:[#allocation87_spill] sm:$0xff]  ;;  %v16689_v34 = vrot.slane %v16677_v14, %v13638_v0  ;;  %v9306_v42 = vpop.permute.xlu0 %9305  ;;  %v8456_v9 = vadd.f32 %v8440_v36, %v16690_v2 }
 0x399   : > { %v8442_v16 = vmul.f32 %v16686_v44, %v8338_v13  ;;  %v9453_v7 = vadd.f32 %v9437_v33, %v8453_v41  ;;  %v8457_v43 = vadd.f32 %v8441_v26, %v16691_v17  ;;  %v8337_v13 = vsel %vm8329_vm7, %v16676_v23, %v16692_v60 }
 0x39a   : > { %v9470_v32 = vadd.f32 %v16687_v22, %v9452_v18  ;;  %v9584_v8 = vadd.f32 %v16688_v47, %v9452_v18  ;;  %v9438_v63 = vmul.f32 %v16689_v34, %v9342_v40  ;;  %v9341_v56 = vsel %vm9329_vm8, %v9304_v55, %v9306_v42  ;;  %v9308_v40 = vpop.permute.xlu1 %9307  ;;  %v16693_v34 = vld [vmem:[#allocation60_spill] sm:$0xff] }
 0x39b   : > { %v9471_v33 = vadd.f32 %v16687_v22, %v9453_v7  ;;  %v9585_v41 = vadd.f32 %v16688_v47, %v9453_v7  ;;  %v8458_v48 = vadd.f32 %v8442_v16, %v16693_v34  ;;  %v16694_v26 = vrot.slane %v16677_v14, %v13674_v57 }
 0x39c   : > { %v11482_v44 = vmul.f32 -1.442695, %v9470_v32  ;;  %v11499_v18 = vmul.f32 -1.442695, %v9584_v8  ;;  %v9454_v36 = vadd.f32 %v9438_v63, %v8454_v31  ;;  %v9340_v60 = vsel %vm9329_vm8, %v9306_v42, %v9308_v40  ;;  %v9310_v17 = vpop.permute.xlu0 %9309 }
 0x39d   : > { %v9439_v2 = vmul.f32 %v16694_v26, %v9341_v56  ;;  %v11483_v23 = vmul.f32 -1.442695, %v9471_v33  ;;  %v11500_v55 = vmul.f32 -1.442695, %v9585_v41  ;;  %v16695_v32 = vrot.slane %v16677_v14, %v13705_v53 }
 0x39e   : > { %11813 = vpow2.f32 %v11482_v44  ;;  %v9472_v7 = vadd.f32 %v16687_v22, %v9454_v36  ;;  %v9586_v63 = vadd.f32 %v16688_v47, %v9454_v36  ;;  %v16696_v16 = vrot.slane %v14874_v20, %v13728_v35  ;;  %v9312_v33 = vpop.permute.xlu1 %9311 }
 0x39f   : > { %v9440_v8 = vmul.f32 %v16695_v32, %v9340_v60  ;;  %11815 = vpow2.f32 %v11499_v18  ;;  %v9455_v31 = vadd.f32 %v9439_v2, %v8455_v28  ;;  %v9339_v44 = vsel %vm9329_vm8, %v9308_v40, %v9310_v17 }
 0x3a0   : > { %v8443_v56 = vmul.f32 %v16696_v16, %v8337_v13  ;;  %11817 = vpow2.f32 %v11483_v23  ;;  %v11484_v41 = vmul.f32 -1.442695, %v9472_v7  ;;  %v11501_v34 = vmul.f32 -1.442695, %v9586_v63 }
 0x3a1   : > { %v9456_v42 = vadd.f32 %v9440_v8, %v8456_v9  ;;  %11819 = vpow2.f32 %v11500_v55  ;;  %v9473_v18 = vadd.f32 %v16687_v22, %v9455_v31  ;;  %v9587_v26 = vadd.f32 %v16688_v47, %v9455_v31  ;;  %v9314_v9 = vpop.permute.xlu0 %9313 }
 0x3a2   : > { %v16697_v20 = vrot.slane %v16677_v14, %v13719_v37  ;;  %11821 = vpow2.f32 %v11484_v41  ;;  %v9338_v40 = vsel %vm9329_vm8, %v9310_v17, %v9312_v33  ;;  %v9337_v60 = vsel %vm9329_vm8, %v9312_v33, %v9314_v9  ;;  %v9316_v8 = vpop.permute.xlu1 %9315 }
 0x3a3   : > { %v9474_v36 = vadd.f32 %v16687_v22, %v9456_v42  ;;  %v9588_v28 = vadd.f32 %v16688_v47, %v9456_v42  ;;  %v11485_v2 = vmul.f32 -1.442695, %v9473_v18  ;;  %11823 = vpow2.f32 %v11501_v34 }
 0x3a4   : > { %v9441_v13 = vmul.f32 %v16697_v20, %v9339_v44  ;;  %v11502_v23 = vmul.f32 -1.442695, %v9587_v26  ;;  %v16698_v63 = vrot.slane %v16677_v14, %v13722_v51  ;;  %v16699_v16 = vrot.slane %v16677_v14, %v13728_v35 }
 0x3a5   : > { %v11486_v55 = vmul.f32 -1.442695, %v9474_v36  ;;  %v11503_v32 = vmul.f32 -1.442695, %v9588_v28  ;;  %11825 = vpow2.f32 %v11485_v2  ;;  %v8459_v17 = vadd.f32 %v8443_v56, %v15223_v39  ;;  %v9318_v33 = vpop.permute.xlu0 %9317 }
 0x3a6   : > { %v9457_v7 = vadd.f32 %v9441_v13, %v8457_v43  ;;  %v9442_v31 = vmul.f32 %v16698_v63, %v9338_v40  ;;  %v9443_v42 = vmul.f32 %v16699_v16, %v9337_v60  ;;  %11827 = vpow2.f32 %v11502_v23  ;;  %v9320_v36 = vpop.permute.xlu1 %9319 }
 0x3a7   : > { %v9336_v44 = vsel %vm9329_vm8, %v9314_v9, %v9316_v8  ;;  %v9407_v41 = vrot.slane %v15040_v25, %v13705_v53  ;;  %11829 = vpow2.f32 %v11486_v55  ;;  %v16700_v39 = vrot.slane %v15040_v25, %v13696_v10  ;;  %v16716_v53 = vld [vmem:[#allocation88_spill] sm:$0xff] }
 0x3a8   : > { %v9475_v43 = vadd.f32 %v16687_v22, %v9457_v7  ;;  %v9589_v34 = vadd.f32 %v16688_v47, %v9457_v7  ;;  %v9458_v18 = vadd.f32 %v9442_v31, %v8458_v48  ;;  %v11814_v26 = vpop.eup %11813  ;;  %11831 = vpow2.f32 %v11503_v32 }
 0x3a9   : > { %v9459_v14 = vadd.f32 %v9443_v42, %v8459_v17  ;;  %v9444_v56 = vmul.f32 %v16700_v39, %v9336_v44  ;;  %v11816_v20 = vpop.eup %11815  ;;  %v9534_v13 = vadd.f32 1.0, %v11814_v26  ;;  %v9335_v40 = vsel %vm9329_vm8, %v9316_v8, %v9318_v33 }
 0x3aa   : > { %v11487_v9 = vmul.f32 -1.442695, %v9475_v43  ;;  %v9476_v2 = vadd.f32 %v16687_v22, %v9458_v18  ;;  %v11818_v48 = vpop.eup %11817  ;;  %v9648_v60 = vadd.f32 1.0, %v11816_v20  ;;  %v9590_v23 = vadd.f32 %v16688_v47, %v9458_v18  ;;  %v15321_v20 = vpop.permute.xlu1 %9323 }
 0x3ab   : > { %v9477_v55 = vadd.f32 %v16687_v22, %v9459_v14  ;;  %v9591_v10 = vadd.f32 %v16688_v47, %v9459_v14  ;;  %v11820_v32 = vpop.eup %11819  ;;  %11833 = vrcp.f32 %v9534_v13  ;;  %v9535_v7 = vadd.f32 1.0, %v11818_v48  ;;  %16702 = vst [vmem:[#allocation47_spill] sm:$0xff] %v15321_v20 }
 0x3ac   : > { %v11504_v63 = vmul.f32 -1.442695, %v9589_v34  ;;  %v9460_v31 = vadd.f32 %v9444_v56, %v15053_v54  ;;  %11835 = vrcp.f32 %v9648_v60  ;;  %v9649_v16 = vadd.f32 1.0, %v11820_v32  ;;  %v11822_v44 = vpop.eup %11821  ;;  %v9322_v56 = vpop.permute.xlu0 %9321 }
 0x3ad   : > { %v11488_v42 = vmul.f32 -1.442695, %v9476_v2  ;;  %v11505_v17 = vmul.f32 -1.442695, %v9590_v23  ;;  %11837 = vrcp.f32 %v9535_v7  ;;  %v11489_v8 = vmul.f32 -1.442695, %v9477_v55  ;;  %v11824_v26 = vpop.eup %11823 }
 0x3ae   : > { %v15313_v43 = vmul.f32 -1.442695, %v9591_v10  ;;  %v9478_v18 = vadd.f32 %v16687_v22, %v9460_v31  ;;  %11839 = vrcp.f32 %v9649_v16  ;;  %v9536_v14 = vadd.f32 1.0, %v11822_v44 }
 0x3af   : > { %v16701_v39 = vrot.slane %v15040_v25, %v13635_v21  ;;  %v9334_v54 = vsel %vm9329_vm8, %v9318_v33, %v9320_v36  ;;  %v11826_v13 = vpop.eup %11825  ;;  %v9650_v2 = vadd.f32 1.0, %v11824_v26  ;;  %11841 = vpow2.f32 %v11487_v9 }
 0x3b0   : > { %v15323_v48 = vmul.f32 -1.442695, %v9478_v18  ;;  %v9592_v60 = vadd.f32 %v16688_v47, %v9460_v31  ;;  %v11828_v23 = vpop.eup %11827  ;;  %11843 = vrcp.f32 %v9536_v14  ;;  %v9537_v55 = vadd.f32 1.0, %v11826_v13 }
 0x3b1   : > { %v9445_v34 = vmul.f32 %v16701_v39, %v9335_v40  ;;  %v16704_v21 = vrot.slane %v15040_v25, %v13638_v0  ;;  %v11830_v33 = vpop.eup %11829  ;;  %11845 = vrcp.f32 %v9650_v2  ;;  %v9651_v32 = vadd.f32 1.0, %v11828_v23  ;;  %v16713_v23 = vld [vmem:[#allocation65_spill] sm:$0xff] }
 0x3b2   : > { %16703 = vst [vmem:[#allocation98_spill] sm:$0xff] %v15323_v48  ;;  %v9333_v7 = vsel %vm9329_vm8, %v9320_v36, %v9322_v56  ;;  %v9332_v9 = vsel %vm9329_vm8, %v9322_v56, %v15321_v20  ;;  %v11832_v31 = vpop.eup %11831  ;;  %11847 = vrcp.f32 %v9537_v55  ;;  %v9538_v16 = vadd.f32 1.0, %v11830_v33  ;;  %v16715_v33 = vld [vmem:[#allocation66_spill] sm:$0xff] }
 0x3b3   : > { %v9461_v10 = vadd.f32 %v9445_v34, %v15071_v38  ;;  %v9446_v40 = vmul.f32 %v16704_v21, %v9334_v54  ;;  %11849 = vrcp.f32 %v9651_v32  ;;  %v9652_v0 = vadd.f32 1.0, %v11832_v31 }
 0x3b4   : > { %v15337_v18 = vmul.f32 -1.442695, %v9592_v60  ;;  %11851 = vrcp.f32 %v9538_v16  ;;  %v16708_v39 = vrot.slane %v15040_v25, %v13674_v57  ;;  %v16712_v60 = vld [vmem:[#allocation84_spill] sm:$0xff] }
 0x3b5   : > { %v9479_v44 = vadd.f32 %v16687_v22, %v9461_v10  ;;  %v9593_v38 = vadd.f32 %v16688_v47, %v9461_v10  ;;  %v9462_v26 = vadd.f32 %v9446_v40, %v15094_v12  ;;  %v15349_v54 = vpop.eup %11833  ;;  %11853 = vrcp.f32 %v9652_v0  ;;  %v16714_v10 = vld [vmem:[#allocation86_spill] sm:$0xff] }
 0x3b6   : > { %16705 = vst [vmem:[#allocation48_spill] sm:$0xff] %v15337_v18  ;;  %v15347_v34 = vmul.f32 %v16708_v39, %v9333_v7  ;;  %v15360_v12 = vmul.f32 %v9407_v41, %v9332_v9  ;;  %v11836_v2 = vpop.eup %11835  ;;  %11855 = vpow2.f32 %v11504_v63  ;;  %v9713_v57 = vmul.f32 %v15349_v54, %v16712_v60 }
 0x3b7   : > { %v15340_v14 = vmul.f32 -1.442695, %v9479_v44  ;;  %v15342_v36 = vmul.f32 -1.442695, %v9593_v38  ;;  %v15352_v56 = vadd.f32 %v16687_v22, %v9462_v26  ;;  %v15355_v13 = vadd.f32 %v16688_v47, %v9462_v26  ;;  %v15368_v40 = vpop.eup %11837 }
 0x3b8   : > { %16711 = vst [vmem:[#allocation100_spill] sm:$0xff] %v15360_v12  ;;  %v9993_v55 = vmul.f32 %v15349_v54, %v16713_v23  ;;  %v10158_v21 = vmul.f32 %v15349_v54, %v16714_v10  ;;  %11857 = vpow2.f32 %v11488_v42  ;;  %v10323_v32 = vmul.f32 %v15349_v54, %v16715_v33  ;;  %v11840_v7 = vpop.eup %11839 }
 0x3b9   : > { %16706 = vst [vmem:[#allocation49_spill] sm:$0xff] %v15340_v14  ;;  %16707 = vst [vmem:[#allocation99_spill] sm:$0xff] %v15342_v36  ;;  %v15374_v41 = vmul.f32 %v15349_v54, %v16716_v53  ;;  %v15378_v63 = vmul.f32 %v15349_v54, %v15029_v49  ;;  %11859 = vpow2.f32 %v11505_v17  ;;  %v9714_v9 = vmul.f32 %v15368_v40, %v16712_v60  ;;  %v11842_v16 = vpop.eup %11841 }
 0x3ba   : > { %16709 = vst [vmem:[#allocation50_spill] sm:$0xff] %v15352_v56  ;;  %16710 = vst [vmem:[#allocation51_spill] sm:$0xff] %v15355_v13  ;;  %v9994_v31 = vmul.f32 %v15368_v40, %v16713_v23  ;;  %v10159_v42 = vmul.f32 %v15368_v40, %v16714_v10  ;;  %v9865_v44 = vcombine.low %v11836_v2, %v11840_v7  ;;  %11861 = vpow2.f32 %v11489_v8  ;;  %v15392_v17 = vpop.eup %11843 }
 0x3bb   : > { %v10324_v38 = vmul.f32 %v15368_v40, %v16715_v33  ;;  %v15390_v0 = vmul.f32 %v15368_v40, %v16716_v53  ;;  %v9539_v26 = vadd.f32 1.0, %v11842_v16  ;;  %11863 = vpow2.f32 %v15313_v43  ;;  %v11846_v35 = vpop.eup %11845 }
 0x3bc   : > { %v9747_v39 = vcombine.low %v9713_v57, %v9714_v9  ;;  %v10027_v28 = vcombine.low %v9993_v55, %v9994_v31  ;;  %v9875_v51 = vrot.slane %v9865_v44, %v15024_v4  ;;  %v9715_v8 = vmul.f32 %v15392_v17, %v16712_v60  ;;  %v15402_v15 = vpop.eup %11847 }
 0x3bd   : > { %v9995_v2 = vmul.f32 %v15392_v17, %v16713_v23  ;;  %v10160_v7 = vmul.f32 %v15392_v17, %v16714_v10  ;;  %11865 = vrcp.f32 %v9539_v26  ;;  %v10192_v57 = vcombine.low %v10158_v21, %v10159_v42  ;;  %v11850_v55 = vpop.eup %11849 }
 0x3be   : > { %v9757_v16 = vrot.slane %v9747_v39, %v15024_v4  ;;  %v10037_v43 = vrot.slane %v10027_v28, %v15024_v4  ;;  %v9716_v9 = vmul.f32 %v15402_v15, %v16712_v60  ;;  %v9996_v31 = vmul.f32 %v15402_v15, %v16713_v23  ;;  %v15414_v25 = vpop.eup %11851 }
 0x3bf   : > { %v10161_v44 = vmul.f32 %v15402_v15, %v16714_v10  ;;  %v10325_v37 = vmul.f32 %v15392_v17, %v16715_v33  ;;  %16717 = vst [vmem:[#allocation52_spill] sm:$0xff] %v15414_v25  ;;  %v9866_v26 = vcombine.low %v11846_v35, %v11850_v55  ;;  %v10202_v39 = vrot.slane %v10192_v57, %v15024_v4  ;;  %v15419_v42 = vpop.eup %11853 }
 0x3c0   : > { %v10326_v28 = vmul.f32 %v15402_v15, %v16715_v33  ;;  %v10357_v21 = vcombine.low %v10323_v32, %v10324_v38  ;;  %v9717_v3 = vmul.f32 %v15414_v25, %v16712_v60  ;;  %v9748_v20 = vcombine.low %v9715_v8, %v9716_v9  ;;  %v11856_v62 = vpop.eup %11855 }
 0x3c1   : > { %v9997_v61 = vmul.f32 %v15414_v25, %v16713_v23  ;;  %v10028_v12 = vcombine.low %v9995_v2, %v9996_v31  ;;  %v9882_v47 = vrot.slane %v9866_v26, %v15024_v4  ;;  %v10162_v35 = vmul.f32 %v15414_v25, %v16714_v10 }
 0x3c2   : > { %v10193_v57 = vcombine.low %v10160_v7, %v10161_v44  ;;  %v10327_v32 = vmul.f32 %v15414_v25, %v16715_v33  ;;  %v11858_v38 = vpop.eup %11857  ;;  %v9653_v55 = vadd.f32 1.0, %v11856_v62  ;;  %v9764_v22 = vrot.slane %v9748_v20, %v15024_v4 }
 0x3c3   : > { %v10044_v8 = vrot.slane %v10028_v12, %v15024_v4  ;;  %v10358_v9 = vcombine.low %v10325_v37, %v10326_v28  ;;  %v11860_v13 = vpop.eup %11859  ;;  %v9897_v36 = vcombine.high %v9875_v51, %v9882_v47  ;;  %v9540_v2 = vadd.f32 1.0, %v11858_v38 }
 0x3c4   : > { %v10209_v31 = vrot.slane %v10193_v57, %v15024_v4  ;;  %v10367_v26 = vrot.slane %v10357_v21, %v15024_v4  ;;  %v11862_v56 = vpop.eup %11861  ;;  %11867 = vrcp.f32 %v9653_v55  ;;  %v9654_v7 = vadd.f32 1.0, %v11860_v13 }
 0x3c5   : > { %v9779_v44 = vcombine.low %v9757_v16, %v9764_v22  ;;  %v10059_v14 = vcombine.low %v10037_v43, %v10044_v8  ;;  %v11864_v18 = vpop.eup %11863  ;;  %v15435_v62 = vrot.slane %v9897_v36, %v15024_v4  ;;  %11869 = vrcp.f32 %v9540_v2 }
 0x3c6   : > { %v9541_v20 = vadd.f32 1.0, %v11862_v56  ;;  %v10224_v12 = vcombine.low %v10202_v39, %v10209_v31  ;;  %11871 = vrcp.f32 %v9654_v7  ;;  %v9655_v37 = vadd.f32 1.0, %v11864_v18 }
 0x3c7   : > { %v15438_v51 = vrot.slane %v9779_v44, %v15024_v4  ;;  %v15441_v47 = vrot.slane %v10059_v14, %v15024_v4  ;;  %v15443_v28 = vpop.eup %11865  ;;  %v10374_v36 = vrot.slane %v10358_v9, %v15024_v4  ;;  %v10490_v56 = vmul.f32 %v15392_v17, %v16716_v53 }
 0x3c8   : > { %16718 = vst [vmem:[#allocation101_spill] sm:$0xff] %v15443_v28  ;;  %11873 = vrcp.f32 %v9541_v20  ;;  %v15446_v22 = vrot.slane %v10224_v12, %v15024_v4  ;;  %v9718_v18 = vmul.f32 %v15443_v28, %v16712_v60  ;;  %v9998_v13 = vmul.f32 %v15443_v28, %v16713_v23 }
 0x3c9   : > { %11875 = vrcp.f32 %v9655_v37  ;;  %v10163_v14 = vmul.f32 %v15443_v28, %v16714_v10  ;;  %v10328_v16 = vmul.f32 %v15443_v28, %v16715_v33  ;;  %v10389_v43 = vcombine.low %v10367_v26, %v10374_v36 }
 0x3ca   : > { %v10491_v39 = vmul.f32 %v15402_v15, %v16716_v53  ;;  %v10492_v21 = vmul.f32 %v15414_v25, %v16716_v53  ;;  %v9749_v57 = vcombine.low %v9717_v3, %v9718_v18  ;;  %v10029_v38 = vcombine.low %v9997_v61, %v9998_v13 }
 0x3cb   : > { %v10194_v55 = vcombine.low %v10162_v35, %v10163_v14  ;;  %v10493_v8 = vmul.f32 %v15443_v28, %v16716_v53  ;;  %v10359_v9 = vcombine.low %v10327_v32, %v10328_v16  ;;  %v15466_v2 = vrot.slane %v10389_v43, %v15024_v4 }
 0x3cc   : > { %v10522_v31 = vcombine.low %v15374_v41, %v15390_v0  ;;  %v10523_v26 = vcombine.low %v10490_v56, %v10491_v39  ;;  %v9771_v7 = vrot.slane %v9749_v57, %v15024_v4  ;;  %v10051_v44 = vrot.slane %v10029_v38, %v15024_v4 }
 0x3cd   : > { %v10216_v20 = vrot.slane %v10194_v55, %v15024_v4  ;;  %v10524_v3 = vcombine.low %v10492_v21, %v10493_v8  ;;  %v10381_v61 = vrot.slane %v10359_v9, %v15024_v4  ;;  %v10654_v12 = vmul.f32 %v15368_v40, %v15029_v49 }
 0x3ce   : > { %v10532_v35 = vrot.slane %v10522_v31, %v15024_v4  ;;  %v10539_v32 = vrot.slane %v10523_v26, %v15024_v4  ;;  %v11868_v37 = vpop.eup %11867  ;;  %v10655_v0 = vmul.f32 %v15392_v17, %v15029_v49  ;;  %v10656_v36 = vmul.f32 %v15402_v15, %v15029_v49 }
 0x3cf   : > { %v10546_v41 = vrot.slane %v10524_v3, %v15024_v4  ;;  %v10657_v56 = vmul.f32 %v15414_v25, %v15029_v49  ;;  %v15485_v18 = vpop.eup %11869  ;;  %v9867_v13 = vcombine.low %v15419_v42, %v11868_v37  ;;  %v10658_v16 = vmul.f32 %v15443_v28, %v15029_v49 }
 0x3d0   : > { %16719 = vst [vmem:[#allocation53_spill] sm:$0xff] %v15485_v18  ;;  %v10554_v14 = vcombine.low %v10532_v35, %v10539_v32  ;;  %v10687_v43 = vcombine.low %v15378_v63, %v10654_v12  ;;  %v11872_v39 = vpop.eup %11871  ;;  %v9719_v21 = vmul.f32 %v15485_v18, %v16712_v60  ;;  %v9999_v57 = vmul.f32 %v15485_v18, %v16713_v23 }
 0x3d1   : > { %v10164_v38 = vmul.f32 %v15485_v18, %v16714_v10  ;;  %v10329_v55 = vmul.f32 %v15485_v18, %v16715_v33  ;;  %v9889_v8 = vrot.slane %v9867_v13, %v15024_v4  ;;  %v10494_v63 = vmul.f32 %v15485_v18, %v16716_v53 }
 0x3d2   : > { %v15499_v42 = vpop.eup %11873  ;;  %v15505_v9 = vrot.slane %v10554_v14, %v15024_v4  ;;  %v10659_v31 = vmul.f32 %v15485_v18, %v15029_v49  ;;  %v10688_v48 = vcombine.low %v10655_v0, %v10656_v36  ;;  %v10689_v25 = vcombine.low %v10657_v56, %v10658_v16 }
 0x3d3   : > { %v11876_v26 = vpop.eup %11875  ;;  %v9720_v3 = vmul.f32 %v15499_v42, %v16712_v60  ;;  %v10000_v35 = vmul.f32 %v15499_v42, %v16713_v23  ;;  %v10165_v32 = vmul.f32 %v15499_v42, %v16714_v10  ;;  %v10330_v12 = vmul.f32 %v15499_v42, %v16715_v33 }
 0x3d4   : > { %v9868_v37 = vcombine.low %v11872_v39, %v11876_v26  ;;  %v10495_v13 = vmul.f32 %v15499_v42, %v16716_v53  ;;  %v10660_v14 = vmul.f32 %v15499_v42, %v15029_v49  ;;  %v10697_v36 = vrot.slane %v10687_v43, %v15024_v4 }
 0x3d5   : > { %v9750_v50 = vcombine.low %v9719_v21, %v9720_v3  ;;  %v10030_v45 = vcombine.low %v9999_v57, %v10000_v35  ;;  %v10195_v60 = vcombine.low %v10164_v38, %v10165_v32  ;;  %v10360_v18 = vcombine.low %v10329_v55, %v10330_v12  ;;  %v16721_v35 = vld [vmem:[#allocation90_spill] sm:$0xff]  ;;  %v16722_v12 = vld [vmem:[#allocation52_spill] sm:$0xff] }
 0x3d6   : > { %v9896_v23 = vrot.slane %v9868_v37, %v15024_v4  ;;  %v10525_v28 = vcombine.low %v10494_v63, %v10495_v13  ;;  %v10690_v10 = vcombine.low %v10659_v31, %v10660_v14  ;;  %v10704_v21 = vrot.slane %v10688_v48, %v15024_v4  ;;  %v16723_v13 = vld [vmem:[#allocation101_spill] sm:$0xff] }
 0x3d7   : > { %v9778_v29 = vrot.slane %v9750_v50, %v15024_v4  ;;  %v10058_v39 = vrot.slane %v10030_v45, %v15024_v4  ;;  %v10223_v26 = vrot.slane %v10195_v60, %v15024_v4  ;;  %v10388_v53 = vrot.slane %v10360_v18, %v15024_v4 }
 0x3d8   : > { %v9898_v33 = vcombine.high %v9889_v8, %v9896_v23  ;;  %v10553_v0 = vrot.slane %v10525_v28, %v15024_v4  ;;  %v10711_v45 = vrot.slane %v10689_v25, %v15024_v4  ;;  %v10718_v60 = vrot.slane %v10690_v10, %v15024_v4 }
 0x3d9   : > { %v9780_v57 = vcombine.low %v9771_v7, %v9778_v29  ;;  %v10060_v38 = vcombine.low %v10051_v44, %v10058_v39  ;;  %v10225_v55 = vcombine.low %v10216_v20, %v10223_v26  ;;  %v10390_v56 = vcombine.low %v10381_v61, %v10388_v53  ;;  %v16724_v39 = vld [vmem:[#allocation53_spill] sm:$0xff] }
 0x3da   : > { %v9912_v16 = vrot.slane %v9898_v33, %v15024_v4  ;;  %v10555_v50 = vcombine.low %v10546_v41, %v10553_v0  ;;  %v10719_v53 = vcombine.low %v10697_v36, %v10704_v21  ;;  %v10720_v33 = vcombine.low %v10711_v45, %v10718_v60 }
 0x3db   : > { %v9794_v18 = vrot.slane %v9780_v57, %v15024_v4  ;;  %v10074_v23 = vrot.slane %v10060_v38, %v15024_v4  ;;  %v10239_v28 = vrot.slane %v10225_v55, %v15024_v4  ;;  %v10404_v43 = vrot.slane %v10390_v56, %v15024_v4  ;;  %v16725_v55 = vld [vmem:[#allocation95_spill] sm:$0xff] }
 0x3dc   : > { %v15537_v29 = vcombine.low %v15435_v62, %v9912_v16  ;;  %v10569_v48 = vrot.slane %v10555_v50, %v15024_v4  ;;  %v10727_v8 = vrot.slane %v10719_v53, %v15024_v4  ;;  %v10983_v56 = vmul.f32 %v15349_v54, %v16725_v55 }
 0x3dd   : > { %v9795_v7 = vcombine.low %v15438_v51, %v9794_v18  ;;  %v10075_v25 = vcombine.low %v15441_v47, %v10074_v23  ;;  %v10240_v10 = vcombine.low %v15446_v22, %v10239_v28  ;;  %v10405_v44 = vcombine.low %v15466_v2, %v10404_v43 }
 0x3de   : > { %v9965_v20 = vmul.f32 %v15537_v29, %v15036_v46  ;;  %v10129_v61 = vmul.f32 %v15046_v1, %v15537_v29  ;;  %v10294_v62 = vmul.f32 %v15058_v19, %v15537_v29  ;;  %v10459_v41 = vmul.f32 %v15064_v27, %v15537_v29 }
 0x3df   : > { %v9847_v51 = vmul.f32 %v9795_v7, %v15084_v11  ;;  %v10127_v47 = vmul.f32 %v10075_v25, %v15100_v30  ;;  %v10292_v22 = vmul.f32 %v10240_v10, %v15103_v24  ;;  %v10457_v2 = vmul.f32 %v10405_v44, %v15110_v59 }
 0x3e0   : > { %v10570_v46 = vcombine.low %v15505_v9, %v10569_v48  ;;  %v10734_v1 = vrot.slane %v10720_v33, %v15024_v4  ;;  %v15561_v19 = vadd.f32 %v15347_v34, %v15120_v58  ;;  %v10624_v24 = vmul.f32 %v15066_v6, %v15537_v29  ;;  %v16720_v6 = vld [vmem:[#allocation94_spill] sm:$0xff]  ;;  %v16726_v33 = vld [vmem:[#allocation91_spill] sm:$0xff] }
 0x3e1   : > { %v9967_v27 = vadd.f32 %v9965_v20, %v9847_v51  ;;  %v10131_v63 = vadd.f32 %v10129_v61, %v10127_v47  ;;  %v10296_v11 = vadd.f32 %v10294_v62, %v10292_v22  ;;  %v10461_v31 = vadd.f32 %v10459_v41, %v10457_v2  ;;  %v16727_v62 = vld [vmem:[#allocation98_spill] sm:$0xff]  ;;  %v16728_v22 = vld [vmem:[#allocation48_spill] sm:$0xff] }
 0x3e2   : > { %v10622_v30 = vmul.f32 %v10570_v46, %v15113_v5  ;;  %v10735_v59 = vcombine.low %v10727_v8, %v10734_v1  ;;  %v10789_v9 = vmul.f32 %v15077_v52, %v15537_v29  ;;  %v10818_v52 = vmul.f32 %v15349_v54, %v16720_v6  ;;  %v16729_v46 = vld [vmem:[#allocation49_spill] sm:$0xff]  ;;  %v16730_v8 = vld [vmem:[#allocation50_spill] sm:$0xff] }
 0x3e3   : > { %9969 = vst [vmem:[%s15569_s4] ss:$8 sm:$0xf] %v9967_v27  ;;  %9970 = vst [vmem:[%s15569_s4] ss:$8 sm:$0xf0] %v9967_v27  ;;  %v10819_v5 = vmul.f32 %v15368_v40, %v16720_v6  ;;  %v10820_v58 = vmul.f32 %v15392_v17, %v16720_v6  ;;  %v10821_v34 = vmul.f32 %v15402_v15, %v16720_v6  ;;  %11877 = vpow2.f32 %v16727_v62 }
 0x3e4   : > { %11530 = vst [vmem:[%s15569_s4 + $0x1] ss:$8 sm:$0xf] %v10131_v63  ;;  %11531 = vst [vmem:[%s15569_s4 + $0x1] ss:$8 sm:$0xf0] %v10131_v63  ;;  %v10626_v3 = vadd.f32 %v10624_v24, %v10622_v30  ;;  %v10787_v32 = vmul.f32 %v10735_v59, %v16721_v35  ;;  %v10822_v37 = vmul.f32 %v16722_v12, %v16720_v6  ;;  %11879 = vpow2.f32 %v16728_v22  ;;  %v15636_v59 = vpop.permute.xlu0 %9325 }
 0x3e5   : > { %11542 = vst [vmem:[%s15569_s4 + $0x2] ss:$8 sm:$0xf] %v10296_v11  ;;  %11543 = vst [vmem:[%s15569_s4 + $0x2] ss:$8 sm:$0xf0] %v10296_v11  ;;  %v10823_v14 = vmul.f32 %v16723_v13, %v16720_v6  ;;  %v10824_v26 = vmul.f32 %v16724_v39, %v16720_v6  ;;  %v10825_v0 = vmul.f32 %v15499_v42, %v16720_v6  ;;  %11881 = vpow2.f32 %v16729_v46 }
 0x3e6   : > { %11554 = vst [vmem:[%s15569_s4 + $0x3] ss:$8 sm:$0xf] %v10461_v31  ;;  %11555 = vst [vmem:[%s15569_s4 + $0x3] ss:$8 sm:$0xf0] %v10461_v31  ;;  %v10852_v36 = vcombine.low %v10818_v52, %v10819_v5  ;;  %v10853_v21 = vcombine.low %v10820_v58, %v10821_v34  ;;  %v10791_v57 = vadd.f32 %v10789_v9, %v10787_v32 }
 0x3e7   : > { %11566 = vst [vmem:[%s15569_s4 + $0x4] ss:$8 sm:$0xf] %v10626_v3  ;;  %11567 = vst [vmem:[%s15569_s4 + $0x4] ss:$8 sm:$0xf0] %v10626_v3  ;;  %v10854_v38 = vcombine.low %v10822_v37, %v10823_v14  ;;  %v10984_v16 = vmul.f32 %v15368_v40, %v16725_v55  ;;  %v10855_v50 = vcombine.low %v10824_v26, %v10825_v0 }
 0x3e8   : > { %v10862_v45 = vrot.slane %v10852_v36, %v15024_v4  ;;  %v10869_v60 = vrot.slane %v10853_v21, %v15024_v4  ;;  %v10985_v18 = vmul.f32 %v15392_v17, %v16725_v55  ;;  %11578 = vst [vmem:[%s15569_s4 + $0x5] ss:$8 sm:$0xf] %v10791_v57  ;;  %11579 = vst [vmem:[%s15569_s4 + $0x5] ss:$8 sm:$0xf0] %v10791_v57 }
 0x3e9   : > { %v10876_v23 = vrot.slane %v10854_v38, %v15024_v4  ;;  %v10986_v28 = vmul.f32 %v15402_v15, %v16725_v55  ;;  %v10987_v54 = vmul.f32 %v16722_v12, %v16725_v55  ;;  %v10988_v40 = vmul.f32 %v16723_v13, %v16725_v55  ;;  %v16731_v63 = vld [vmem:[#allocation99_spill] sm:$0xff]  ;;  %v16735_v35 = vld [vmem:[#allocation92_spill] sm:$0xff]  ;;  %v16737_v37 = vld [vmem:[#allocation45_spill] sm:$0xff] }
 0x3ea   : > { %v10883_v43 = vrot.slane %v10855_v50, %v15024_v4  ;;  %v10884_v48 = vcombine.low %v10862_v45, %v10869_v60  ;;  %v10989_v53 = vmul.f32 %v16724_v39, %v16725_v55  ;;  %v10990_v17 = vmul.f32 %v15499_v42, %v16725_v55  ;;  %v16732_v11 = vld [vmem:[#allocation51_spill] sm:$0xff]  ;;  %v16736_v32 = vld [vmem:[#allocation100_spill] sm:$0xff]  ;;  %v16740_v57 = vld [vmem:[#allocation89_spill] sm:$0xff] }
 0x3eb   : > { %v10954_v7 = vmul.f32 %v16726_v33, %v15537_v29  ;;  %v11017_v25 = vcombine.low %v10983_v56, %v10984_v16  ;;  %v11018_v15 = vcombine.low %v10985_v18, %v10986_v28  ;;  %v11019_v10 = vcombine.low %v10987_v54, %v10988_v40  ;;  %v16733_v30 = vld [vmem:[#allocation83_spill] sm:$0xff]  ;;  %v16741_v38 = vld [vmem:[#allocation77_spill] sm:$0xff]  ;;  %v16744_v40 = vld [vmem:[#allocation96_spill] sm:$0xff] }
 0x3ec   : > { %v10885_v44 = vcombine.low %v10876_v23, %v10883_v43  ;;  %v10892_v20 = vrot.slane %v10884_v48, %v15024_v4  ;;  %v11020_v61 = vcombine.low %v10989_v53, %v10990_v17  ;;  %v11492_v1 = vmul.f32 -1.442695, %v16730_v8  ;;  %v16734_v5 = vld [vmem:[#allocation87_spill] sm:$0xff]  ;;  %v16743_v23 = vld [vmem:[#allocation44_spill] sm:$0xff] }
 0x3ed   : > { %v11027_v41 = vrot.slane %v11017_v25, %v15024_v4  ;;  %v11034_v51 = vrot.slane %v11018_v15, %v15024_v4  ;;  %v11041_v47 = vrot.slane %v11019_v10, %v15024_v4  ;;  %11883 = vpow2.f32 %v16731_v63  ;;  %v16738_v26 = vld [vmem:[#allocation47_spill] sm:$0xff]  ;;  %v11878_v54 = vpop.eup %11877  ;;  %v9328_v63 = vpop.permute.xlu1 %9327 }
 0x3ee   : > { %v10899_v42 = vrot.slane %v10885_v44, %v15024_v4  ;;  %v11048_v2 = vrot.slane %v11020_v61, %v15024_v4  ;;  %v11509_v31 = vmul.f32 -1.442695, %v16732_v11  ;;  %v9481_v24 = vadd.f32 %v16733_v30, %v15561_v19  ;;  %v16745_v48 = vld [vmem:[#allocation43_spill] sm:$0xff]  ;;  %v11880_v17 = vpop.eup %11879 }
 0x3ef   : > { %v11049_v27 = vcombine.low %v11027_v41, %v11034_v51  ;;  %11885 = vpow2.f32 %v11492_v1  ;;  %v9595_v58 = vadd.f32 %v16734_v5, %v15561_v19  ;;  %v9464_v12 = vadd.f32 %v16736_v32, %v16735_v35  ;;  %v11882_v25 = vpop.eup %11881  ;;  %v16747_v32 = vld [vmem:[#allocation79_spill] sm:$0xff] }
 0x3f0   : > { %v10900_v9 = vcombine.low %v10892_v20, %v10899_v42  ;;  %v11050_v52 = vcombine.low %v11041_v47, %v11048_v2  ;;  %11887 = vpow2.f32 %v11509_v31  ;;  %v11493_v3 = vmul.f32 -1.442695, %v9481_v24 }
 0x3f1   : > { %v11057_v34 = vrot.slane %v11049_v27, %v15024_v4  ;;  %v11510_v39 = vmul.f32 -1.442695, %v9595_v58  ;;  %v9331_v36 = vsel %vm9329_vm8, %v16738_v26, %v15636_v59  ;;  %v9482_v19 = vadd.f32 %v16733_v30, %v9464_v12 }
 0x3f2   : > { %v10952_v13 = vmul.f32 %v10900_v9, %v16737_v37  ;;  %v11064_v14 = vrot.slane %v11050_v52, %v15024_v4  ;;  %11889 = vpow2.f32 %v11493_v3  ;;  %v9596_v21 = vadd.f32 %v16734_v5, %v9464_v12  ;;  %v16746_v9 = vld [vmem:[#allocation78_spill] sm:$0xff]  ;;  %v16748_v37 = vld [vmem:[#allocation84_spill] sm:$0xff] }
 0x3f3   : > { %v16742_v56 = vrot.slane %v16740_v57, %v16741_v38  ;;  %11891 = vpow2.f32 %v11510_v39  ;;  %v11494_v60 = vmul.f32 -1.442695, %v9482_v19  ;;  %v11119_v53 = vmul.f32 %v16745_v48, %v15537_v29  ;;  %v16751_v38 = vld [vmem:[#allocation66_spill] sm:$0xff] }
 0x3f4   : > { %v10956_v50 = vadd.f32 %v10954_v7, %v10952_v13  ;;  %v11065_v45 = vcombine.low %v11057_v34, %v11064_v14  ;;  %v11511_v18 = vmul.f32 -1.442695, %v9596_v21  ;;  %v9542_v33 = vadd.f32 1.0, %v11878_v54  ;;  %v16749_v14 = vld [vmem:[#allocation65_spill] sm:$0xff] }
 0x3f5   : > { %v9449_v16 = vmul.f32 %v16742_v56, %v9331_v36  ;;  %11893 = vpow2.f32 %v11494_v60  ;;  %v9656_v10 = vadd.f32 1.0, %v11880_v17  ;;  %v9543_v20 = vadd.f32 1.0, %v11882_v25  ;;  %v16752_v60 = vld [vmem:[#allocation93_spill] sm:$0xff]  ;;  %v16753_v17 = vld [vmem:[#allocation88_spill] sm:$0xff] }
 0x3f6   : > { %11590 = vst [vmem:[%s15569_s4 + $0x6] ss:$8 sm:$0xf] %v10956_v50  ;;  %11591 = vst [vmem:[%s15569_s4 + $0x6] ss:$8 sm:$0xf0] %v10956_v50  ;;  %v11117_v43 = vmul.f32 %v11065_v45, %v16744_v40  ;;  %11895 = vpow2.f32 %v11511_v18  ;;  %v9415_v52 = vrot.slane %v16740_v57, %v16746_v9  ;;  %v9330_v3 = vsel %vm9329_vm8, %v15636_v59, %v9328_v63 }
 0x3f7   : > { %v9465_v28 = vadd.f32 %v9449_v16, %v16743_v23  ;;  %v11884_v44 = vpop.eup %11883  ;;  %11897 = vrcp.f32 %v9542_v33  ;;  %v9419_v12 = vrot.slane %v16740_v57, %v16747_v32  ;;  %v16750_v59 = vld [vmem:[#allocation86_spill] sm:$0xff]  ;;  %v9345_v18 = vsel %vm9329_vm8, %v9328_v63, %v16752_v60 }
 0x3f8   : > { %v11121_v15 = vadd.f32 %v11119_v53, %v11117_v43  ;;  %11899 = vrcp.f32 %v9656_v10  ;;  %v9657_v62 = vadd.f32 1.0, %v11884_v44  ;;  %v15694_v23 = vmul.f32 %v9415_v52, %v9330_v3  ;;  %v11560_v60 = vld [vmem:[%s12831_s28 + $0x44] ss:$8 sm:$0xf] }
 0x3f9   : > { %v9483_v7 = vadd.f32 %v16733_v30, %v9465_v28  ;;  %v11886_v61 = vpop.eup %11885  ;;  %v9597_v41 = vadd.f32 %v16734_v5, %v9465_v28  ;;  %11901 = vrcp.f32 %v9543_v20 }
 0x3fa   : > { %11602 = vst [vmem:[%s15569_s4 + $0x7] ss:$8 sm:$0xf] %v11121_v15  ;;  %11603 = vst [vmem:[%s15569_s4 + $0x7] ss:$8 sm:$0xf0] %v11121_v15  ;;  %v11888_v29 = vpop.eup %11887  ;;  %11903 = vrcp.f32 %v9657_v62 }
 0x3fb   : > { %v9544_v51 = vadd.f32 1.0, %v11886_v61  ;;  %v11495_v47 = vmul.f32 -1.442695, %v9483_v7  ;;  %v9658_v22 = vadd.f32 1.0, %v11888_v29  ;;  %v11512_v8 = vmul.f32 -1.442695, %v9597_v41 }
 0x3fc   : > { %v11890_v42 = vpop.eup %11889 }
 0x3fd   : > { %11905 = vrcp.f32 %v9544_v51  ;;  %v11892_v2 = vpop.eup %11891  ;;  %v9545_v46 = vadd.f32 1.0, %v11890_v42 }
 0x3fe   : > { %11907 = vrcp.f32 %v9658_v22  ;;  %v9659_v1 = vadd.f32 1.0, %v11892_v2 }
 0x3ff   : > { %11909 = vpow2.f32 %v11495_v47  ;;  %v11894_v27 = vpop.eup %11893 }
 0x400   : > { %11911 = vrcp.f32 %v9545_v46  ;;  %v11896_v11 = vpop.eup %11895  ;;  %v9546_v31 = vadd.f32 1.0, %v11894_v27 }
 0x401   : > { %11913 = vrcp.f32 %v9659_v1  ;;  %v15664_v24 = vpop.eup %11897  ;;  %v9660_v34 = vadd.f32 1.0, %v11896_v11 }
 0x402   : > { %11915 = vpow2.f32 %v11512_v8  ;;  %v11900_v58 = vpop.eup %11899  ;;  %v9721_v13 = vmul.f32 %v15664_v24, %v16748_v37  ;;  %v10001_v39 = vmul.f32 %v15664_v24, %v16749_v14  ;;  %v10166_v45 = vmul.f32 %v15664_v24, %v16750_v59 }
 0x403   : > { %v15671_v35 = vpop.eup %11901  ;;  %11917 = vrcp.f32 %v9546_v31  ;;  %v10331_v43 = vmul.f32 %v15664_v24, %v16751_v38  ;;  %v10496_v33 = vmul.f32 %v15664_v24, %v16753_v17 }
 0x404   : > { %v11904_v26 = vpop.eup %11903  ;;  %v9722_v36 = vmul.f32 %v15671_v35, %v16748_v37  ;;  %v10002_v19 = vmul.f32 %v15671_v35, %v16749_v14  ;;  %v10167_v21 = vmul.f32 %v15671_v35, %v16750_v59  ;;  %v10332_v56 = vmul.f32 %v15671_v35, %v16751_v38 }
 0x405   : > { %v9914_v50 = vcombine.low %v11900_v58, %v11904_v26  ;;  %11919 = vrcp.f32 %v9660_v34  ;;  %v10497_v7 = vmul.f32 %v15671_v35, %v16753_v17  ;;  %v15704_v0 = vmul.f32 %v15671_v35, %v15029_v49 }
 0x406   : > { %v9796_v54 = vcombine.low %v9721_v13, %v9722_v36  ;;  %v10076_v40 = vcombine.low %v10001_v39, %v10002_v19  ;;  %v10241_v53 = vcombine.low %v10166_v45, %v10167_v21  ;;  %v10406_v20 = vcombine.low %v10331_v43, %v10332_v56  ;;  %v11561_v19 = vld [vmem:[%s12831_s28 + $0x44] ss:$8 sm:$0xf0] }
 0x407   : > { %v15687_v16 = vpop.eup %11905  ;;  %v15725_v63 = vrot.slane %v9914_v50, %v15024_v4 }
 0x408   : > { %v11908_v28 = vpop.eup %11907  ;;  %v9723_v10 = vmul.f32 %v15687_v16, %v16748_v37  ;;  %v10003_v44 = vmul.f32 %v15687_v16, %v16749_v14  ;;  %v10168_v29 = vmul.f32 %v15687_v16, %v16750_v59  ;;  %v10333_v42 = vmul.f32 %v15687_v16, %v16751_v38 }
 0x409   : > { %v11910_v48 = vpop.eup %11909  ;;  %v15731_v31 = vrot.slane %v9796_v54, %v15024_v4  ;;  %v15739_v34 = vrot.slane %v10076_v40, %v15024_v4  ;;  %v15749_v26 = vrot.slane %v10241_v53, %v15024_v4  ;;  %v15757_v21 = vrot.slane %v10406_v20, %v15024_v4 }
 0x40a   : > { %v15706_v25 = vpop.eup %11911  ;;  %v9547_v15 = vadd.f32 1.0, %v11910_v48  ;;  %v10498_v50 = vmul.f32 %v15687_v16, %v16753_v17  ;;  %v10571_v54 = vcombine.low %v10496_v33, %v10497_v7  ;;  %v9451_v40 = vmul.f32 %v9419_v12, %v9345_v18 }
 0x40b   : > { %v11914_v61 = vpop.eup %11913  ;;  %v9724_v62 = vmul.f32 %v15706_v25, %v16748_v37  ;;  %v10004_v41 = vmul.f32 %v15706_v25, %v16749_v14  ;;  %v10169_v51 = vmul.f32 %v15706_v25, %v16750_v59  ;;  %v10334_v2 = vmul.f32 %v15706_v25, %v16751_v38 }
 0x40c   : > { %v11916_v47 = vpop.eup %11915  ;;  %v9915_v22 = vcombine.low %v11908_v28, %v11914_v61  ;;  %11921 = vrcp.f32 %v9547_v15  ;;  %v10499_v3 = vmul.f32 %v15706_v25, %v16753_v17  ;;  %v10661_v15 = vmul.f32 %v15664_v24, %v15029_v49 }
 0x40d   : > { %v9661_v46 = vadd.f32 1.0, %v11916_v47  ;;  %v9797_v8 = vcombine.low %v9723_v10, %v9724_v62  ;;  %v10077_v1 = vcombine.low %v10003_v44, %v10004_v41  ;;  %v10242_v27 = vcombine.low %v10168_v29, %v10169_v51  ;;  %v15733_v52 = vpop.eup %11917 }
 0x40e   : > { %v15728_v11 = vrot.slane %v9915_v22, %v15024_v4  ;;  %v10407_v9 = vcombine.low %v10333_v42, %v10334_v2  ;;  %v15775_v43 = vmul.f32 %v15733_v52, %v16748_v37  ;;  %v10572_v53 = vcombine.low %v10498_v50, %v10499_v3  ;;  %v16762_v2 = vld [vmem:[#allocation97_spill] sm:$0xff] }
 0x40f   : > { %11923 = vrcp.f32 %v9661_v46  ;;  %v15736_v58 = vrot.slane %v9797_v8, %v15024_v4  ;;  %v15746_v39 = vrot.slane %v10077_v1, %v15024_v4  ;;  %v15752_v36 = vrot.slane %v10242_v27, %v15024_v4  ;;  %v15764_v45 = vpop.eup %11919 }
 0x410   : > { %v15760_v56 = vrot.slane %v10407_v9, %v15024_v4  ;;  %v15783_v10 = vmul.f32 %v15733_v52, %v16749_v14  ;;  %v15787_v33 = vmul.f32 %v15733_v52, %v16750_v59  ;;  %v10663_v57 = vmul.f32 %v15687_v16, %v15029_v49  ;;  %v16761_v9 = vld [vmem:[#allocation46_spill] sm:$0xff] }
 0x411   : > { %v10664_v32 = vmul.f32 %v15706_v25, %v15029_v49  ;;  %v15795_v12 = vmul.f32 %v15733_v52, %v16751_v38  ;;  %v15799_v18 = vmul.f32 %v15733_v52, %v16753_v17  ;;  %v15802_v7 = vrot.slane %v10572_v53, %v15024_v4 }
 0x412   : > { %v10736_v44 = vcombine.low %v10661_v15, %v15704_v0  ;;  %v15806_v61 = vrot.slane %v10571_v54, %v15024_v4  ;;  %v15810_v62 = vmul.f32 %v15733_v52, %v15029_v49  ;;  %v10827_v29 = vmul.f32 %v15671_v35, %v16720_v6 }
 0x413   : > { %16754 = vst [vmem:[#allocation102_spill] sm:$0xff] %v15799_v18  ;;  %v10737_v41 = vcombine.low %v10663_v57, %v10664_v32  ;;  %v10829_v8 = vmul.f32 %v15706_v25, %v16720_v6  ;;  %v10826_v57 = vmul.f32 %v15664_v24, %v16720_v6  ;;  %v10828_v32 = vmul.f32 %v15687_v16, %v16720_v6  ;;  %v11589_v18 = vld [vmem:[%s12839_s20 + $0x46] ss:$8 sm:$0xf0] }
 0x414   : > { %16755 = vst [vmem:[#allocation54_spill] sm:$0xff] %v15810_v62  ;;  %v15857_v3 = vrot.slane %v10736_v44, %v15024_v4  ;;  %v9466_v54 = vadd.f32 %v15694_v23, %v16761_v9  ;;  %v9467_v53 = vadd.f32 %v9451_v40, %v16762_v2  ;;  %v15867_v15 = vmul.f32 %v15733_v52, %v16720_v6  ;;  %v11552_v2 = vld [vmem:[%s12839_s20 + $0x43] ss:$8 sm:$0xf] }
 0x415   : > { %v15860_v50 = vrot.slane %v10737_v41, %v15024_v4  ;;  %v10901_v28 = vcombine.low %v10826_v57, %v10827_v29  ;;  %v10902_v27 = vcombine.low %v10828_v32, %v10829_v8  ;;  %v10991_v41 = vmul.f32 %v15664_v24, %v16725_v55  ;;  %v11549_v57 = vld [vmem:[%s12831_s28 + $0x43] ss:$8 sm:$0xf0] }
 0x416   : > { %v11922_v20 = vpop.eup %11921  ;;  %16759 = vst [vmem:[#allocation56_spill] sm:$0xff] %v15857_v3  ;;  %16763 = vst [vmem:[#allocation103_spill] sm:$0xff] %v15867_v15  ;;  %v10992_v23 = vmul.f32 %v15671_v35, %v16725_v55  ;;  %v10993_v40 = vmul.f32 %v15687_v16, %v16725_v55  ;;  %v10994_v8 = vmul.f32 %v15706_v25, %v16725_v55  ;;  %v11553_v44 = vld [vmem:[%s12839_s20 + $0x43] ss:$8 sm:$0xf0] }
 0x417   : > { %v15815_v51 = vmul.f32 %v11922_v20, %v16748_v37  ;;  %v15818_v47 = vmul.f32 %v11922_v20, %v16749_v14  ;;  %v15821_v0 = vmul.f32 %v11922_v20, %v16750_v59  ;;  %v15824_v22 = vmul.f32 %v11922_v20, %v16751_v38  ;;  %16760 = vst [vmem:[#allocation42_spill] sm:$0xff] %v15860_v50  ;;  %v11585_v38 = vld [vmem:[%s12831_s28 + $0x46] ss:$8 sm:$0xf0] }
 0x418   : > { %v15827_v42 = vmul.f32 %v11922_v20, %v16753_v17  ;;  %v15832_v46 = vmul.f32 %v11922_v20, %v15029_v49  ;;  %v15870_v48 = vmul.f32 %v11922_v20, %v16720_v6  ;;  %v15883_v9 = vrot.slane %v10901_v28, %v15024_v4  ;;  %v11584_v17 = vld [vmem:[%s12831_s28 + $0x46] ss:$8 sm:$0xf] }
 0x419   : > { %16756 = vst [vmem:[#allocation68_spill] sm:$0xff] %v15824_v22  ;;  %v15836_v1 = vpop.eup %11923  ;;  %v15886_v29 = vrot.slane %v10902_v27, %v15024_v4  ;;  %v15892_v24 = vmul.f32 %v15733_v52, %v16725_v55  ;;  %v15895_v35 = vmul.f32 %v11922_v20, %v16725_v55  ;;  %v11066_v16 = vcombine.low %v10991_v41, %v10992_v23  ;;  %v11548_v27 = vld [vmem:[%s12831_s28 + $0x43] ss:$8 sm:$0xf] }
 0x41a   : > { %16757 = vst [vmem:[#allocation55_spill] sm:$0xff] %v15827_v42  ;;  %16758 = vst [vmem:[#allocation72_spill] sm:$0xff] %v15832_v46  ;;  %v11067_v32 = vcombine.low %v10993_v40, %v10994_v8  ;;  %v9484_v28 = vadd.f32 %v16733_v30, %v9466_v54  ;;  %v9485_v25 = vadd.f32 %v16733_v30, %v9467_v53  ;;  %v11576_v55 = vld [vmem:[%s12839_s20 + $0x45] ss:$8 sm:$0xf] }
 0x41b   : > { %16764 = vst [vmem:[#allocation57_spill] sm:$0xff] %v15870_v48  ;;  %16765 = vst [vmem:[#allocation73_spill] sm:$0xff] %v15883_v9  ;;  %v9598_v52 = vadd.f32 %v16734_v5, %v9466_v54  ;;  %v15905_v20 = vrot.slane %v11066_v16, %v15024_v4  ;;  %v9599_v40 = vadd.f32 %v16734_v5, %v9467_v53  ;;  %v11515_v5 = vld [vmem:[%s12831_s28 + $0x40] ss:$8 sm:$0xf] }
 0x41c   : > { %16766 = vst [vmem:[#allocation74_spill] sm:$0xff] %v15886_v29  ;;  %16767 = vst [vmem:[#allocation76_spill] sm:$0xff] %v15892_v24  ;;  %v15908_v41 = vrot.slane %v11067_v32, %v15024_v4  ;;  %v11496_v23 = vmul.f32 -1.442695, %v9484_v28  ;;  %v11497_v8 = vmul.f32 -1.442695, %v9485_v25  ;;  %v10311_v42 = vor.u32 %v11549_v57, %v11548_v27 }
 0x41d   : > { %16768 = vst [vmem:[#allocation104_spill] sm:$0xff] %v15895_v35  ;;  %16769 = vst [vmem:[#allocation62_spill] sm:$0xff] %v15905_v20  ;;  %v11513_v30 = vmul.f32 -1.442695, %v9598_v52  ;;  %v11514_v16 = vmul.f32 -1.442695, %v9599_v40 }
 0x41e   : > { %16770 = vst [vmem:[#allocation58_spill] sm:$0xff] %v15908_v41  ;;  %11925 = vpow2.f32 %v11496_v23  ;;  %v11516_v53 = vld [vmem:[%s12831_s28 + $0x40] ss:$8 sm:$0xf0] }
 0x41f   : > { %11927 = vpow2.f32 %v11497_v8  ;;  %v11517_v32 = vld [vmem:[%s12839_s20 + $0x40] ss:$8 sm:$0xf]  ;;  %v11524_v25 = vld [vmem:[%s12831_s28 + $0x41] ss:$8 sm:$0xf]  ;;  %v9702_v6 = vor.u32 %v11516_v53, %v11515_v5  ;;  %v15947_v5 = vor.u32 %v11553_v44, %v11552_v2  ;;  %v10476_v53 = vor.u32 %v11561_v19, %v11560_v60 }
 0x420   : > { %11929 = vpow2.f32 %v11513_v30  ;;  %v11518_v28 = vld [vmem:[%s12839_s20 + $0x40] ss:$8 sm:$0xf0]  ;;  %v11525_v52 = vld [vmem:[%s12831_s28 + $0x41] ss:$8 sm:$0xf0] }
 0x421   : > { %11931 = vpow2.f32 %v11514_v16  ;;  %v11528_v23 = vld [vmem:[%s12839_s20 + $0x41] ss:$8 sm:$0xf]  ;;  %v11536_v8 = vld [vmem:[%s12831_s28 + $0x42] ss:$8 sm:$0xf]  ;;  %v15937_v49 = vor.u32 %v11518_v28, %v11517_v32  ;;  %v9981_v37 = vor.u32 %v11525_v52, %v11524_v25  ;;  %v10806_v52 = vor.u32 %v11585_v38, %v11584_v17 }
 0x422   : > { %v11529_v40 = vld [vmem:[%s12839_s20 + $0x41] ss:$8 sm:$0xf0]  ;;  %v11537_v30 = vld [vmem:[%s12831_s28 + $0x42] ss:$8 sm:$0xf0]  ;;  %v15965_v19 = vsub.f32 %v10311_v42, %v15947_v5 }
 0x423   : > { %v11540_v16 = vld [vmem:[%s12839_s20 + $0x42] ss:$8 sm:$0xf]  ;;  %v11564_v41 = vld [vmem:[%s12839_s20 + $0x44] ss:$8 sm:$0xf]  ;;  %v15941_v48 = vor.u32 %v11529_v40, %v11528_v23  ;;  %v10146_v15 = vor.u32 %v11537_v30, %v11536_v8  ;;  %v15956_v57 = vsub.f32 %v9702_v6, %v15937_v49  ;;  %v16771_v6 = vcombine.high %v15725_v63, %v15728_v11 }
 0x424   : > { %v11541_v54 = vld [vmem:[%s12839_s20 + $0x42] ss:$8 sm:$0xf0]  ;;  %v11565_v20 = vld [vmem:[%s12839_s20 + $0x44] ss:$8 sm:$0xf0]  ;;  %v16774_v63 = vcombine.low %v15775_v43, %v15815_v51  ;;  %v16778_v43 = vcombine.low %v15764_v45, %v15836_v1 }
 0x425   : > { %v11572_v35 = vld [vmem:[%s12831_s28 + $0x45] ss:$8 sm:$0xf]  ;;  %v11588_v50 = vld [vmem:[%s12839_s20 + $0x46] ss:$8 sm:$0xf]  ;;  %v15944_v62 = vor.u32 %v11541_v54, %v11540_v16  ;;  %v15977_v17 = vrot.slane %v16771_v6, %v15024_v4 }
 0x426   : > { %v11573_v24 = vld [vmem:[%s12831_s28 + $0x45] ss:$8 sm:$0xf0]  ;;  %v9820_v11 = vrot.slane %v16774_v63, %v15024_v4  ;;  %v9938_v51 = vrot.slane %v16778_v43, %v15024_v4 }
 0x427   : > { %v11577_v29 = vld [vmem:[%s12839_s20 + $0x45] ss:$8 sm:$0xf0]  ;;  %v10641_v28 = vor.u32 %v11573_v24, %v11572_v35 }
 0x428   : > { %v11926_v13 = vpop.eup %11925  ;;  %v15951_v25 = vor.u32 %v11577_v29, %v11576_v55  ;;  %v16783_v45 = vld [vmem:[#allocation102_spill] sm:$0xff]  ;;  %v16784_v1 = vld [vmem:[#allocation55_spill] sm:$0xff]  ;;  %v16795_v40 = vld [vmem:[#allocation84_spill] sm:$0xff] }
 0x429   : > { %v11928_v9 = vpop.eup %11927  ;;  %v9548_v59 = vadd.f32 1.0, %v11926_v13  ;;  %v15949_v13 = vor.u32 %v11565_v20, %v11564_v41  ;;  %v16785_v44 = vcombine.low %v16783_v45, %v16784_v1  ;;  %v16793_v20 = vld [vmem:[#allocation57_spill] sm:$0xff] }
 0x42a   : > { %v11930_v14 = vpop.eup %11929  ;;  %v9549_v3 = vadd.f32 1.0, %v11928_v9  ;;  %v15953_v9 = vor.u32 %v11589_v18, %v11588_v50  ;;  %v15971_v38 = vsub.f32 %v10641_v28, %v15951_v25  ;;  %v16773_v18 = vcombine.low %v15739_v34, %v15746_v39  ;;  %v16796_v30 = vld [vmem:[#allocation65_spill] sm:$0xff]  ;;  %v16798_v28 = vld [vmem:[#allocation66_spill] sm:$0xff] }
 0x42b   : > { %v11932_v46 = vpop.eup %11931  ;;  %11933 = vrcp.f32 %v9548_v59  ;;  %v9662_v22 = vadd.f32 1.0, %v11930_v14  ;;  %v15959_v14 = vsub.f32 %v9981_v37, %v15941_v48  ;;  %v15962_v59 = vsub.f32 %v10146_v15, %v15944_v62 }
 0x42c   : > { %11935 = vrcp.f32 %v9549_v3  ;;  %v9663_v32 = vadd.f32 1.0, %v11932_v46  ;;  %v15968_v55 = vsub.f32 %v10476_v53, %v15949_v13  ;;  %v16772_v37 = vcombine.low %v15731_v31, %v15736_v58  ;;  %v16797_v53 = vld [vmem:[#allocation86_spill] sm:$0xff] }
 0x42d   : > { %11937 = vrcp.f32 %v9662_v22  ;;  %v15989_v22 = vrot.slane %v16773_v18, %v15024_v4  ;;  %v15992_v42 = vsub.f32 %v10806_v52, %v15953_v9  ;;  %v16775_v31 = vcombine.low %v15749_v26, %v15752_v36 }
 0x42e   : > { %11939 = vrcp.f32 %v9663_v32  ;;  %v15983_v60 = vrot.slane %v16772_v37, %v15024_v4  ;;  %v16776_v34 = vcombine.low %v15757_v21, %v15760_v56  ;;  %v16777_v46 = vcombine.low %v15806_v61, %v15802_v7  ;;  %v16781_v7 = vld [vmem:[#allocation68_spill] sm:$0xff] }
 0x42f   : > { %v16002_v58 = vrot.slane %v16775_v31, %v15024_v4  ;;  %v16779_v26 = vcombine.low %v15783_v10, %v15818_v47  ;;  %v16780_v21 = vcombine.low %v15787_v33, %v15821_v0  ;;  %v16782_v61 = vcombine.low %v15795_v12, %v16781_v7  ;;  %v16786_v10 = vld [vmem:[#allocation54_spill] sm:$0xff]  ;;  %v16787_v47 = vld [vmem:[#allocation72_spill] sm:$0xff]  ;;  %v16792_v12 = vld [vmem:[#allocation103_spill] sm:$0xff] }
 0x430   : > { %v16008_v39 = vrot.slane %v16776_v34, %v15024_v4  ;;  %v16014_v3 = vrot.slane %v16777_v46, %v15024_v4  ;;  %v10595_v2 = vrot.slane %v16785_v44, %v15024_v4  ;;  %v16788_v29 = vcombine.low %v16786_v10, %v16787_v47  ;;  %v16789_v33 = vld [vmem:[#allocation56_spill] sm:$0xff]  ;;  %v16790_v0 = vld [vmem:[#allocation42_spill] sm:$0xff] }
 0x431   : > { %v10100_v36 = vrot.slane %v16779_v26, %v15024_v4  ;;  %v10265_v56 = vrot.slane %v16780_v21, %v15024_v4  ;;  %v10430_v50 = vrot.slane %v16782_v61, %v15024_v4  ;;  %v16791_v35 = vcombine.low %v16789_v33, %v16790_v0  ;;  %v16799_v46 = vld [vmem:[#allocation88_spill] sm:$0xff]  ;;  %v16800_v21 = vld [vmem:[#allocation67_spill] sm:$0xff]  ;;  %v16801_v0 = vld [vmem:[#allocation94_spill] sm:$0xff] }
 0x432   : > { %v10760_v24 = vrot.slane %v16788_v29, %v15024_v4  ;;  %v16794_v41 = vcombine.low %v16792_v12, %v16793_v20 }
 0x433   : > { %v16046_v27 = vrot.slane %v16791_v35, %v15024_v4 }
 0x434   : > { %v16052_v54 = vrot.slane %v16794_v41, %v15024_v4 }
 0x435   : > { %v16032_v15 = vpop.eup %11933 }
 0x436   : > { %v16054_v23 = vpop.eup %11935  ;;  %v9727_v8 = vmul.f32 %v16032_v15, %v16795_v40  ;;  %v10007_v16 = vmul.f32 %v16032_v15, %v16796_v30  ;;  %v10172_v32 = vmul.f32 %v16032_v15, %v16797_v53  ;;  %v10337_v52 = vmul.f32 %v16032_v15, %v16798_v28 }
 0x437   : > { %v11938_v6 = vpop.eup %11937  ;;  %v9728_v37 = vmul.f32 %v16054_v23, %v16795_v40  ;;  %v10008_v18 = vmul.f32 %v16054_v23, %v16796_v30  ;;  %v10173_v63 = vmul.f32 %v16054_v23, %v16797_v53  ;;  %v10338_v31 = vmul.f32 %v16054_v23, %v16798_v28 }
 0x438   : > { %v11940_v34 = vpop.eup %11939  ;;  %v10502_v43 = vmul.f32 %v16032_v15, %v16799_v46  ;;  %v10503_v26 = vmul.f32 %v16054_v23, %v16799_v46  ;;  %v10667_v7 = vmul.f32 %v16032_v15, %v16800_v21  ;;  %v10668_v61 = vmul.f32 %v16054_v23, %v16800_v21 }
 0x439   : > { %v9799_v45 = vcombine.low %v9727_v8, %v9728_v37  ;;  %v9917_v1 = vcombine.low %v11938_v6, %v11940_v34  ;;  %v10079_v44 = vcombine.low %v10007_v16, %v10008_v18  ;;  %v10244_v10 = vcombine.low %v10172_v32, %v10173_v63 }
 0x43a   : > { %v10409_v47 = vcombine.low %v10337_v52, %v10338_v31  ;;  %v10574_v29 = vcombine.low %v10502_v43, %v10503_v26  ;;  %v10739_v33 = vcombine.low %v10667_v7, %v10668_v61  ;;  %v10832_v35 = vmul.f32 %v16032_v15, %v16801_v0 }
 0x43b   : > { %v9827_v12 = vrot.slane %v9799_v45, %v15024_v4  ;;  %v9945_v20 = vrot.slane %v9917_v1, %v15024_v4  ;;  %v10107_v41 = vrot.slane %v10079_v44, %v15024_v4  ;;  %v10272_v40 = vrot.slane %v10244_v10, %v15024_v4  ;;  %v16803_v10 = vld [vmem:[#allocation74_spill] sm:$0xff] }
 0x43c   : > { %v10437_v30 = vrot.slane %v10409_v47, %v15024_v4  ;;  %v10602_v8 = vrot.slane %v10574_v29, %v15024_v4  ;;  %v10767_v16 = vrot.slane %v10739_v33, %v15024_v4  ;;  %v10833_v53 = vmul.f32 %v16054_v23, %v16801_v0  ;;  %v11596_v33 = vld [vmem:[%s12831_s28 + $0x47] ss:$8 sm:$0xf] }
 0x43d   : > { %v9829_v32 = vcombine.low %v9820_v11, %v9827_v12  ;;  %v9947_v28 = vcombine.high %v9938_v51, %v9945_v20  ;;  %v10109_v52 = vcombine.low %v10100_v36, %v10107_v41  ;;  %v10274_v6 = vcombine.low %v10265_v56, %v10272_v40  ;;  %v11597_v0 = vld [vmem:[%s12831_s28 + $0x47] ss:$8 sm:$0xf0]  ;;  %s11608_s28 = sshll.u32 %s16633_s15, 5 }
 0x43e   : > { %v10439_v37 = vcombine.low %v10430_v50, %v10437_v30  ;;  %v10604_v18 = vcombine.low %v10595_v2, %v10602_v8  ;;  %v10769_v63 = vcombine.low %v10760_v24, %v10767_v16  ;;  %v10904_v31 = vcombine.low %v10832_v35, %v10833_v53  ;;  %v11600_v20 = vld [vmem:[%s12839_s20 + $0x47] ss:$8 sm:$0xf]  ;;  %s11142_s12 = sadd.s32 %s11608_s28, %s11607_s17 }
 0x43f   : > { %v9843_v34 = vrot.slane %v9829_v32, %v15024_v4  ;;  %v9961_v46 = vrot.slane %v9947_v28, %v15024_v4  ;;  %v10123_v43 = vrot.slane %v10109_v52, %v15024_v4  ;;  %v10288_v26 = vrot.slane %v10274_v6, %v15024_v4  ;;  %v11601_v41 = vld [vmem:[%s12839_s20 + $0x47] ss:$8 sm:$0xf0]  ;;  %s16812_s20 = sld [smem:[#allocation39_spill]]  ;;  %s11609_s22 = sshll.u32 %s11142_s12, 7 }
 0x440   : > { %v10453_v21 = vrot.slane %v10439_v37, %v15024_v4  ;;  %v10618_v7 = vrot.slane %v10604_v18, %v15024_v4  ;;  %v10783_v11 = vrot.slane %v10769_v63, %v15024_v4  ;;  %v10932_v51 = vrot.slane %v10904_v31, %v15024_v4  ;;  %v16806_v53 = vld [vmem:[#allocation76_spill] sm:$0xff]  ;;  %v16810_v63 = vld [vmem:[#allocation58_spill] sm:$0xff]  ;;  %s16174_s25 = scalar_lea.hbm %s16813_s6, %s11609_s22 }
 0x441   : > { %v9844_v36 = vcombine.low %v15983_v60, %v9843_v34  ;;  %v16101_v56 = vcombine.low %v15977_v17, %v9961_v46  ;;  %v10124_v50 = vcombine.low %v15989_v22, %v10123_v43  ;;  %v10289_v2 = vcombine.low %v16002_v58, %v10288_v26  ;;  %v16807_v32 = vld [vmem:[#allocation104_spill] sm:$0xff] }
 0x442   : > { %v10454_v24 = vcombine.low %v16008_v39, %v10453_v21  ;;  %v10619_v61 = vcombine.low %v16014_v3, %v10618_v7  ;;  %v10784_v45 = vcombine.low %v16046_v27, %v10783_v11  ;;  %v10934_v1 = vcombine.low %v16052_v54, %v10932_v51 }
 0x443   : > { %v9848_v44 = vmul.f32 %v9844_v36, %v15956_v57  ;;  %v9966_v60 = vmul.f32 %v16101_v56, %v15937_v49  ;;  %v10128_v17 = vmul.f32 %v10124_v50, %v15959_v14  ;;  %v10130_v22 = vmul.f32 %v15941_v48, %v16101_v56 }
 0x444   : > { %v10293_v58 = vmul.f32 %v10289_v2, %v15962_v59  ;;  %v10295_v39 = vmul.f32 %v15944_v62, %v16101_v56  ;;  %v10458_v3 = vmul.f32 %v10454_v24, %v15965_v19  ;;  %v10460_v57 = vmul.f32 %v15947_v5, %v16101_v56  ;;  %v16802_v19 = vld [vmem:[#allocation73_spill] sm:$0xff] }
 0x445   : > { %v9968_v49 = vadd.f32 %v9966_v60, %v9848_v44  ;;  %v10132_v27 = vadd.f32 %v10130_v22, %v10128_v17  ;;  %v10623_v14 = vmul.f32 %v10619_v61, %v15968_v55  ;;  %v10625_v48 = vmul.f32 %v15949_v13, %v16101_v56  ;;  %p16814_p2 = scmp.ne.s32.totalorder %s16812_s20, 0 }
 0x446   : > { %v10297_v59 = vadd.f32 %v10295_v39, %v10293_v58  ;;  %v10462_v54 = vadd.f32 %v10460_v57, %v10458_v3  ;;  %v10788_v62 = vmul.f32 %v10784_v45, %v15971_v38  ;;  %v10790_v5 = vmul.f32 %v15951_v25, %v16101_v56  ;;  %v16805_v38 = vld [vmem:[#allocation95_spill] sm:$0xff] }
 0x447   : > { %v16804_v47 = vcombine.low %v16802_v19, %v16803_v10  ;;  %11520 = vst [vmem:[%s15569_s4 + $0x40] ss:$8 sm:$0xf] %v9968_v49  ;;  %11521 = vst [vmem:[%s15569_s4 + $0x40] ss:$8 sm:$0xf0] %v9968_v49  ;;  %v10627_v13 = vadd.f32 %v10625_v48, %v10623_v14  ;;  %v10948_v55 = vrot.slane %v10934_v1, %v15024_v4  ;;  %p12145_p7 = pnand %p12144_p13, %p16814_p2 }
 0x448   : > { %11532 = vst [vmem:[%s15569_s4 + $0x41] ss:$8 sm:$0xf] %v10132_v27  ;;  %11533 = vst [vmem:[%s15569_s4 + $0x41] ss:$8 sm:$0xf0] %v10132_v27  ;;  %v10997_v25 = vmul.f32 %v16032_v15, %v16805_v38  ;;  %v10792_v35 = vadd.f32 %v10790_v5, %v10788_v62  ;;  %v10998_v12 = vmul.f32 %v16054_v23, %v16805_v38 }
 0x449   : > { %v10941_v29 = vrot.slane %v16804_v47, %v15024_v4  ;;  %11544 = vst [vmem:[%s15569_s4 + $0x42] ss:$8 sm:$0xf] %v10297_v59  ;;  %11545 = vst [vmem:[%s15569_s4 + $0x42] ss:$8 sm:$0xf0] %v10297_v59  ;;  %v10955_v8 = vmul.f32 %v15953_v9, %v16101_v56  ;;  %v10971_v16 = vor.u32 %v11597_v0, %v11596_v33  ;;  %p12146_p0 = pneg %p12145_p7 }
 0x44a   : > { %11556 = vst [vmem:[%s15569_s4 + $0x43] ss:$8 sm:$0xf] %v10462_v54  ;;  %11557 = vst [vmem:[%s15569_s4 + $0x43] ss:$8 sm:$0xf0] %v10462_v54  ;;  %v11069_v15 = vcombine.low %v10997_v25, %v10998_v12  ;;  %v10979_v23 = vor.u32 %v11601_v41, %v11600_v20  ;;  %v16808_v28 = vcombine.low %v16806_v53, %v16807_v32 }
 0x44b   : > { %11568 = vst [vmem:[%s15569_s4 + $0x44] ss:$8 sm:$0xf] %v10627_v13  ;;  %11569 = vst [vmem:[%s15569_s4 + $0x44] ss:$8 sm:$0xf0] %v10627_v13  ;;  %v10949_v40 = vcombine.low %v10941_v29, %v10948_v55  ;;  %p12153_p9 = pnand %p12152_p6, %p12146_p0 }
 0x44c   : > { %11580 = vst [vmem:[%s15569_s4 + $0x45] ss:$8 sm:$0xf] %v10792_v35  ;;  %11581 = vst [vmem:[%s15569_s4 + $0x45] ss:$8 sm:$0xf0] %v10792_v35  ;;  %v11090_v52 = vrot.slane %v16808_v28, %v15024_v4  ;;  %v11097_v6 = vrot.slane %v11069_v15, %v15024_v4  ;;  %v11000_v9 = vsub.f32 %v10971_v16, %v10979_v23 }
 0x44d   : > { %v10953_v30 = vmul.f32 %v10949_v40, %v15992_v42  ;;  %v16809_v42 = vld [vmem:[#allocation62_spill] sm:$0xff]  ;;  %v11120_v21 = vmul.f32 %v10979_v23, %v16101_v56 }
 0x44e   : > { %v11099_v18 = vcombine.low %v11090_v52, %v11097_v6  ;;  %v16811_v31 = vcombine.low %v16809_v42, %v16810_v63 }
 0x44f   : > { %v10957_v37 = vadd.f32 %v10955_v8, %v10953_v30 }
 0x450   : > { %v11106_v34 = vrot.slane %v16811_v31, %v15024_v4  ;;  %v11113_v46 = vrot.slane %v11099_v18, %v15024_v4 }
 0x451   : > { %11592 = vst [vmem:[%s15569_s4 + $0x46] ss:$8 sm:$0xf] %v10957_v37  ;;  %11593 = vst [vmem:[%s15569_s4 + $0x46] ss:$8 sm:$0xf0] %v10957_v37 }
 0x452   : > { %v11114_v43 = vcombine.low %v11106_v34, %v11113_v46 }
 0x454   : > { %v11118_v26 = vmul.f32 %v11114_v43, %v11000_v9 }
 0x456   : > { %v11122_v7 = vadd.f32 %v11120_v21, %v11118_v26 }
 0x458   : > { %11604 = vst [vmem:[%s15569_s4 + $0x47] ss:$8 sm:$0xf] %v11122_v7  ;;  %11605 = vst [vmem:[%s15569_s4 + $0x47] ss:$8 sm:$0xf0] %v11122_v7 }
 0x459   : > { %12156 = shalt.err (!%p12153_p9)
}
 0x45a   : > { %s12157_s0 = scalar_lea.hbm %s16174_s25, 2048  ;;  %s12161_s1 = scalar_lea.hbm %s16813_s6, 8192 }
 0x45b   : > { %p12158_p12 = scmp.ne.s32.totalorder %s16174_s25, %s12157_s0  ;;  %p12162_p4 = scmp.lt.u32.totalorder %s16174_s25, %s16813_s6 }
 0x45c   : > { %p12163_p3 = scmp.lt.u32.totalorder %s12161_s1, %s12157_s0  ;;  %p12165_p13 = scmp.lt.u32.totalorder %s12157_s0, %s16174_s25 }
 0x45d   : > { %p12159_p5 = pnand %p12158_p12, %p16814_p2 }
 0x45e   : > { %p12164_p11 = por %p12163_p3, %p12162_p4 }
 0x45f   : > { %p12160_p1 = pneg %p12159_p5 }
 0x460   : > { %p12166_p7 = por %p12165_p13, %p12164_p11 }
 0x462   : > { %p12167_p0 = pnand %p12166_p7, %p12160_p1 }
 0x464   : > { %12170 = shalt.err (!%p12167_p0)
}
 0x465   : > { %11642 = dma.vmem_to_hbm [thread:$0]  (%p16814_p2), %s16176_s29, 2048, %s16174_s25, %s11130_s23  }
 0x466 PF: > { %s16815_s28 = sld [smem:[#allocation31_spill]]  ;;  %s16816_s12 = sld [smem:[#allocation40_spill]] }
 0x467   : > { %p11683_p8 = scmp.ge.s32.totalorder %s12317_s18, 2 }
 0x46c   : > { %s11158_s22 = sand.u32 1, %s16815_s28   ;;  %p16817_p10 = scmp.ne.s32.totalorder %s16816_s12, 0 }
 0x46d   : > { %s11159_s15 = scalar_lea.sflag [#allocation5], %s11158_s22 }
 0x46e   : > { %p11671_p6 = pnand %p11683_p8, %p16817_p10 }
 0x470   : > { %12260 = dma.done.wait (!%p11671_p6), %s11159_s15, 2048  }
 0x471   : > { %12262 = vsyncadd (!%p11671_p6), %s11159_s15, 4294965248  ;;  %s33_s18 = sadd.s32 1, %s12317_s18   ;;  %s16819_s27 = sld [smem:[#allocation29_spill]] }
 0x472   : > { %p16207_p9 = scmp.ge.s32.totalorder %s33_s18, 6   ;;  %s16820_s28 = sld [smem:[#allocation30_spill]] }
 0x473   : > { %s16821_s11 = sld [smem:[#allocation32_spill]]  ;;  %s16822_s20 = sld [smem:[#allocation41_spill]] }
 0x474   : > { %s16823_s15 = sld [smem:[#allocation35_spill]]  ;;  %s16824_s17 = sld [smem:[#allocation37_spill]] }
 0x475   : > { %s16826_s29 = smov %s16849_s3  ;;  %s16827_s30 = smov %s12281_s9 }
 0x476   : > { %s16828_s9 = smov %s12285_s10  ;;  %s16829_s10 = smov %s12710_s2 }
 0x477   : > { %s16830_s12 = smov %s12297_s13  ;;  %s16832_s14 = smov %s12309_s16 }
 0x478   : > { %s16833_s16 = smov %s16835_s19  ;;  %32 = sbr.rel (!%p16207_p9) target bundleno = 25 (0x19), region = 219 }
 0x479   : > { %s16831_s13 = smov %s16822_s20 }
 0x47f   :  { %11164 = vsyncpa [#allocation4], 1 }
 0x480   :  { %11166 = vsyncpa [#allocation4 + $0x1], 1 }
 0x481   :  { %11167 = vsyncpa [#allocation8], 1 }
 0x482   :  { %11169 = vsyncpa [#allocation8 + $0x1], 1 }
 0x483   :  { %11170 = vsyncpa [#allocation11], 1 }
 0x484   :  { %11172 = vsyncpa [#allocation11 + $0x1], 1 }
 0x485   :  { %11173 = vsyncpa [#allocation17], 1 }
 0x486   :  { %11174 = vsyncpa [#allocation5], 1 }
 0x487   :  { %11176 = vsyncpa [#allocation5 + $0x1], 1 }
 0x488   :  { %11177 = vsyncpa [#allocation6], 1 }
 0x489   :  { %11179 = vsyncpa [#allocation6 + $0x1], 1 }
 0x48a   :  { %11180 = vsyncpa [#allocation14], 1 }

</bundles_post_ra>
